<compile_context>
chip_gen: v5e
topology: v5e:2x2
jax: 0.10.0
libtpu: 0.0.40
codegen_flags: <defaults>
</compile_context>

<pallas_src>
import jax
import jax.numpy as jnp
import numpy as np
from jax.experimental import pallas as pl
from jax.experimental.pallas import tpu as pltpu

EXPANSION = 4
BN_EPS = 1e-5
LANE = 128


def _round_up(x, m):
    return (x + m - 1) // m * m


# ----------------------------------------------------------------------------
# Pallas kernel
# ----------------------------------------------------------------------------
def _make_bottleneck_kernel(H, W, Cp, Pp, Ep, stride, has_ds):
    Ho, Wo = H // stride, W // stride
    HW, HoWo = H * W, Ho * Wo
    inv_area = 1.0 / float(stride * stride)
    n_in = 9 if has_ds else 7
    bf16 = jnp.bfloat16

    def kernel(*refs):
        ins, out_ref, scratch = refs[:n_in], refs[n_in], refs[n_in + 1:]
        x_ref = ins[0]                               # (H, W, Cp) f32 (batch dim squeezed)
        w1_r, b1_r, w2_r, b2_r, w3_r, b3_r = ins[1:7]
        wd_r, bd_r = (ins[7], ins[8]) if has_ds else (None, None)
        pad_s = scratch[0]                           # (H+2, W+2, Pp) f32
        h2_s = scratch[1] if stride > 1 else None    # (H, W, Pp) f32

        x = x_ref[...]                               # (H, W, Cp) f32

        # ---- conv1 (1x1) + folded BN1 + ReLU : one bf16 MXU matmul -----------
        h1 = jnp.dot(x.reshape(HW, Cp).astype(bf16), w1_r[...],
                     preferred_element_type=jnp.float32) + b1_r[...]
        h1 = jnp.maximum(h1, 0.0)                    # (HW, Pp) f32

        # ---- conv2 (3x3, padding=1) + folded BN2 + ReLU ----------------------
        # Zero only the 1-wide border of the padded scratch (not the full tile)
        # then write the interior.  Per-step border zeroing keeps this correct
        # under dimension_semantics=("parallel",).
        zrow = jnp.zeros((1, W + 2, Pp), jnp.float32)
        pad_s[0:1, :, :] = zrow
        pad_s[H + 1:H + 2, :, :] = zrow
        zcol = jnp.zeros((H, 1, Pp), jnp.float32)
        pad_s[1:H + 1, 0:1, :] = zcol
        pad_s[1:H + 1, W + 1:W + 2, :] = zcol
        pad_s[1:H + 1, 1:W + 1, :] = h1.reshape(H, W, Pp)

        # im2col: one (HW, 9*Pp) @ (9*Pp, Pp) matmul instead of 9 small dots.
        cols = []
        for dy in range(3):
            for dx in range(3):
                cols.append(pad_s[dy:dy + H, dx:dx + W, :]
                            .reshape(HW, Pp).astype(bf16))
        slab = jnp.concatenate(cols, axis=1)         # (HW, 9*Pp) bf16
        h2 = jnp.dot(slab, w2_r[...],
                     preferred_element_type=jnp.float32) + b2_r[...]
        h2 = jnp.maximum(h2, 0.0)                    # (HW, Pp) f32

        # ---- AvgPool2d(stride) (Identity when stride == 1) -------------------
        if stride > 1:
            h2_s[...] = h2.reshape(H, W, Pp)
            pooled = jnp.zeros((Ho, Wo, Pp), jnp.float32)
            for i in range(stride):
                for j in range(stride):
                    pooled = pooled + h2_s[pl.ds(i, Ho, stride),
                                           pl.ds(j, Wo, stride), :]
            p2d = (pooled * inv_area).reshape(HoWo, Pp)
        else:
            p2d = h2                                 # (HW, Pp)

        # ---- conv3 (1x1) + folded BN3 (no ReLU yet) --------------------------
        h3 = jnp.dot(p2d.astype(bf16), w3_r[...],
                     preferred_element_type=jnp.float32) + b3_r[...]  # (HoWo, Ep)

        # ---- identity / downsample branch ------------------------------------
        if has_ds:
            if stride > 1:
                # Strided pool directly from the x block already in VMEM
                # (no extra scratch copy).
                xp = jnp.zeros((Ho, Wo, Cp), jnp.float32)
                for i in range(stride):
                    for j in range(stride):
                        xp = xp + x_ref[pl.ds(i, Ho, stride),
                                        pl.ds(j, Wo, stride), :]
                xp2d = (xp * inv_area).reshape(HoWo, Cp)
            else:
                xp2d = x.reshape(HW, Cp)
            ident = jnp.dot(xp2d.astype(bf16), wd_r[...],
                            preferred_element_type=jnp.float32) + bd_r[...]
        else:
            ident = x.reshape(HoWo, Cp)              # requires Cp == Ep, stride == 1

        out_ref[...] = jnp.maximum(h3 + ident, 0.0).reshape(Ho, Wo, Ep)

    return kernel


# ----------------------------------------------------------------------------
# Glue: BN folding, channel padding, parameter init, wrapper
# ----------------------------------------------------------------------------
def _fold_bn(w, bn):
    """Fold inference-mode BatchNorm into conv weight (out-channel = last dim)."""
    scale = bn['gamma'] / jnp.sqrt(bn['var'] + BN_EPS)
    return w * scale, bn['beta'] - bn['mean'] * scale


def _pad_axis(a, axis, target):
    d = target - a.shape[axis]
    if d <= 0:
        return a
    widths = [(0, 0)] * a.ndim
    widths[axis] = (0, d)
    return jnp.pad(a, widths)


def init_bn(key, c):
    k1, k2, k3, k4 = jax.random.split(key, 4)
    return dict(
        gamma=jax.random.uniform(k1, (c,), jnp.float32, 0.5, 1.5),
        beta=0.1 * jax.random.normal(k2, (c,), jnp.float32),
        mean=0.1 * jax.random.normal(k3, (c,), jnp.float32),
        var=jax.random.uniform(k4, (c,), jnp.float32, 0.5, 1.5),
    )


def init_params(key, inplanes, planes, has_ds):
    E = planes * EXPANSION
    ks = jax.random.split(key, 8)
    p = dict(
        w1=0.2 * jax.random.normal(ks[0], (inplanes, planes), jnp.float32),
        bn1=init_bn(ks[1], planes),
        w2=0.2 * jax.random.normal(ks[2], (9, planes, planes), jnp.float32),
        bn2=init_bn(ks[3], planes),
        w3=0.2 * jax.random.normal(ks[4], (planes, E), jnp.float32),
        bn3=init_bn(ks[5], E),
    )
    if has_ds:
        p['wd'] = 0.2 * jax.random.normal(ks[6], (inplanes, E), jnp.float32)
        p['bnd'] = init_bn(ks[7], E)
    return p


def bottleneck_forward_nhwc(x_nhwc, params, stride):
    x = x_nhwc.astype(jnp.float32)
    N, H, W, Cin = x.shape
    P = params['w1'].shape[1]
    E = P * EXPANSION
    has_ds = 'wd' in params
    if not has_ds:
        assert stride == 1 and Cin == E, \
            "identity branch requires stride == 1 and inplanes == planes * 4"
    Ho, Wo = H // stride, W // stride

    # lane-dense channel padding (multiples of 128)
    Cp, Pp, Ep = (_round_up(c, LANE) for c in (Cin, P, E))

    # Fold BN (inference stats) into conv weights, pad to lane-dense shapes,
    # cast weights to bf16 (matmul operands); biases stay f32.
    w1f, b1 = _fold_bn(params['w1'], params['bn1'])
    w2f, b2 = _fold_bn(params['w2'], params['bn2'])
    w3f, b3 = _fold_bn(params['w3'], params['bn3'])
    w1k = _pad_axis(_pad_axis(w1f, 0, Cp), 1, Pp).astype(jnp.bfloat16)
    w2k = (_pad_axis(_pad_axis(w2f, 1, Pp), 2, Pp)
           .reshape(9 * Pp, Pp).astype(jnp.bfloat16))      # im2col weight
    w3k = _pad_axis(_pad_axis(w3f, 0, Pp), 1, Ep).astype(jnp.bfloat16)
    b1k = _pad_axis(b1.reshape(1, -1), 1, Pp).astype(jnp.float32)
    b2k = _pad_axis(b2.reshape(1, -1), 1, Pp).astype(jnp.float32)
    b3k = _pad_axis(b3.reshape(1, -1), 1, Ep).astype(jnp.float32)

    xk = _pad_axis(x, 3, Cp)

    args = [xk, w1k, b1k, w2k, b2k, w3k, b3k]
    in_specs = [
        pl.BlockSpec((None, H, W, Cp), lambda n: (n, 0, 0, 0)),
        pl.BlockSpec((Cp, Pp), lambda n: (0, 0)),
        pl.BlockSpec((1, Pp), lambda n: (0, 0)),
        pl.BlockSpec((9 * Pp, Pp), lambda n: (0, 0)),
        pl.BlockSpec((1, Pp), lambda n: (0, 0)),
        pl.BlockSpec((Pp, Ep), lambda n: (0, 0)),
        pl.BlockSpec((1, Ep), lambda n: (0, 0)),
    ]
    if has_ds:
        wdf, bd = _fold_bn(params['wd'], params['bnd'])
        wdk = _pad_axis(_pad_axis(wdf, 0, Cp), 1, Ep).astype(jnp.bfloat16)
        bdk = _pad_axis(bd.reshape(1, -1), 1, Ep).astype(jnp.float32)
        args += [wdk, bdk]
        in_specs += [pl.BlockSpec((Cp, Ep), lambda n: (0, 0)),
                     pl.BlockSpec((1, Ep), lambda n: (0, 0))]

    scratch_shapes = [pltpu.VMEM((H + 2, W + 2, Pp), jnp.float32)]   # padded conv2 input
    if stride > 1:
        scratch_shapes.append(pltpu.VMEM((H, W, Pp), jnp.float32))   # conv2 out for pooling

    kernel = _make_bottleneck_kernel(H, W, Cp, Pp, Ep, stride, has_ds)

    out = pl.pallas_call(
        kernel,
        out_shape=jax.ShapeDtypeStruct((N, Ho, Wo, Ep), jnp.float32),
        grid=(N,),
        in_specs=in_specs,
        out_specs=pl.BlockSpec((None, Ho, Wo, Ep), lambda n: (n, 0, 0, 0)),
        scratch_shapes=scratch_shapes,
        compiler_params=pltpu.CompilerParams(
            # batch elements are independent -> shard across TCs on v7x
            dimension_semantics=("parallel",),
            vmem_limit_bytes=32 * 1024 * 1024),
    )(*args)
    return out[:, :, :, :E]


def bottleneck_forward(x_nchw, params, stride):
    # NCHW (PyTorch) -> NHWC for the kernel -> back to NCHW.  A full network
    # should stay NHWC end-to-end and call bottleneck_forward_nhwc directly to
    # avoid these per-block full-tensor transposes.
    x = jnp.transpose(x_nchw, (0, 2, 3, 1))
    out = bottleneck_forward_nhwc(x, params, stride)
    return jnp.transpose(out, (0, 3, 1, 2))


# ----------------------------------------------------------------------------
# Pure-JAX reference with identical numerics (folded BN, bf16 matmul operands,
# f32 accumulation) for self-check.
# ----------------------------------------------------------------------------
def ref_forward(x_nchw, params, stride):
    bf = jnp.bfloat16
    x = jnp.transpose(x_nchw, (0, 2, 3, 1)).astype(jnp.float32)
    N, H, W, Cin = x.shape
    P = params['w1'].shape[1]
    has_ds = 'wd' in params
    w1f, b1 = _fold_bn(params['w1'], params['bn1'])
    w2f, b2 = _fold_bn(params['w2'], params['bn2'])
    w3f, b3 = _fold_bn(params['w3'], params['bn3'])

    h1 = jnp.einsum('nhwc,cp->nhwp', x.astype(bf), w1f.astype(bf),
                    preferred_element_type=jnp.float32) + b1
    h1 = jnp.maximum(h1, 0.0)
    hp = jnp.pad(h1.astype(bf), ((0, 0), (1, 1), (1, 1), (0, 0)))
    acc = jnp.zeros((N, H, W, P), jnp.float32)
    t = 0
    for dy in range(3):
        for dx in range(3):
            acc = acc + jnp.einsum('nhwc,cp->nhwp',
                                   hp[:, dy:dy + H, dx:dx + W, :],
                                   w2f[t].astype(bf),
                                   preferred_element_type=jnp.float32)
            t += 1
    h2 = jnp.maximum(acc + b2, 0.0)
    if stride > 1:
        h2 = h2.reshape(N, H // stride, stride, W // stride, stride, P).mean(axis=(2, 4))
    h3 = jnp.einsum('nhwc,cp->nhwp', h2.astype(bf), w3f.astype(bf),
                    preferred_element_type=jnp.float32) + b3
    if has_ds:
        wdf, bd = _fold_bn(params['wd'], params['bnd'])
        xp = x
        if stride > 1:
            xp = x.reshape(N, H // stride, stride, W // stride, stride, Cin).mean(axis=(2, 4))
        ident = jnp.einsum('nhwc,cp->nhwp', xp.astype(bf), wdf.astype(bf),
                           preferred_element_type=jnp.float32) + bd
    else:
        ident = x
    out = jnp.maximum(h3 + ident, 0.0)
    return jnp.transpose(out, (0, 3, 1, 2))


# ----------------------------------------------------------------------------
if __name__ == "__main__":
    key = jax.random.PRNGKey(0)

    configs = [
        # (inplanes, planes, stride, N, H, W)
        (8, 4, 2, 2, 16, 16),    # stride > 1 -> AvgPool + downsample branch
        (16, 4, 1, 2, 16, 16),   # inplanes == planes*4, stride 1 -> identity branch
    ]
    for ci, (inplanes, planes, stride, N, H, W) in enumerate(configs):
        kx, kp, key = jax.random.split(key, 3)
        has_ds = (stride > 1) or (inplanes != planes * EXPANSION)
        params = init_params(kp, inplanes, planes, has_ds)
        x = jax.random.normal(kx, (N, inplanes, H, W), jnp.float32)

        out = jax.block_until_ready(bottleneck_forward(x, params, stride))
        ref = jax.block_until_ready(ref_forward(x, params, stride))

        assert out.shape == (N, planes * EXPANSION, H // stride, W // stride), out.shape
        if not np.allclose(np.asarray(out), np.asarray(ref), rtol=1e-2, atol=1e-2):
            err = np.max(np.abs(np.asarray(out) - np.asarray(ref)))
            raise AssertionError(f"config {ci}: kernel/reference mismatch, max err {err}")

    print("KERNEL_OK")
</pallas_src>

<mosaic_0001>
module attributes {stable_mosaic.version = 11 : i64} {
  func.func @kernel(%arg0: i32, %arg1: memref<1x16x16x128xf32, #tpu.memory_space<vmem>>, %arg2: memref<128x128xbf16, #tpu.memory_space<vmem>>, %arg3: memref<1x128xf32, #tpu.memory_space<vmem>>, %arg4: memref<1152x128xbf16, #tpu.memory_space<vmem>>, %arg5: memref<1x128xf32, #tpu.memory_space<vmem>>, %arg6: memref<128x128xbf16, #tpu.memory_space<vmem>>, %arg7: memref<1x128xf32, #tpu.memory_space<vmem>>, %arg8: memref<128x128xbf16, #tpu.memory_space<vmem>>, %arg9: memref<1x128xf32, #tpu.memory_space<vmem>>, %arg10: memref<1x8x8x128xf32, #tpu.memory_space<vmem>>, %arg11: memref<18x18x128xf32, #tpu.memory_space<vmem>>, %arg12: memref<16x16x128xf32, #tpu.memory_space<vmem>>) attributes {dimension_semantics = [#tpu.dimension_semantics<parallel>], iteration_bounds = array<i64: 2>, scalar_prefetch = 0 : i64, scratch_operands = 2 : i64, tpu.core_type = #tpu.core_type<tc>, window_params = [{transform_indices = @transform_0, window_bounds = array<i64: 1, 16, 16, 128>}, {pipeline_mode = #tpu.pipeline_mode<synchronous>, transform_indices = @transform_1, window_bounds = array<i64: 128, 128>}, {pipeline_mode = #tpu.pipeline_mode<synchronous>, transform_indices = @transform_2, window_bounds = array<i64: 1, 128>}, {pipeline_mode = #tpu.pipeline_mode<synchronous>, transform_indices = @transform_3, window_bounds = array<i64: 1152, 128>}, {pipeline_mode = #tpu.pipeline_mode<synchronous>, transform_indices = @transform_4, window_bounds = array<i64: 1, 128>}, {pipeline_mode = #tpu.pipeline_mode<synchronous>, transform_indices = @transform_5, window_bounds = array<i64: 128, 128>}, {pipeline_mode = #tpu.pipeline_mode<synchronous>, transform_indices = @transform_6, window_bounds = array<i64: 1, 128>}, {pipeline_mode = #tpu.pipeline_mode<synchronous>, transform_indices = @transform_7, window_bounds = array<i64: 128, 128>}, {pipeline_mode = #tpu.pipeline_mode<synchronous>, transform_indices = @transform_8, window_bounds = array<i64: 1, 128>}, {transform_indices = @transform_9, window_bounds = array<i64: 1, 8, 8, 128>}]} {
    %c0 = arith.constant 0 : index
    %c0_0 = arith.constant 0 : index
    %c0_1 = arith.constant 0 : index
    %c0_2 = arith.constant 0 : index
    %0 = vector.load %arg1[%c0, %c0_0, %c0_1, %c0_2] : memref<1x16x16x128xf32, #tpu.memory_space<vmem>>, vector<1x16x16x128xf32>
    %1 = vector.shape_cast %0 : vector<1x16x16x128xf32> to vector<16x16x128xf32>
    %2 = vector.shape_cast %1 : vector<16x16x128xf32> to vector<256x128xf32>
    %3 = arith.truncf %2 : vector<256x128xf32> to vector<256x128xbf16>
    %c0_3 = arith.constant 0 : index
    %c0_4 = arith.constant 0 : index
    %4 = vector.load %arg2[%c0_3, %c0_4] : memref<128x128xbf16, #tpu.memory_space<vmem>>, vector<128x128xbf16>
    %cst = arith.constant dense<0.000000e+00> : vector<256x128xf32>
    %5 = tpu.matmul %3, %4, %cst {dimension_numbers = #tpu.dot_dimension_numbers<[1], [0], [0], [1], [0, 0, 1, 1], [], []>} : vector<256x128xbf16>, vector<128x128xbf16>, vector<256x128xf32> -> vector<256x128xf32>
    %c0_5 = arith.constant 0 : index
    %c0_6 = arith.constant 0 : index
    %6 = vector.load %arg3[%c0_5, %c0_6] : memref<1x128xf32, #tpu.memory_space<vmem>>, vector<1x128xf32>
    %7 = vector.broadcast %6 : vector<1x128xf32> to vector<256x128xf32>
    %8 = arith.addf %5, %7 : vector<256x128xf32>
    %cst_7 = arith.constant 0.000000e+00 : f32
    %9 = vector.broadcast %cst_7 : f32 to vector<256x128xf32>
    %10 = arith.maximumf %8, %9 : vector<256x128xf32>
    %cst_8 = arith.constant 0.000000e+00 : f32
    %11 = vector.broadcast %cst_8 : f32 to vector<1x18x128xf32>
    %c0_9 = arith.constant 0 : index
    %c0_10 = arith.constant 0 : index
    %c0_11 = arith.constant 0 : index
    %12 = vector.load %arg11[%c0_9, %c0_10, %c0_11] : memref<18x18x128xf32, #tpu.memory_space<vmem>>, vector<1x18x128xf32>
    tpu.vector_store %arg11[%c0_9, %c0_10, %c0_11], %11 {strides = array<i32>} : memref<18x18x128xf32, #tpu.memory_space<vmem>>, vector<1x18x128xf32>,
    %c17 = arith.constant 17 : index
    %c0_12 = arith.constant 0 : index
    %c0_13 = arith.constant 0 : index
    %13 = vector.load %arg11[%c17, %c0_12, %c0_13] : memref<18x18x128xf32, #tpu.memory_space<vmem>>, vector<1x18x128xf32>
    tpu.vector_store %arg11[%c17, %c0_12, %c0_13], %11 {strides = array<i32>} : memref<18x18x128xf32, #tpu.memory_space<vmem>>, vector<1x18x128xf32>,
    %cst_14 = arith.constant 0.000000e+00 : f32
    %14 = vector.broadcast %cst_14 : f32 to vector<16x1x128xf32>
    %c1 = arith.constant 1 : index
    %c0_15 = arith.constant 0 : index
    %c0_16 = arith.constant 0 : index
    %15 = vector.load %arg11[%c1, %c0_15, %c0_16] : memref<18x18x128xf32, #tpu.memory_space<vmem>>, vector<16x1x128xf32>
    tpu.vector_store %arg11[%c1, %c0_15, %c0_16], %14 {strides = array<i32>} : memref<18x18x128xf32, #tpu.memory_space<vmem>>, vector<16x1x128xf32>,
    %c1_17 = arith.constant 1 : index
    %c17_18 = arith.constant 17 : index
    %c0_19 = arith.constant 0 : index
    %16 = vector.load %arg11[%c1_17, %c17_18, %c0_19] : memref<18x18x128xf32, #tpu.memory_space<vmem>>, vector<16x1x128xf32>
    tpu.vector_store %arg11[%c1_17, %c17_18, %c0_19], %14 {strides = array<i32>} : memref<18x18x128xf32, #tpu.memory_space<vmem>>, vector<16x1x128xf32>,
    %17 = vector.shape_cast %10 : vector<256x128xf32> to vector<16x16x128xf32>
    %c1_20 = arith.constant 1 : index
    %c1_21 = arith.constant 1 : index
    %c0_22 = arith.constant 0 : index
    %18 = vector.load %arg11[%c1_20, %c1_21, %c0_22] : memref<18x18x128xf32, #tpu.memory_space<vmem>>, vector<16x16x128xf32>
    tpu.vector_store %arg11[%c1_20, %c1_21, %c0_22], %17 {strides = array<i32>} : memref<18x18x128xf32, #tpu.memory_space<vmem>>, vector<16x16x128xf32>,
    %c0_23 = arith.constant 0 : index
    %c0_24 = arith.constant 0 : index
    %c0_25 = arith.constant 0 : index
    %19 = vector.load %arg11[%c0_23, %c0_24, %c0_25] : memref<18x18x128xf32, #tpu.memory_space<vmem>>, vector<16x16x128xf32>
    %20 = vector.shape_cast %19 : vector<16x16x128xf32> to vector<256x128xf32>
    %21 = arith.truncf %20 : vector<256x128xf32> to vector<256x128xbf16>
    %c0_26 = arith.constant 0 : index
    %c1_27 = arith.constant 1 : index
    %c0_28 = arith.constant 0 : index
    %22 = vector.load %arg11[%c0_26, %c1_27, %c0_28] : memref<18x18x128xf32, #tpu.memory_space<vmem>>, vector<16x16x128xf32>
    %23 = vector.shape_cast %22 : vector<16x16x128xf32> to vector<256x128xf32>
    %24 = arith.truncf %23 : vector<256x128xf32> to vector<256x128xbf16>
    %c0_29 = arith.constant 0 : index
    %c2 = arith.constant 2 : index
    %c0_30 = arith.constant 0 : index
    %25 = vector.load %arg11[%c0_29, %c2, %c0_30] : memref<18x18x128xf32, #tpu.memory_space<vmem>>, vector<16x16x128xf32>
    %26 = vector.shape_cast %25 : vector<16x16x128xf32> to vector<256x128xf32>
    %27 = arith.truncf %26 : vector<256x128xf32> to vector<256x128xbf16>
    %c1_31 = arith.constant 1 : index
    %c0_32 = arith.constant 0 : index
    %c0_33 = arith.constant 0 : index
    %28 = vector.load %arg11[%c1_31, %c0_32, %c0_33] : memref<18x18x128xf32, #tpu.memory_space<vmem>>, vector<16x16x128xf32>
    %29 = vector.shape_cast %28 : vector<16x16x128xf32> to vector<256x128xf32>
    %30 = arith.truncf %29 : vector<256x128xf32> to vector<256x128xbf16>
    %c1_34 = arith.constant 1 : index
    %c1_35 = arith.constant 1 : index
    %c0_36 = arith.constant 0 : index
    %31 = vector.load %arg11[%c1_34, %c1_35, %c0_36] : memref<18x18x128xf32, #tpu.memory_space<vmem>>, vector<16x16x128xf32>
    %32 = vector.shape_cast %31 : vector<16x16x128xf32> to vector<256x128xf32>
    %33 = arith.truncf %32 : vector<256x128xf32> to vector<256x128xbf16>
    %c1_37 = arith.constant 1 : index
    %c2_38 = arith.constant 2 : index
    %c0_39 = arith.constant 0 : index
    %34 = vector.load %arg11[%c1_37, %c2_38, %c0_39] : memref<18x18x128xf32, #tpu.memory_space<vmem>>, vector<16x16x128xf32>
    %35 = vector.shape_cast %34 : vector<16x16x128xf32> to vector<256x128xf32>
    %36 = arith.truncf %35 : vector<256x128xf32> to vector<256x128xbf16>
    %c2_40 = arith.constant 2 : index
    %c0_41 = arith.constant 0 : index
    %c0_42 = arith.constant 0 : index
    %37 = vector.load %arg11[%c2_40, %c0_41, %c0_42] : memref<18x18x128xf32, #tpu.memory_space<vmem>>, vector<16x16x128xf32>
    %38 = vector.shape_cast %37 : vector<16x16x128xf32> to vector<256x128xf32>
    %39 = arith.truncf %38 : vector<256x128xf32> to vector<256x128xbf16>
    %c2_43 = arith.constant 2 : index
    %c1_44 = arith.constant 1 : index
    %c0_45 = arith.constant 0 : index
    %40 = vector.load %arg11[%c2_43, %c1_44, %c0_45] : memref<18x18x128xf32, #tpu.memory_space<vmem>>, vector<16x16x128xf32>
    %41 = vector.shape_cast %40 : vector<16x16x128xf32> to vector<256x128xf32>
    %42 = arith.truncf %41 : vector<256x128xf32> to vector<256x128xbf16>
    %c2_46 = arith.constant 2 : index
    %c2_47 = arith.constant 2 : index
    %c0_48 = arith.constant 0 : index
    %43 = vector.load %arg11[%c2_46, %c2_47, %c0_48] : memref<18x18x128xf32, #tpu.memory_space<vmem>>, vector<16x16x128xf32>
    %44 = vector.shape_cast %43 : vector<16x16x128xf32> to vector<256x128xf32>
    %45 = arith.truncf %44 : vector<256x128xf32> to vector<256x128xbf16>
    %46 = tpu.concatenate %21, %24, %27, %30, %33, %36, %39, %42, %45 in 1 : vector<256x128xbf16>, vector<256x128xbf16>, vector<256x128xbf16>, vector<256x128xbf16>, vector<256x128xbf16>, vector<256x128xbf16>, vector<256x128xbf16>, vector<256x128xbf16>, vector<256x128xbf16> -> vector<256x1152xbf16>
    %c0_49 = arith.constant 0 : index
    %c0_50 = arith.constant 0 : index
    %47 = vector.load %arg4[%c0_49, %c0_50] : memref<1152x128xbf16, #tpu.memory_space<vmem>>, vector<1152x128xbf16>
    %cst_51 = arith.constant dense<0.000000e+00> : vector<256x128xf32>
    %48 = tpu.matmul %46, %47, %cst_51 {dimension_numbers = #tpu.dot_dimension_numbers<[1], [0], [0], [1], [0, 0, 1, 1], [], []>} : vector<256x1152xbf16>, vector<1152x128xbf16>, vector<256x128xf32> -> vector<256x128xf32>
    %c0_52 = arith.constant 0 : index
    %c0_53 = arith.constant 0 : index
    %49 = vector.load %arg5[%c0_52, %c0_53] : memref<1x128xf32, #tpu.memory_space<vmem>>, vector<1x128xf32>
    %50 = vector.broadcast %49 : vector<1x128xf32> to vector<256x128xf32>
    %51 = arith.addf %48, %50 : vector<256x128xf32>
    %cst_54 = arith.constant 0.000000e+00 : f32
    %52 = vector.broadcast %cst_54 : f32 to vector<256x128xf32>
    %53 = arith.maximumf %51, %52 : vector<256x128xf32>
    %54 = vector.shape_cast %53 : vector<256x128xf32> to vector<16x16x128xf32>
    %c0_55 = arith.constant 0 : index
    %c0_56 = arith.constant 0 : index
    %c0_57 = arith.constant 0 : index
    %55 = vector.load %arg12[%c0_55, %c0_56, %c0_57] : memref<16x16x128xf32, #tpu.memory_space<vmem>>, vector<16x16x128xf32>
    tpu.vector_store %arg12[%c0_55, %c0_56, %c0_57], %54 {strides = array<i32>} : memref<16x16x128xf32, #tpu.memory_space<vmem>>, vector<16x16x128xf32>,
    %cst_58 = arith.constant 0.000000e+00 : f32
    %56 = vector.broadcast %cst_58 : f32 to vector<8x8x128xf32>
    %c0_59 = arith.constant 0 : index
    %c0_60 = arith.constant 0 : index
    %c0_61 = arith.constant 0 : index
    %57 = tpu.strided_load %arg12[%c0_59, %c0_60, %c0_61] {strides = array<i32: 2, 2, 1>} : memref<16x16x128xf32, #tpu.memory_space<vmem>>, vector<8x8x128xf32>
    %58 = arith.addf %56, %57 : vector<8x8x128xf32>
    %c0_62 = arith.constant 0 : index
    %c1_63 = arith.constant 1 : index
    %c0_64 = arith.constant 0 : index
    %59 = tpu.strided_load %arg12[%c0_62, %c1_63, %c0_64] {strides = array<i32: 2, 2, 1>} : memref<16x16x128xf32, #tpu.memory_space<vmem>>, vector<8x8x128xf32>
    %60 = arith.addf %58, %59 : vector<8x8x128xf32>
    %c1_65 = arith.constant 1 : index
    %c0_66 = arith.constant 0 : index
    %c0_67 = arith.constant 0 : index
    %61 = tpu.strided_load %arg12[%c1_65, %c0_66, %c0_67] {strides = array<i32: 2, 2, 1>} : memref<16x16x128xf32, #tpu.memory_space<vmem>>, vector<8x8x128xf32>
    %62 = arith.addf %60, %61 : vector<8x8x128xf32>
    %c1_68 = arith.constant 1 : index
    %c1_69 = arith.constant 1 : index
    %c0_70 = arith.constant 0 : index
    %63 = tpu.strided_load %arg12[%c1_68, %c1_69, %c0_70] {strides = array<i32: 2, 2, 1>} : memref<16x16x128xf32, #tpu.memory_space<vmem>>, vector<8x8x128xf32>
    %64 = arith.addf %62, %63 : vector<8x8x128xf32>
    %cst_71 = arith.constant 2.500000e-01 : f32
    %65 = vector.broadcast %cst_71 : f32 to vector<8x8x128xf32>
    %66 = arith.mulf %64, %65 : vector<8x8x128xf32>
    %67 = vector.shape_cast %66 : vector<8x8x128xf32> to vector<64x128xf32>
    %68 = arith.truncf %67 : vector<64x128xf32> to vector<64x128xbf16>
    %c0_72 = arith.constant 0 : index
    %c0_73 = arith.constant 0 : index
    %69 = vector.load %arg6[%c0_72, %c0_73] : memref<128x128xbf16, #tpu.memory_space<vmem>>, vector<128x128xbf16>
    %cst_74 = arith.constant dense<0.000000e+00> : vector<64x128xf32>
    %70 = tpu.matmul %68, %69, %cst_74 {dimension_numbers = #tpu.dot_dimension_numbers<[1], [0], [0], [1], [0, 0, 1, 1], [], []>} : vector<64x128xbf16>, vector<128x128xbf16>, vector<64x128xf32> -> vector<64x128xf32>
    %c0_75 = arith.constant 0 : index
    %c0_76 = arith.constant 0 : index
    %71 = vector.load %arg7[%c0_75, %c0_76] : memref<1x128xf32, #tpu.memory_space<vmem>>, vector<1x128xf32>
    %72 = vector.broadcast %71 : vector<1x128xf32> to vector<64x128xf32>
    %73 = arith.addf %70, %72 : vector<64x128xf32>
    %cst_77 = arith.constant 0.000000e+00 : f32
    %74 = vector.broadcast %cst_77 : f32 to vector<8x8x128xf32>
    %c0_78 = arith.constant 0 : index
    %c0_79 = arith.constant 0 : index
    %c0_80 = arith.constant 0 : index
    %c0_81 = arith.constant 0 : index
    %75 = tpu.strided_load %arg1[%c0_78, %c0_79, %c0_80, %c0_81] {strides = array<i32: 1, 2, 2, 1>} : memref<1x16x16x128xf32, #tpu.memory_space<vmem>>, vector<1x8x8x128xf32>
    %76 = vector.shape_cast %75 : vector<1x8x8x128xf32> to vector<8x8x128xf32>
    %77 = arith.addf %74, %76 : vector<8x8x128xf32>
    %c0_82 = arith.constant 0 : index
    %c0_83 = arith.constant 0 : index
    %c1_84 = arith.constant 1 : index
    %c0_85 = arith.constant 0 : index
    %78 = tpu.strided_load %arg1[%c0_82, %c0_83, %c1_84, %c0_85] {strides = array<i32: 1, 2, 2, 1>} : memref<1x16x16x128xf32, #tpu.memory_space<vmem>>, vector<1x8x8x128xf32>
    %79 = vector.shape_cast %78 : vector<1x8x8x128xf32> to vector<8x8x128xf32>
    %80 = arith.addf %77, %79 : vector<8x8x128xf32>
    %c0_86 = arith.constant 0 : index
    %c1_87 = arith.constant 1 : index
    %c0_88 = arith.constant 0 : index
    %c0_89 = arith.constant 0 : index
    %81 = tpu.strided_load %arg1[%c0_86, %c1_87, %c0_88, %c0_89] {strides = array<i32: 1, 2, 2, 1>} : memref<1x16x16x128xf32, #tpu.memory_space<vmem>>, vector<1x8x8x128xf32>
    %82 = vector.shape_cast %81 : vector<1x8x8x128xf32> to vector<8x8x128xf32>
    %83 = arith.addf %80, %82 : vector<8x8x128xf32>
    %c0_90 = arith.constant 0 : index
    %c1_91 = arith.constant 1 : index
    %c1_92 = arith.constant 1 : index
    %c0_93 = arith.constant 0 : index
    %84 = tpu.strided_load %arg1[%c0_90, %c1_91, %c1_92, %c0_93] {strides = array<i32: 1, 2, 2, 1>} : memref<1x16x16x128xf32, #tpu.memory_space<vmem>>, vector<1x8x8x128xf32>
    %85 = vector.shape_cast %84 : vector<1x8x8x128xf32> to vector<8x8x128xf32>
    %86 = arith.addf %83, %85 : vector<8x8x128xf32>
    %cst_94 = arith.constant 2.500000e-01 : f32
    %87 = vector.broadcast %cst_94 : f32 to vector<8x8x128xf32>
    %88 = arith.mulf %86, %87 : vector<8x8x128xf32>
    %89 = vector.shape_cast %88 : vector<8x8x128xf32> to vector<64x128xf32>
    %90 = arith.truncf %89 : vector<64x128xf32> to vector<64x128xbf16>
    %c0_95 = arith.constant 0 : index
    %c0_96 = arith.constant 0 : index
    %91 = vector.load %arg8[%c0_95, %c0_96] : memref<128x128xbf16, #tpu.memory_space<vmem>>, vector<128x128xbf16>
    %cst_97 = arith.constant dense<0.000000e+00> : vector<64x128xf32>
    %92 = tpu.matmul %90, %91, %cst_97 {dimension_numbers = #tpu.dot_dimension_numbers<[1], [0], [0], [1], [0, 0, 1, 1], [], []>} : vector<64x128xbf16>, vector<128x128xbf16>, vector<64x128xf32> -> vector<64x128xf32>
    %c0_98 = arith.constant 0 : index
    %c0_99 = arith.constant 0 : index
    %93 = vector.load %arg9[%c0_98, %c0_99] : memref<1x128xf32, #tpu.memory_space<vmem>>, vector<1x128xf32>
    %94 = vector.broadcast %93 : vector<1x128xf32> to vector<64x128xf32>
    %95 = arith.addf %92, %94 : vector<64x128xf32>
    %96 = arith.addf %73, %95 : vector<64x128xf32>
    %cst_100 = arith.constant 0.000000e+00 : f32
    %97 = vector.broadcast %cst_100 : f32 to vector<64x128xf32>
    %98 = arith.maximumf %96, %97 : vector<64x128xf32>
    %99 = vector.shape_cast %98 : vector<64x128xf32> to vector<8x8x128xf32>
    %c0_101 = arith.constant 0 : index
    %c0_102 = arith.constant 0 : index
    %c0_103 = arith.constant 0 : index
    %c0_104 = arith.constant 0 : index
    %100 = vector.load %arg10[%c0_101, %c0_102, %c0_103, %c0_104] : memref<1x8x8x128xf32, #tpu.memory_space<vmem>>, vector<1x8x8x128xf32>
    %101 = vector.shape_cast %100 : vector<1x8x8x128xf32> to vector<8x8x128xf32>
    %102 = vector.shape_cast %99 : vector<8x8x128xf32> to vector<1x8x8x128xf32>
    tpu.vector_store %arg10[%c0_101, %c0_102, %c0_103, %c0_104], %102 {strides = array<i32>} : memref<1x8x8x128xf32, #tpu.memory_space<vmem>>, vector<1x8x8x128xf32>,
    return
  }
  func.func @transform_0(%arg0: i32) -> (i32, i32, i32, i32) {
    %c0_i32 = arith.constant 0 : i32
    %c0_i32_0 = arith.constant 0 : i32
    %c0_i32_1 = arith.constant 0 : i32
    %c0_i32_2 = arith.constant 0 : i32
    return %arg0, %c0_i32, %c0_i32_0, %c0_i32_1 : i32, i32, i32, i32
  }
  func.func @transform_1(%arg0: i32) -> (i32, i32) {
    %c0_i32 = arith.constant 0 : i32
    %c0_i32_0 = arith.constant 0 : i32
    %c0_i32_1 = arith.constant 0 : i32
    return %c0_i32, %c0_i32_0 : i32, i32
  }
  func.func @transform_2(%arg0: i32) -> (i32, i32) {
    %c0_i32 = arith.constant 0 : i32
    %c0_i32_0 = arith.constant 0 : i32
    %c0_i32_1 = arith.constant 0 : i32
    return %c0_i32, %c0_i32_0 : i32, i32
  }
  func.func @transform_3(%arg0: i32) -> (i32, i32) {
    %c0_i32 = arith.constant 0 : i32
    %c0_i32_0 = arith.constant 0 : i32
    %c0_i32_1 = arith.constant 0 : i32
    return %c0_i32, %c0_i32_0 : i32, i32
  }
  func.func @transform_4(%arg0: i32) -> (i32, i32) {
    %c0_i32 = arith.constant 0 : i32
    %c0_i32_0 = arith.constant 0 : i32
    %c0_i32_1 = arith.constant 0 : i32
    return %c0_i32, %c0_i32_0 : i32, i32
  }
  func.func @transform_5(%arg0: i32) -> (i32, i32) {
    %c0_i32 = arith.constant 0 : i32
    %c0_i32_0 = arith.constant 0 : i32
    %c0_i32_1 = arith.constant 0 : i32
    return %c0_i32, %c0_i32_0 : i32, i32
  }
  func.func @transform_6(%arg0: i32) -> (i32, i32) {
    %c0_i32 = arith.constant 0 : i32
    %c0_i32_0 = arith.constant 0 : i32
    %c0_i32_1 = arith.constant 0 : i32
    return %c0_i32, %c0_i32_0 : i32, i32
  }
  func.func @transform_7(%arg0: i32) -> (i32, i32) {
    %c0_i32 = arith.constant 0 : i32
    %c0_i32_0 = arith.constant 0 : i32
    %c0_i32_1 = arith.constant 0 : i32
    return %c0_i32, %c0_i32_0 : i32, i32
  }
  func.func @transform_8(%arg0: i32) -> (i32, i32) {
    %c0_i32 = arith.constant 0 : i32
    %c0_i32_0 = arith.constant 0 : i32
    %c0_i32_1 = arith.constant 0 : i32
    return %c0_i32, %c0_i32_0 : i32, i32
  }
  func.func @transform_9(%arg0: i32) -> (i32, i32, i32, i32) {
    %c0_i32 = arith.constant 0 : i32
    %c0_i32_0 = arith.constant 0 : i32
    %c0_i32_1 = arith.constant 0 : i32
    %c0_i32_2 = arith.constant 0 : i32
    return %arg0, %c0_i32, %c0_i32_0, %c0_i32_1 : i32, i32, i32, i32
  }
}

</mosaic_0001>

<bundles_post_ra>
// kernel: tpu_custom_call.1
= control target key start
LH: loop header
LB: loop body
LE: loop exit
PB: predicated region body
PF: predicated region fallthrough
CT: control target
= control target key end

     0   :  { %s6251_s0 = inlined_call_operand.hbm [shape: f32[2,16,16,128], index: 0, kind: input, shape index: {}]   ;;  %s6252_s1 = inlined_call_operand.hbm [shape: bf16[128,128], index: 1, kind: input, shape index: {}]   ;;  %s6253_s2 = inlined_call_operand.vmem [shape: f32[1,128], index: 2, kind: input, shape index: {}]   ;;  %s6254_s3 = inlined_call_operand.hbm [shape: bf16[1152,128], index: 3, kind: input, shape index: {}]   ;;  %s6255_s4 = inlined_call_operand.vmem [shape: f32[1,128], index: 4, kind: input, shape index: {}]   ;;  %s6256_s5 = inlined_call_operand.hbm [shape: bf16[128,128], index: 5, kind: input, shape index: {}]   ;;  %s6257_s6 = inlined_call_operand.vmem [shape: f32[1,128], index: 6, kind: input, shape index: {}]   ;;  %s6258_s7 = inlined_call_operand.hbm [shape: bf16[128,128], index: 7, kind: input, shape index: {}]   ;;  %s6259_s8 = inlined_call_operand.vmem [shape: f32[1,128], index: 8, kind: input, shape index: {}]   ;;  %s6260_s9 = inlined_call_operand.hbm [shape: f32[2,8,8,128], index: 9, kind: output, shape index: {}]  }
   0x1   :  { %6261 = sst [smem:[#allocation64_spill]] %s6252_s1 }
   0x2   :  { %6262 = sst [smem:[#allocation65_spill]] %s6254_s3 }
   0x3   :  { %6263 = sst [smem:[#allocation66_spill]] %s6256_s5 }
   0x4   :  { %14 = vsyncpa [#allocation5], 0 }
   0x5   :  { %16 = vsyncpa [#allocation5 + $0x1], 0 }
   0x6   :  { %17 = vsyncpa [#allocation8], 0 }
   0x7   :  { %18 = vsyncpa [#allocation11], 0 }
   0x8   :  { %19 = vsyncpa [#allocation6], 0 }
   0x9   :  { %21 = vsyncpa [#allocation6 + $0x1], 0  ;;  %s5142_s30 = smov 0   ;;  %s5144_s10 = smov 0  }
   0xa   :  { %s5146_s11 = smov 0   ;;  %s5148_s12 = smov 0  }
   0xb LB: > { %s5163_s13 = sadd.s32 4294967295, %s5078_s12   ;;  %s4203_s14 = sadd.s32 4294967294, %s5078_s12   ;;  %s5078_s12 = sphi %s5148_s12, %s6403_s12   ;;  %s5074_s11 = sphi %s5146_s11, %s6402_s11   ;;  %s5070_s10 = sphi %s5144_s10, %s6401_s10   ;;  %s5066_s30 = sphi %s5142_s30, %s6400_s30  }
   0xc   : > { %p47_p0 = scmp.ne.s32.totalorder %s5070_s10, %s5066_s30  ;;  %p48_p1 = scmp.eq.s32.totalorder %s5163_s13, 0 }
   0xd   : > { %p239_p2 = scmp.eq.s32.totalorder %s5163_s13, 1  ;;  %p245_p3 = scmp.eq.s32.totalorder %s4203_s14, 1 }
   0xe   : > { %p5172_p4 = por %p48_p1, %p47_p0  ;;  %p4204_p5 = scmp.ge.s32.totalorder %s5078_s12, 1 }
   0xf   : > { %p5177_p6 = por %p245_p3, %p47_p0  ;;  %p252_p7 = scmp.lt.s32.totalorder %s5078_s12, 3 }
  0x10   : > { %s6266_s1 = sld [smem:[#allocation64_spill]]  ;;  %s5080_s21 = smov [#allocation7]  }
  0x11   : > { %p5185_p8 = pnand %p4204_p5, %p252_p7  ;;  %s265_s22 = sshll.u32 %s5080_s21, 4  ;;  %s266_s22 = int_to_ptr.vmem [resolvable:$true] %s265_s22 }
  0x12   : > { %s6269_s5 = sld [smem:[#allocation66_spill]]  ;;  %s5081_s27 = smov 64  }
  0x13   : > { %p4774_p9 = pneg %p5185_p8  ;;  %s5082_s28 = smov 4  }
  0x14   : > { %s5083_s29 = smov [#allocation10]   ;;  %s6270_s3 = sld [smem:[#allocation65_spill]] }
  0x15   : > { %p5193_p10 = pnand %p4774_p9, %p48_p1  ;;  %s299_s14 = sshll.u32 %s5083_s29, 4  ;;  %s300_s14 = int_to_ptr.vmem [resolvable:$true] %s299_s14 }
  0x16   : > { %s263_s19 = sshll.u32 %s6266_s1, 4  ;;  %s5085_s17 = smov [#allocation12]   ;;  %s264_s19 = int_to_ptr.hbm [resolvable:$true] %s263_s19 }
  0x17   : > { %4777 = dma.hbm_to_vmem [thread:$0]  (!%p5193_p10), %s264_s19, 1024, %s266_s22, [#allocation8], %s5081_s27, %s5081_s27, %s5082_s28  }
  0x18   : > { %s297_s26 = sshll.u32 %s6269_s5, 4  ;;  %s314_s19 = sshll.u32 %s6258_s7, 4  ;;  %s298_s26 = int_to_ptr.hbm [resolvable:$true] %s297_s26  ;;  %s315_s19 = int_to_ptr.hbm [resolvable:$true] %s314_s19 }
  0x19   : > { %4783 = dma.hbm_to_vmem [thread:$0]  (!%p5193_p10), %s298_s26, 1024, %s300_s14, [#allocation11], %s5081_s27, %s5081_s27, %s5082_s28  }
  0x1a   : > { %s280_s21 = sshll.u32 %s6270_s3, 4  ;;  %s5084_s22 = smov [#allocation9]   ;;  %s281_s21 = int_to_ptr.hbm [resolvable:$true] %s280_s21 }
  0x1b   : > { %s282_s29 = sshll.u32 %s5084_s22, 4  ;;  %s316_s18 = sshll.u32 %s5085_s17, 4  ;;  %s283_s29 = int_to_ptr.vmem [resolvable:$true] %s282_s29  ;;  %s317_s18 = int_to_ptr.vmem [resolvable:$true] %s316_s18 }
  0x1c   : > { %4780 = dma.hbm_to_vmem [thread:$0]  (!%p5193_p10), %s281_s21, 9216, %s283_s29, [#allocation8], %s5081_s27, %s5081_s27, %s5082_s28  }
  0x1d   : > { %4786 = dma.hbm_to_vmem [thread:$0]  (!%p5193_p10), %s315_s19, 1024, %s317_s18, [#allocation11], %s5081_s27, %s5081_s27, %s5082_s28  }
  0x1e   : > { %s5216_s26 = sadd.s32 1, %s5078_s12   ;;  %s34_s14 = sadd.s32 1, %s5074_s11 }
  0x1f   : > { %s31_s24 = ssub.s32 %s5078_s12, %s5216_s26  ;;  %p41_p12 = scmp.ne.s32.totalorder %s5074_s11, %s5070_s10 }
  0x20   : > { %p32_p13 = scmp.eq.s32.totalorder %s31_s24, 0  ;;  %p42_p0 = scmp.eq.s32.totalorder %s5078_s12, 0 }
  0x21   : > { %p5226_p3 = por %p239_p2, %p41_p12  ;;  %p4799_p5 = scmp.lt.s32.totalorder %s5078_s12, 2 }
  0x22   : > { %s5232_s21 = scalar_select %p32_p13, %s5074_s11, %s34_s14  }
  0x23   : > { %p43_p7 = por %p42_p0, %p41_p12  ;;  %s333_s22 = sand.u32 1, %s5074_s11  }
  0x24   : > { %s4210_s23 = sshll.u32 %s333_s22, 8  ;;  %s4640_s27 = sshll.u32 %s5078_s12, 8 }
  0x25   : > { %s342_s29 = scalar_lea.hbm %s6251_s0, %s4640_s27  ;;  %s337_s17 = scalar_lea.vmem [#allocation4], %s4210_s23 }
  0x26   : > { %s345_s18 = sshll.u32 %s337_s17, 4  ;;  %s343_s24 = sshll.u32 %s342_s29, 4  ;;  %s346_s18 = int_to_ptr.vmem [resolvable:$true] %s345_s18  ;;  %s344_s24 = int_to_ptr.hbm [resolvable:$true] %s343_s24 }
  0x27   : > { %p5239_p2 = pnand %p4799_p5, %p43_p7  ;;  %s334_s14 = scalar_lea.sflag [#allocation5], %s333_s22 }
  0x28   : > { %s4974_s3 = sshra.s32 %s344_s24, 4  ;;  %s4981_s28 = scalar_lea.hbm %s6251_s0, 512  ;;  %s4975_s3 = int_to_ptr.hbm [resolvable:$true] %s4974_s3 }
  0x29   : > { %s4976_s5 = scalar_lea.hbm %s4975_s3, 256  ;;  %p4978_p10 = pneg %p5239_p2 }
  0x2a   : > { %p4977_p9 = scmp.ne.s32.totalorder %s4975_s3, %s4976_s5  ;;  %p4982_p0 = scmp.lt.s32.totalorder %s4975_s3, %s6251_s0 }
  0x2b   : > { %p4983_p5 = scmp.lt.s32.totalorder %s4981_s28, %s4976_s5 }
  0x2c   : > { %p4979_p12 = pnand %p4978_p10, %p4977_p9 }
  0x2d   : > { %p4984_p7 = por %p4983_p5, %p4982_p0 }
  0x2e   : > { %p4980_p13 = pneg %p4979_p12 }
  0x30   : > { %p4985_p11 = pnand %p4984_p7, %p4980_p13 }
  0x32   : > { %4988 = shalt.err (!%p4985_p11)
}
  0x33   : > { %s5086_s22 = smov 128   ;;  %s5087_s17 = smov 8  }
  0x34   : > { %4790 = dma.hbm_to_vmem [thread:$0]  (!%p5239_p2), %s344_s24, 4096, %s346_s18, %s334_s14, %s5086_s22, %s5086_s22, %s5087_s17  }
  0x35   : > { %357 = sbr.rel (%p5185_p8) target bundleno = 1300 (0x514), region = 56 }
  0x3a   : > { %s5256_s27 = sand.u32 1, %s5070_s10  }
  0x3b   : > { %s4214_s23 = sshll.u32 %s5256_s27, 8  ;;  %s360_s3 = scalar_lea.sflag [#allocation5], %s5256_s27 }
  0x3c   : > { %s5260_s5 = scalar_lea.vmem [#allocation4], %s4214_s23 }
  0x3d   : > { %5049 = dma.done.wait (%p5172_p4), %s360_s3, 4096  }
  0x3e   : > { %5051 = vsyncadd (%p5172_p4), %s360_s3, 4294963200 }
  0x3f   : > { %5053 = dma.done.wait (%p48_p1), [#allocation8], 10240  }
  0x40   : > { %5055 = vsyncadd (%p48_p1), [#allocation8], 4294957056 }
  0x41   : > { %5057 = dma.done.wait (%p48_p1), [#allocation11], 2048  }
  0x42   : > { %5059 = vsyncadd (%p48_p1), [#allocation11], 4294965248  ;;  %v4648_v0 = vld [vmem:[#allocation7 + $0x38] sm:$0xff]  ;;  %v4647_v1 = vld [vmem:[#allocation7 + $0x30] sm:$0xff]  ;;  %v5088_v53 = vmov 0.0   ;;  %s4219_s17 = sshll.u32 %s5256_s27, 6 }
  0x43   : > { %535 = vmatpush.bf16.msra.mxu0 %v4648_v0  ;;  %4738 = vmatpush.bf16.msra.mxu2 %v4648_v0  ;;  %v4646_v2 = vld [vmem:[#allocation7 + $0x28] sm:$0xff]  ;;  %v4645_v3 = vld [vmem:[#allocation7 + $0x20] sm:$0xff]  ;;  %v4644_v4 = vld [vmem:[#allocation7 + $0x18] sm:$0xff]  ;;  %656 = vst [vmem:[#allocation2] sm:$0xff] %v5088_v53  ;;  %s6193_s23 = scalar_lea.vmem [#allocation13], %s4219_s17  ;;  %s4737_s3 = sshll.u32 %s5163_s13, 6 }
  0x44   : > { %v4643_v5 = vld [vmem:[#allocation7 + $0x10] sm:$0xff]  ;;  %v4642_v6 = vld [vmem:[#allocation7 + $0x8] sm:$0xff]  ;;  %v4641_v7 = vld [vmem:[#allocation7] sm:$0xff]  ;;  %657 = vst [vmem:[#allocation2 + $0x8] sm:$0xff] %v5088_v53  ;;  %s4058_s15 = scalar_lea.hbm %s6260_s9, %s4737_s3  ;;  %s4059_s20 = sshll.u32 %s6193_s23, 4  ;;  %s4060_s20 = int_to_ptr.vmem [resolvable:$true] %s4059_s20 }
  0x45   : > { %v419_v8 = vld [vmem:[%s5260_s5] sm:$0xff]  ;;  %v420_v9 = vld [vmem:[%s5260_s5 + $0x8] sm:$0xff]  ;;  %v421_v14 = vld [vmem:[%s5260_s5 + $0x10] sm:$0xff]  ;;  %658 = vst [vmem:[#allocation2 + $0x10] sm:$0x3] %v5088_v53  ;;  %s4061_s18 = sshll.u32 %s4058_s15, 4  ;;  %s4062_s18 = int_to_ptr.hbm [resolvable:$true] %s4061_s18 }
  0x46   : > { %v451_v10 = vpack.c.bf16 %v420_v9, %v419_v8  ;;  %v439_v11 = vld [vmem:[%s5260_s5 + $0xa0] sm:$0xff]  ;;  %v440_v12 = vld [vmem:[%s5260_s5 + $0xa8] sm:$0xff]  ;;  %v422_v15 = vld [vmem:[%s5260_s5 + $0x18] sm:$0xff]  ;;  %660 = vst [vmem:[#allocation2 + $0x198] sm:$0xff] %v5088_v53  ;;  %v5089_v9 = vmov 0.0|0.0   ;;  %s4047_s13 = scalar_lea.sflag [#allocation6], %s5256_s27 }
  0x47   : > { %536 = vmatpush.bf16.msra.mxu0 %v4647_v1  ;;  %4739 = vmatpush.bf16.msra.mxu2 %v4647_v1  ;;  %v461_v13 = vpack.c.bf16 %v440_v12, %v439_v11  ;;  %v452_v16 = vpack.c.bf16 %v422_v15, %v421_v14  ;;  %v441_v17 = vld [vmem:[%s5260_s5 + $0xb0] sm:$0xff]  ;;  %v442_v18 = vld [vmem:[%s5260_s5 + $0xb8] sm:$0xff]  ;;  %v423_v20 = vld [vmem:[%s5260_s5 + $0x20] sm:$0xff]  ;;  %661 = vst [vmem:[#allocation2 + $0x1a0] sm:$0xff] %v5088_v53  ;;  %s5018_s24 = sshra.s32 %s4062_s18, 4  ;;  %s5024_s29 = scalar_lea.hbm %s6260_s9, 128  ;;  %s5019_s24 = int_to_ptr.hbm [resolvable:$true] %s5018_s24 }
  0x48   : > { %v462_v19 = vpack.c.bf16 %v442_v18, %v441_v17  ;;  %v424_v21 = vld [vmem:[%s5260_s5 + $0x28] sm:$0xff]  ;;  %v443_v23 = vld [vmem:[%s5260_s5 + $0xc0] sm:$0xff]  ;;  %v425_v26 = vld [vmem:[%s5260_s5 + $0x30] sm:$0xff]  ;;  %662 = vst [vmem:[#allocation2 + $0x1a8] sm:$0x3] %v5088_v53  ;;  %s5020_s14 = scalar_lea.hbm %s5019_s24, 64  ;;  %p5025_p11 = scmp.lt.s32.totalorder %s5019_s24, %s6260_s9 }
  0x49   : > { %v453_v22 = vpack.c.bf16 %v424_v21, %v423_v20  ;;  %v444_v24 = vld [vmem:[%s5260_s5 + $0xc8] sm:$0xff]  ;;  %v426_v27 = vld [vmem:[%s5260_s5 + $0x38] sm:$0xff]  ;;  %v445_v29 = vld [vmem:[%s5260_s5 + $0xd0] sm:$0xff]  ;;  %664 = vst [vmem:[#allocation2 + $0x18] sm:$0x1] %v5088_v53  ;;  %p5021_p1 = scmp.ne.s32.totalorder %s5019_s24, %s5020_s14  ;;  %p5026_p2 = scmp.lt.s32.totalorder %s5024_s29, %s5020_s14 }
  0x4a   : > { %v463_v25 = vpack.c.bf16 %v444_v24, %v443_v23  ;;  %v454_v28 = vpack.c.bf16 %v426_v27, %v425_v26  ;;  %v446_v30 = vld [vmem:[%s5260_s5 + $0xd8] sm:$0xff]  ;;  %v427_v32 = vld [vmem:[%s5260_s5 + $0x40] sm:$0xff]  ;;  %v428_v33 = vld [vmem:[%s5260_s5 + $0x48] sm:$0xff]  ;;  %665 = vst [vmem:[#allocation2 + $0x30] sm:$0x1] %v5088_v53 }
  0x4b   : > { %537 = vmatpush.bf16.msra.mxu0 %v4646_v2  ;;  %4740 = vmatpush.bf16.msra.mxu2 %v4646_v2  ;;  %v464_v31 = vpack.c.bf16 %v446_v30, %v445_v29  ;;  %v455_v34 = vpack.c.bf16 %v428_v33, %v427_v32  ;;  %v447_v35 = vld [vmem:[%s5260_s5 + $0xe0] sm:$0xff]  ;;  %v448_v36 = vld [vmem:[%s5260_s5 + $0xe8] sm:$0xff]  ;;  %v4664_v38 = vld [vmem:[#allocation9 + $0x78] sm:$0xff]  ;;  %666 = vst [vmem:[#allocation2 + $0x48] sm:$0x1] %v5088_v53  ;;  %p5022_p4 = pnand %p5021_p1, %p5226_p3  ;;  %p5027_p9 = por %p5026_p2, %p5025_p11 }
  0x4c   : > { %v465_v37 = vpack.c.bf16 %v448_v36, %v447_v35  ;;  %v4656_v39 = vld [vmem:[#allocation9 + $0x38] sm:$0xff]  ;;  %v4663_v40 = vld [vmem:[#allocation9 + $0x70] sm:$0xff]  ;;  %v4662_v42 = vld [vmem:[#allocation9 + $0x68] sm:$0xff]  ;;  %667 = vst [vmem:[#allocation2 + $0x60] sm:$0x1] %v5088_v53 }
  0x4d   : > { %2749 = vmatpush.bf16.msra.mxu1 %v4656_v39  ;;  %v4655_v41 = vld [vmem:[#allocation9 + $0x30] sm:$0xff]  ;;  %4746 = vmatpush.bf16.msra.mxu3 %v4656_v39  ;;  %v430_v44 = vld [vmem:[%s5260_s5 + $0x58] sm:$0xff]  ;;  %v4661_v45 = vld [vmem:[#allocation9 + $0x60] sm:$0xff]  ;;  %668 = vst [vmem:[#allocation2 + $0x78] sm:$0x1] %v5088_v53  ;;  %p5023_p8 = pneg %p5022_p4 }
  0x4e   : > { %v429_v43 = vld [vmem:[%s5260_s5 + $0x50] sm:$0xff]  ;;  %v450_v48 = vld [vmem:[%s5260_s5 + $0xf8] sm:$0xff]  ;;  %v4654_v50 = vld [vmem:[#allocation9 + $0x28] sm:$0xff]  ;;  %669 = vst [vmem:[#allocation2 + $0x90] sm:$0x1] %v5088_v53 }
  0x4f   : > { %538 = vmatpush.bf16.msra.mxu0 %v4645_v3  ;;  %4741 = vmatpush.bf16.msra.mxu2 %v4645_v3  ;;  %v456_v46 = vpack.c.bf16 %v430_v44, %v429_v43  ;;  %v449_v47 = vld [vmem:[%s5260_s5 + $0xf0] sm:$0xff]  ;;  %v4660_v51 = vld [vmem:[#allocation9 + $0x58] sm:$0xff]  ;;  %v4653_v52 = vld [vmem:[#allocation9 + $0x20] sm:$0xff]  ;;  %670 = vst [vmem:[#allocation2 + $0xa8] sm:$0x1] %v5088_v53  ;;  %p5028_p10 = pnand %p5027_p9, %p5023_p8 }
  0x50   : > { %v466_v49 = vpack.c.bf16 %v450_v48, %v449_v47  ;;  %v4659_v54 = vld [vmem:[#allocation9 + $0x50] sm:$0xff]  ;;  %v4652_v55 = vld [vmem:[#allocation9 + $0x18] sm:$0xff]  ;;  %v4658_v56 = vld [vmem:[#allocation9 + $0x48] sm:$0xff]  ;;  %671 = vst [vmem:[#allocation2 + $0xc0] sm:$0x1] %v5088_v53 }
  0x51   : > { %2750 = vmatpush.bf16.msra.mxu1 %v4655_v41  ;;  %4747 = vmatpush.bf16.msra.mxu3 %v4655_v41  ;;  %v431_v57 = vld [vmem:[%s5260_s5 + $0x60] sm:$0xff]  ;;  %v432_v58 = vld [vmem:[%s5260_s5 + $0x68] sm:$0xff]  ;;  %v792_v59 = vld [vmem:[#allocation2 + $0x1] sm:$0xff]  ;;  %672 = vst [vmem:[#allocation2 + $0xd8] sm:$0x1] %v5088_v53 }
  0x52   : > { %v4651_v60 = vld [vmem:[#allocation9 + $0x10] sm:$0xff]  ;;  %v4657_v61 = vld [vmem:[#allocation9 + $0x40] sm:$0xff]  ;;  %v824_v63 = vpack.c.bf16 %v792_v59, %v792_v59  ;;  %v457_v0 = vpack.c.bf16 %v432_v58, %v431_v57  ;;  %673 = vst [vmem:[#allocation2 + $0xf0] sm:$0x1] %v5088_v53  ;;  %v4678_v12 = vld [vmem:[#allocation9 + $0xe8] sm:$0xff] }
  0x53   : > { %539 = vmatpush.bf16.msra.mxu0 %v4644_v4  ;;  %4742 = vmatpush.bf16.msra.mxu2 %v4644_v4  ;;  %v793_v62 = vld [vmem:[#allocation2 + $0x9] sm:$0xff]  ;;  %v4650_v4 = vld [vmem:[#allocation9 + $0x8] sm:$0xff]  ;;  %674 = vst [vmem:[#allocation2 + $0x108] sm:$0x1] %v5088_v53  ;;  %v4679_v8 = vld [vmem:[#allocation9 + $0xf0] sm:$0xff] }
  0x54   : > { %v825_v1 = vpack.c.bf16 %v793_v62, %v793_v62  ;;  %v1433_v2 = vunpack.c.l.b16 %v824_v63  ;;  %675 = vst [vmem:[#allocation2 + $0x120] sm:$0x1] %v5088_v53  ;;  %v434_v14 = vld [vmem:[%s5260_s5 + $0x78] sm:$0xff]  ;;  %v4677_v15 = vld [vmem:[#allocation9 + $0xe0] sm:$0xff]  ;;  %v4675_v18 = vld [vmem:[#allocation9 + $0xd0] sm:$0xff] }
  0x55   : > { %2751 = vmatpush.bf16.msra.mxu1 %v4654_v50  ;;  %4748 = vmatpush.bf16.msra.mxu3 %v4654_v50  ;;  %676 = vst [vmem:[#allocation2 + $0x138] sm:$0x1] %v5088_v53  ;;  %v4676_v17 = vld [vmem:[#allocation9 + $0xd8] sm:$0xff]  ;;  %v435_v20 = vld [vmem:[%s5260_s5 + $0x80] sm:$0xff]  ;;  %v436_v21 = vld [vmem:[%s5260_s5 + $0x88] sm:$0xff] }
  0x56   : > { %v1434_v3 = vunpack.c.l.b16 %v825_v1  ;;  %677 = vst [vmem:[#allocation2 + $0x150] sm:$0x1] %v5088_v53  ;;  %v4673_v23 = vld [vmem:[#allocation9 + $0xc0] sm:$0xff]  ;;  %v459_v24 = vpack.c.bf16 %v436_v21, %v435_v20  ;;  %v437_v33 = vld [vmem:[%s5260_s5 + $0x90] sm:$0xff] }
  0x57   : > { %540 = vmatpush.bf16.msra.mxu0 %v4643_v5  ;;  %4743 = vmatpush.bf16.msra.mxu2 %v4643_v5  ;;  %v4680_v5 = vld [vmem:[#allocation9 + $0xf8] sm:$0xff]  ;;  %678 = vst [vmem:[#allocation2 + $0x168] sm:$0x1] %v5088_v53 }
  0x58   : > { %679 = vst [vmem:[#allocation2 + $0x180] sm:$0x1] %v5088_v53 }
  0x59   : > { %2752 = vmatpush.bf16.msra.mxu1 %v4653_v52  ;;  %4749 = vmatpush.bf16.msra.mxu3 %v4653_v52  ;;  %680 = vst [vmem:[#allocation2 + $0x29] sm:$0x1] %v5088_v53 }
  0x5a   : > { %681 = vst [vmem:[#allocation2 + $0x41] sm:$0x1] %v5088_v53 }
  0x5b   : > { %541 = vmatpush.bf16.msra.mxu0 %v4642_v6  ;;  %4744 = vmatpush.bf16.msra.mxu2 %v4642_v6  ;;  %v1465_v6 = vpack.c.b16 %v1434_v3, %v1433_v2  ;;  %682 = vst [vmem:[#allocation2 + $0x59] sm:$0x1] %v5088_v53 }
  0x5c   : > { %683 = vst [vmem:[#allocation2 + $0x71] sm:$0x1] %v5088_v53 }
  0x5d   : > { %2753 = vmatpush.bf16.msra.mxu1 %v4652_v55  ;;  %4750 = vmatpush.bf16.msra.mxu3 %v4652_v55  ;;  %684 = vst [vmem:[#allocation2 + $0x89] sm:$0x1] %v5088_v53 }
  0x5e   : > { %685 = vst [vmem:[#allocation2 + $0xa1] sm:$0x1] %v5088_v53 }
  0x5f   : > { %542 = vmatpush.bf16.msra.mxu0 %v4641_v7  ;;  %4745 = vmatpush.bf16.msra.mxu2 %v4641_v7  ;;  %v4649_v7 = vld [vmem:[#allocation9] sm:$0xff]  ;;  %686 = vst [vmem:[#allocation2 + $0xb9] sm:$0x1] %v5088_v53 }
  0x60   : > { %687 = vst [vmem:[#allocation2 + $0xd1] sm:$0x1] %v5088_v53 }
  0x61   : > { %2754 = vmatpush.bf16.msra.mxu1 %v4651_v60  ;;  %4751 = vmatpush.bf16.msra.mxu3 %v4651_v60  ;;  %688 = vst [vmem:[#allocation2 + $0xe9] sm:$0x1] %v5088_v53 }
  0x62   : > { %543 = vmatmul.bf16.vlgmr.msra.gmra.mxu0 %v451_v10  ;;  %593 = vmatmul.bf16.vlgmr.msra.gmra.mxu2 %v461_v13  ;;  %v1337_v10 = vunpack.c.l.b16 %v5089_v9  ;;  %v433_v13 = vld [vmem:[%s5260_s5 + $0x70] sm:$0xff]  ;;  %689 = vst [vmem:[#allocation2 + $0x101] sm:$0x1] %v5088_v53 }
  0x63   : > { %2838 = vmatpush.bf16.msrb.mxu2 %v4664_v38  ;;  %3016 = vmatpush.bf16.msrb.mxu0 %v4680_v5  ;;  %690 = vst [vmem:[#allocation2 + $0x119] sm:$0x1] %v5088_v53 }
  0x64   : > { %v1369_v11 = vpack.c.b16 %v1337_v10, %v1337_v10  ;;  %691 = vst [vmem:[#allocation2 + $0x131] sm:$0x1] %v5088_v53 }
  0x65   : > { %2755 = vmatpush.bf16.msra.mxu1 %v4650_v4  ;;  %4752 = vmatpush.bf16.msra.mxu3 %v4650_v4  ;;  %692 = vst [vmem:[#allocation2 + $0x149] sm:$0x1] %v5088_v53 }
  0x66   : > { %693 = vst [vmem:[#allocation2 + $0x161] sm:$0x1] %v5088_v53 }
  0x67   : > { %2839 = vmatpush.bf16.msrb.mxu2 %v4663_v40  ;;  %3017 = vmatpush.bf16.msrb.mxu0 %v4679_v8  ;;  %694 = vst [vmem:[#allocation2 + $0x179] sm:$0x1] %v5088_v53 }
  0x68   : > { %695 = vst [vmem:[#allocation2 + $0x191] sm:$0x1] %v5088_v53 }
  0x69   : > { %2756 = vmatpush.bf16.msra.mxu1 %v4649_v7  ;;  %4753 = vmatpush.bf16.msra.mxu3 %v4649_v7 }
  0x6b   : > { %2840 = vmatpush.bf16.msrb.mxu2 %v4662_v42  ;;  %3018 = vmatpush.bf16.msrb.mxu0 %v4678_v12 }
  0x6c   : > { %2757 = vmatmul.bf16.vlgmr.msra.gmra.mxu1 %v1369_v11 }
  0x6f   : > { %2841 = vmatpush.bf16.msrb.mxu2 %v4661_v45  ;;  %3019 = vmatpush.bf16.msrb.mxu0 %v4677_v15 }
  0x72   : > { %548 = vmatmul.bf16.gmra.mxu0 %v452_v16  ;;  %598 = vmatmul.bf16.gmra.mxu2 %v462_v19  ;;  %v458_v16 = vpack.c.bf16 %v434_v14, %v433_v13  ;;  %v4674_v19 = vld [vmem:[#allocation9 + $0xc8] sm:$0xff] }
  0x73   : > { %2842 = vmatpush.bf16.msrb.mxu2 %v4660_v51  ;;  %3020 = vmatpush.bf16.msrb.mxu0 %v4676_v17 }
  0x77   : > { %2843 = vmatpush.bf16.msrb.mxu2 %v4659_v54  ;;  %3021 = vmatpush.bf16.msrb.mxu0 %v4675_v18 }
  0x7b   : > { %2844 = vmatpush.bf16.msrb.mxu2 %v4658_v56  ;;  %3022 = vmatpush.bf16.msrb.mxu0 %v4674_v19 }
  0x7f   : > { %2845 = vmatpush.bf16.msrb.mxu2 %v4657_v61  ;;  %3023 = vmatpush.bf16.msrb.mxu0 %v4673_v23 }
  0x82   : > { %553 = vmatmul.bf16.gmra.mxu0 %v453_v22  ;;  %603 = vmatmul.bf16.gmra.mxu2 %v463_v25  ;;  %v5345_v22 = vld [vmem:[%s6253_s2] ss:$0 sm:$0xff] }
  0x92   : > { %558 = vmatmul.bf16.gmra.mxu0 %v454_v28  ;;  %608 = vmatmul.bf16.gmra.mxu2 %v464_v31 }
  0xa2   : > { %563 = vmatmul.bf16.gmra.mxu0 %v455_v34  ;;  %613 = vmatmul.bf16.gmra.mxu2 %v465_v37  ;;  %v438_v34 = vld [vmem:[%s5260_s5 + $0x98] sm:$0xff] }
  0xa3   : > { %v460_v38 = vpack.c.bf16 %v438_v34, %v437_v33 }
  0xb2   : > { %568 = vmatmul.bf16.gmra.mxu0 %v456_v46  ;;  %618 = vmatmul.bf16.gmra.mxu2 %v466_v49 }
  0xc2   : > { %573 = vmatmul.bf16.gmra.mxu0 %v457_v0  ;;  %2846 = vmatmul.bf16.vlgmr.msrb.gmra.mxu2 %v1465_v6 }
  0xd2   : > { %578 = vmatmul.bf16.gmra.mxu0 %v458_v16 }
  0xdf   : > { %v544_v25 = vpop.f32.mrf.mxu0 }
  0xe0   : > { %v545_v26 = vadd.f32 %v5345_v22, %v544_v25 }
  0xe2   : > { %v624_v27 = vmax.f32 %v545_v26, 0.0  ;;  %583 = vmatmul.bf16.gmra.mxu0 %v459_v24 }
  0xe4   : > { %696 = vst [vmem:[#allocation2 + $0x19] sm:$0xff] %v624_v27  ;;  %v826_v32 = vpack.c.bf16 %v624_v27, %v624_v27 }
  0xe5   : > { %v594_v28 = vpop.f32.mrf.mxu2 }
  0xe6   : > { %v595_v36 = vadd.f32 %v5345_v22, %v594_v28  ;;  %v1435_v39 = vunpack.c.l.b16 %v826_v32 }
  0xe7   : > { %v546_v29 = vpop.f32.mrf.mxu0 }
  0xe8   : > { %v547_v30 = vadd.f32 %v5345_v22, %v546_v29  ;;  %v5352_v41 = vmax.f32 %v595_v36, 0.0 }
  0xea   : > { %v625_v31 = vmax.f32 %v547_v30, 0.0  ;;  %716 = vst [vmem:[#allocation2 + $0x109] sm:$0xff] %v5352_v41 }
  0xeb   : > { %v730_v43 = vld [vmem:[#allocation2 + $0x18] sm:$0xff] }
  0xec   : > { %697 = vst [vmem:[#allocation2 + $0x21] sm:$0xff] %v625_v31  ;;  %v827_v35 = vpack.c.bf16 %v625_v31, %v625_v31  ;;  %v762_v47 = vpack.c.bf16 %v730_v43, %v730_v43 }
  0xed   : > { %v596_v37 = vpop.f32.mrf.mxu2 }
  0xee   : > { %v1436_v40 = vunpack.c.l.b16 %v827_v35  ;;  %v597_v50 = vadd.f32 %v5345_v22, %v596_v37  ;;  %v1339_v52 = vunpack.c.l.b16 %v762_v47 }
  0xef   : > { %v549_v42 = vpop.f32.mrf.mxu0 }
  0xf0   : > { %v550_v44 = vadd.f32 %v5345_v22, %v549_v42  ;;  %v1466_v45 = vpack.c.b16 %v1436_v40, %v1435_v39  ;;  %v5357_v54 = vmax.f32 %v597_v50, 0.0 }
  0xf2   : > { %v626_v46 = vmax.f32 %v550_v44, 0.0  ;;  %588 = vmatmul.bf16.gmra.mxu0 %v460_v38  ;;  %2851 = vmatmul.bf16.gmra.mxu2 %v1466_v45  ;;  %717 = vst [vmem:[#allocation2 + $0x111] sm:$0xff] %v5357_v54 }
  0xf3   : > { %v731_v48 = vld [vmem:[#allocation2 + $0x20] sm:$0xff] }
  0xf4   : > { %698 = vst [vmem:[#allocation2 + $0x31] sm:$0xff] %v626_v46  ;;  %v763_v49 = vpack.c.bf16 %v731_v48, %v731_v48  ;;  %v828_v59 = vpack.c.bf16 %v626_v46, %v626_v46 }
  0xf5   : > { %v599_v51 = vpop.f32.mrf.mxu2 }
  0xf6   : > { %v1340_v53 = vunpack.c.l.b16 %v763_v49  ;;  %v600_v61 = vadd.f32 %v5345_v22, %v599_v51  ;;  %v1437_v63 = vunpack.c.l.b16 %v828_v59 }
  0xf7   : > { %v551_v55 = vpop.f32.mrf.mxu0 }
  0xf8   : > { %v552_v56 = vadd.f32 %v5345_v22, %v551_v55  ;;  %v1370_v57 = vpack.c.b16 %v1340_v53, %v1339_v52  ;;  %v5362_v1 = vmax.f32 %v600_v61, 0.0 }
  0xfa   : > { %v627_v58 = vmax.f32 %v552_v56, 0.0  ;;  %2762 = vmatmul.bf16.gmra.mxu1 %v1370_v57  ;;  %718 = vst [vmem:[#allocation2 + $0x121] sm:$0xff] %v5362_v1 }
  0xfb   : > { %v732_v3 = vld [vmem:[#allocation2 + $0x30] sm:$0xff] }
  0xfc   : > { %699 = vst [vmem:[#allocation2 + $0x39] sm:$0xff] %v627_v58  ;;  %v829_v60 = vpack.c.bf16 %v627_v58, %v627_v58  ;;  %v764_v7 = vpack.c.bf16 %v732_v3, %v732_v3 }
  0xfd   : > { %v601_v62 = vpop.f32.mrf.mxu2 }
  0xfe   : > { %v1438_v0 = vunpack.c.l.b16 %v829_v60  ;;  %v602_v10 = vadd.f32 %v5345_v22, %v601_v62  ;;  %v1341_v12 = vunpack.c.l.b16 %v764_v7 }
  0xff   : > { %v554_v2 = vpop.f32.mrf.mxu0 }
 0x100   : > { %v555_v4 = vadd.f32 %v5345_v22, %v554_v2  ;;  %v5365_v5 = vpack.c.b16 %v1438_v0, %v1437_v63  ;;  %v5370_v14 = vmax.f32 %v602_v10, 0.0 }
 0x102   : > { %v628_v6 = vmax.f32 %v555_v4, 0.0  ;;  %3024 = vmatmul.bf16.vlgmr.msrb.gmra.mxu0 %v1370_v57  ;;  %2856 = vmatmul.bf16.gmra.mxu2 %v5365_v5  ;;  %719 = vst [vmem:[#allocation2 + $0x129] sm:$0xff] %v5370_v14 }
 0x103   : > { %v733_v8 = vld [vmem:[#allocation2 + $0x38] sm:$0xff] }
 0x104   : > { %700 = vst [vmem:[#allocation2 + $0x49] sm:$0xff] %v628_v6  ;;  %v765_v9 = vpack.c.bf16 %v733_v8, %v733_v8  ;;  %v830_v19 = vpack.c.bf16 %v628_v6, %v628_v6 }
 0x105   : > { %v604_v11 = vpop.f32.mrf.mxu2 }
 0x106   : > { %v1342_v13 = vunpack.c.l.b16 %v765_v9  ;;  %v605_v21 = vadd.f32 %v5345_v22, %v604_v11  ;;  %v1439_v24 = vunpack.c.l.b16 %v830_v19 }
 0x107   : > { %v556_v15 = vpop.f32.mrf.mxu0 }
 0x108   : > { %v557_v16 = vadd.f32 %v5345_v22, %v556_v15  ;;  %v1371_v17 = vpack.c.b16 %v1342_v13, %v1341_v12  ;;  %v5375_v26 = vmax.f32 %v605_v21, 0.0 }
 0x10a   : > { %v629_v18 = vmax.f32 %v557_v16, 0.0  ;;  %2767 = vmatmul.bf16.gmra.mxu1 %v1371_v17  ;;  %720 = vst [vmem:[#allocation2 + $0x139] sm:$0xff] %v5375_v26 }
 0x10b   : > { %v734_v28 = vld [vmem:[#allocation2 + $0x48] sm:$0xff] }
 0x10c   : > { %701 = vst [vmem:[#allocation2 + $0x51] sm:$0xff] %v629_v18  ;;  %v831_v20 = vpack.c.bf16 %v629_v18, %v629_v18  ;;  %v766_v32 = vpack.c.bf16 %v734_v28, %v734_v28 }
 0x10d   : > { %v606_v23 = vpop.f32.mrf.mxu2 }
 0x10e   : > { %v1440_v25 = vunpack.c.l.b16 %v831_v20  ;;  %v607_v35 = vadd.f32 %v5345_v22, %v606_v23  ;;  %v1343_v37 = vunpack.c.l.b16 %v766_v32 }
 0x10f   : > { %v559_v27 = vpop.f32.mrf.mxu0 }
 0x110   : > { %v560_v29 = vadd.f32 %v5345_v22, %v559_v27  ;;  %v5378_v30 = vpack.c.b16 %v1440_v25, %v1439_v24  ;;  %v5383_v39 = vmax.f32 %v607_v35, 0.0  ;;  %v4688_v25 = vld [vmem:[#allocation9 + $0x138] sm:$0xff] }
 0x111   : > { %3105 = vmatpush.bf16.msrb.mxu1 %v4688_v25 }
 0x112   : > { %v630_v31 = vmax.f32 %v560_v29, 0.0  ;;  %3029 = vmatmul.bf16.gmra.mxu0 %v1371_v17  ;;  %2861 = vmatmul.bf16.gmra.mxu2 %v5378_v30  ;;  %721 = vst [vmem:[#allocation2 + $0x141] sm:$0xff] %v5383_v39 }
 0x113   : > { %v735_v33 = vld [vmem:[#allocation2 + $0x50] sm:$0xff] }
 0x114   : > { %702 = vst [vmem:[#allocation2 + $0x61] sm:$0xff] %v630_v31  ;;  %v767_v34 = vpack.c.bf16 %v735_v33, %v735_v33  ;;  %v832_v45 = vpack.c.bf16 %v630_v31, %v630_v31 }
 0x115   : > { %v609_v36 = vpop.f32.mrf.mxu2 }
 0x116   : > { %v1344_v38 = vunpack.c.l.b16 %v767_v34  ;;  %v610_v47 = vadd.f32 %v5345_v22, %v609_v36  ;;  %v1441_v49 = vunpack.c.l.b16 %v832_v45 }
 0x117   : > { %v561_v40 = vpop.f32.mrf.mxu0 }
 0x118   : > { %v562_v42 = vadd.f32 %v5345_v22, %v561_v40  ;;  %v1372_v43 = vpack.c.b16 %v1344_v38, %v1343_v37  ;;  %v5388_v51 = vmax.f32 %v610_v47, 0.0 }
 0x11a   : > { %v631_v44 = vmax.f32 %v562_v42, 0.0  ;;  %2772 = vmatmul.bf16.gmra.mxu1 %v1372_v43  ;;  %722 = vst [vmem:[#allocation2 + $0x151] sm:$0xff] %v5388_v51 }
 0x11b   : > { %v736_v53 = vld [vmem:[#allocation2 + $0x60] sm:$0xff] }
 0x11c   : > { %703 = vst [vmem:[#allocation2 + $0x69] sm:$0xff] %v631_v44  ;;  %v833_v46 = vpack.c.bf16 %v631_v44, %v631_v44  ;;  %v768_v58 = vpack.c.bf16 %v736_v53, %v736_v53 }
 0x11d   : > { %v611_v48 = vpop.f32.mrf.mxu2 }
 0x11e   : > { %v1442_v50 = vunpack.c.l.b16 %v833_v46  ;;  %v612_v61 = vadd.f32 %v5345_v22, %v611_v48  ;;  %v1345_v63 = vunpack.c.l.b16 %v768_v58 }
 0x11f   : > { %v564_v52 = vpop.f32.mrf.mxu0 }
 0x120   : > { %v565_v55 = vadd.f32 %v5345_v22, %v564_v52  ;;  %v5391_v56 = vpack.c.b16 %v1442_v50, %v1441_v49  ;;  %v5396_v2 = vmax.f32 %v612_v61, 0.0 }
 0x122   : > { %v632_v57 = vmax.f32 %v565_v55, 0.0  ;;  %3034 = vmatmul.bf16.gmra.mxu0 %v1372_v43  ;;  %2866 = vmatmul.bf16.gmra.mxu2 %v5391_v56  ;;  %723 = vst [vmem:[#allocation2 + $0x159] sm:$0xff] %v5396_v2 }
 0x123   : > { %v737_v59 = vld [vmem:[#allocation2 + $0x68] sm:$0xff] }
 0x124   : > { %704 = vst [vmem:[#allocation2 + $0x79] sm:$0xff] %v632_v57  ;;  %v769_v60 = vpack.c.bf16 %v737_v59, %v737_v59  ;;  %v834_v8 = vpack.c.bf16 %v632_v57, %v632_v57 }
 0x125   : > { %v614_v62 = vpop.f32.mrf.mxu2 }
 0x126   : > { %v1346_v0 = vunpack.c.l.b16 %v769_v60  ;;  %v615_v10 = vadd.f32 %v5345_v22, %v614_v62  ;;  %v1443_v11 = vunpack.c.l.b16 %v834_v8  ;;  %v2758_v8 = vpop.f32.mrf.mxu1 }
 0x127   : > { %v566_v3 = vpop.f32.mrf.mxu0 }
 0x128   : > { %v567_v4 = vadd.f32 %v5345_v22, %v566_v3  ;;  %v1373_v6 = vpack.c.b16 %v1346_v0, %v1345_v63  ;;  %v5401_v13 = vmax.f32 %v615_v10, 0.0 }
 0x12a   : > { %v633_v7 = vmax.f32 %v567_v4, 0.0  ;;  %2777 = vmatmul.bf16.gmra.mxu1 %v1373_v6  ;;  %724 = vst [vmem:[#allocation2 + $0x169] sm:$0xff] %v5401_v13 }
 0x12b   : > { %v738_v16 = vld [vmem:[#allocation2 + $0x78] sm:$0xff] }
 0x12c   : > { %705 = vst [vmem:[#allocation2 + $0x81] sm:$0xff] %v633_v7  ;;  %v835_v9 = vpack.c.bf16 %v633_v7, %v633_v7  ;;  %v770_v21 = vpack.c.bf16 %v738_v16, %v738_v16  ;;  %v4687_v7 = vld [vmem:[#allocation9 + $0x130] sm:$0xff] }
 0x12d   : > { %v616_v17 = vpop.f32.mrf.mxu2  ;;  %3106 = vmatpush.bf16.msrb.mxu1 %v4687_v7 }
 0x12e   : > { %v1444_v12 = vunpack.c.l.b16 %v835_v9  ;;  %v617_v27 = vadd.f32 %v5345_v22, %v616_v17  ;;  %v1347_v28 = vunpack.c.l.b16 %v770_v21  ;;  %v4686_v21 = vld [vmem:[#allocation9 + $0x128] sm:$0xff] }
 0x12f   : > { %v569_v15 = vpop.f32.mrf.mxu0 }
 0x130   : > { %v570_v18 = vadd.f32 %v5345_v22, %v569_v15  ;;  %v5404_v19 = vpack.c.b16 %v1444_v12, %v1443_v11  ;;  %v5409_v31 = vmax.f32 %v617_v27, 0.0 }
 0x131   : > { %3107 = vmatpush.bf16.msrb.mxu1 %v4686_v21 }
 0x132   : > { %v634_v20 = vmax.f32 %v570_v18, 0.0  ;;  %3039 = vmatmul.bf16.gmra.mxu0 %v1373_v6  ;;  %2871 = vmatmul.bf16.gmra.mxu2 %v5404_v19  ;;  %725 = vst [vmem:[#allocation2 + $0x171] sm:$0xff] %v5409_v31  ;;  %v5423_v6 = vld [vmem:[%s6255_s4] ss:$0 sm:$0xff] }
 0x133   : > { %v739_v23 = vld [vmem:[#allocation2 + $0x80] sm:$0xff]  ;;  %v2759_v11 = vadd.f32 %v5423_v6, %v2758_v8 }
 0x134   : > { %706 = vst [vmem:[#allocation2 + $0x91] sm:$0xff] %v634_v20  ;;  %v771_v24 = vpack.c.bf16 %v739_v23, %v739_v23  ;;  %v836_v37 = vpack.c.bf16 %v634_v20, %v634_v20 }
 0x135   : > { %v619_v35 = vpop.f32.mrf.mxu2 }
 0x136   : > { %v1348_v29 = vunpack.c.l.b16 %v771_v24  ;;  %v620_v40 = vadd.f32 %v5345_v22, %v619_v35  ;;  %v1445_v42 = vunpack.c.l.b16 %v836_v37 }
 0x137   : > { %v571_v32 = vpop.f32.mrf.mxu0 }
 0x138   : > { %v572_v33 = vadd.f32 %v5345_v22, %v571_v32  ;;  %v1374_v34 = vpack.c.b16 %v1348_v29, %v1347_v28  ;;  %v654_v44 = vmax.f32 %v620_v40, 0.0  ;;  %v4685_v28 = vld [vmem:[#allocation9 + $0x120] sm:$0xff] }
 0x139   : > { %3108 = vmatpush.bf16.msrb.mxu1 %v4685_v28 }
 0x13a   : > { %v635_v36 = vmax.f32 %v572_v33, 0.0  ;;  %2782 = vmatmul.bf16.gmra.mxu1 %v1374_v34  ;;  %726 = vst [vmem:[#allocation2 + $0x181] sm:$0xff] %v654_v44 }
 0x13b   : > { %v740_v46 = vld [vmem:[#allocation2 + $0x90] sm:$0xff] }
 0x13c   : > { %707 = vst [vmem:[#allocation2 + $0x99] sm:$0xff] %v635_v36  ;;  %v837_v38 = vpack.c.bf16 %v635_v36, %v635_v36  ;;  %v772_v50 = vpack.c.bf16 %v740_v46, %v740_v46  ;;  %v4684_v36 = vld [vmem:[#allocation9 + $0x118] sm:$0xff] }
 0x13d   : > { %v621_v53 = vpop.f32.mrf.mxu2  ;;  %3109 = vmatpush.bf16.msrb.mxu1 %v4684_v36 }
 0x13e   : > { %v5414_v43 = vunpack.c.l.b16 %v837_v38  ;;  %v622_v57 = vadd.f32 %v5345_v22, %v621_v53  ;;  %v1349_v58 = vunpack.c.l.b16 %v772_v50  ;;  %v4682_v50 = vld [vmem:[#allocation9 + $0x108] sm:$0xff] }
 0x13f   : > { %v574_v45 = vpop.f32.mrf.mxu0 }
 0x140   : > { %v575_v47 = vadd.f32 %v5345_v22, %v574_v45  ;;  %v1471_v48 = vpack.c.b16 %v5414_v43, %v1445_v42  ;;  %v655_v60 = vmax.f32 %v622_v57, 0.0  ;;  %v4683_v42 = vld [vmem:[#allocation9 + $0x110] sm:$0xff] }
 0x141   : > { %3110 = vmatpush.bf16.msrb.mxu1 %v4683_v42 }
 0x142   : > { %v636_v49 = vmax.f32 %v575_v47, 0.0  ;;  %3044 = vmatmul.bf16.gmra.mxu0 %v1374_v34  ;;  %2876 = vmatmul.bf16.gmra.mxu2 %v1471_v48  ;;  %727 = vst [vmem:[#allocation2 + $0x189] sm:$0xff] %v655_v60 }
 0x143   : > { %v741_v52 = vld [vmem:[#allocation2 + $0x98] sm:$0xff] }
 0x144   : > { %708 = vst [vmem:[#allocation2 + $0xa9] sm:$0xff] %v636_v49  ;;  %v773_v55 = vpack.c.bf16 %v741_v52, %v741_v52  ;;  %v838_v3 = vpack.c.bf16 %v636_v49, %v636_v49 }
 0x145   : > { %v2847_v16 = vpop.f32.mrf.mxu2  ;;  %3111 = vmatpush.bf16.msrb.mxu1 %v4682_v50 }
 0x146   : > { %v1350_v59 = vunpack.c.l.b16 %v773_v55  ;;  %v1447_v9 = vunpack.c.l.b16 %v838_v3  ;;  %v5427_v20 = vadd.f32 %v2847_v16, %v2759_v11 }
 0x147   : > { %v576_v61 = vpop.f32.mrf.mxu0 }
 0x148   : > { %v577_v62 = vadd.f32 %v5345_v22, %v576_v61  ;;  %v1375_v63 = vpack.c.b16 %v1350_v59, %v1349_v58  ;;  %v4681_v58 = vld [vmem:[#allocation9 + $0x100] sm:$0xff] }
 0x149   : > { %3112 = vmatpush.bf16.msrb.mxu1 %v4681_v58 }
 0x14a   : > { %v637_v0 = vmax.f32 %v577_v62, 0.0  ;;  %2787 = vmatmul.bf16.gmra.mxu1 %v1375_v63 }
 0x14b   : > { %v742_v15 = vld [vmem:[#allocation2 + $0xa8] sm:$0xff] }
 0x14c   : > { %709 = vst [vmem:[#allocation2 + $0xb1] sm:$0xff] %v637_v0  ;;  %v839_v4 = vpack.c.bf16 %v637_v0, %v637_v0  ;;  %v774_v24 = vpack.c.bf16 %v742_v15, %v742_v15 }
 0x14d   : > { %v5432_v7 = vpop.f32.mrf.mxu2 }
 0x14e   : > { %v1448_v10 = vunpack.c.l.b16 %v839_v4  ;;  %v1351_v29 = vunpack.c.l.b16 %v774_v24  ;;  %v4672_v4 = vld [vmem:[#allocation9 + $0xb8] sm:$0xff] }
 0x14f   : > { %v579_v12 = vpop.f32.mrf.mxu0  ;;  %2927 = vmatpush.bf16.msrb.mxu3 %v4672_v4 }
 0x150   : > { %v580_v17 = vadd.f32 %v5345_v22, %v579_v12  ;;  %v1472_v18 = vpack.c.b16 %v1448_v10, %v1447_v9  ;;  %v5434_v9 = vpop.f32.mrf.mxu1 }
 0x152   : > { %v638_v23 = vmax.f32 %v580_v17, 0.0  ;;  %3049 = vmatmul.bf16.gmra.mxu0 %v1375_v63  ;;  %2881 = vmatmul.bf16.gmra.mxu2 %v1472_v18 }
 0x153   : > { %v743_v25 = vld [vmem:[#allocation2 + $0xb0] sm:$0xff] }
 0x154   : > { %710 = vst [vmem:[#allocation2 + $0xc1] sm:$0xff] %v638_v23  ;;  %v775_v27 = vpack.c.bf16 %v743_v25, %v743_v25  ;;  %v840_v38 = vpack.c.bf16 %v638_v23, %v638_v23  ;;  %v4671_v23 = vld [vmem:[#allocation9 + $0xb0] sm:$0xff] }
 0x155   : > { %2928 = vmatpush.bf16.msrb.mxu3 %v4671_v23  ;;  %v4669_v23 = vld [vmem:[#allocation9 + $0xa0] sm:$0xff] }
 0x156   : > { %v1352_v32 = vunpack.c.l.b16 %v775_v27  ;;  %v1449_v44 = vunpack.c.l.b16 %v840_v38 }
 0x157   : > { %v581_v33 = vpop.f32.mrf.mxu0 }
 0x158   : > { %v582_v34 = vadd.f32 %v5345_v22, %v581_v33  ;;  %v1376_v35 = vpack.c.b16 %v1352_v32, %v1351_v29 }
 0x15a   : > { %v639_v37 = vmax.f32 %v582_v34, 0.0  ;;  %2792 = vmatmul.bf16.gmra.mxu1 %v1376_v35 }
 0x15b   : > { %v744_v47 = vld [vmem:[#allocation2 + $0xc0] sm:$0xff] }
 0x15c   : > { %711 = vst [vmem:[#allocation2 + $0xc9] sm:$0xff] %v639_v37  ;;  %v841_v40 = vpack.c.bf16 %v639_v37, %v639_v37  ;;  %v776_v53 = vpack.c.bf16 %v744_v47, %v744_v47 }
 0x15e   : > { %v1450_v45 = vunpack.c.l.b16 %v841_v40  ;;  %v1353_v59 = vunpack.c.l.b16 %v776_v53 }
 0x15f   : > { %v584_v46 = vpop.f32.mrf.mxu0 }
 0x160   : > { %v585_v48 = vadd.f32 %v5345_v22, %v584_v46  ;;  %v1473_v49 = vpack.c.b16 %v1450_v45, %v1449_v44  ;;  %v985_v44 = vld [vmem:[#allocation2 + $0x21] sm:$0xff] }
 0x162   : > { %v640_v52 = vmax.f32 %v585_v48, 0.0  ;;  %3054 = vmatmul.bf16.gmra.mxu0 %v1376_v35  ;;  %2886 = vmatmul.bf16.gmra.mxu2 %v1473_v49  ;;  %v984_v48 = vld [vmem:[#allocation2 + $0x19] sm:$0xff] }
 0x163   : > { %v745_v55 = vld [vmem:[#allocation2 + $0xc8] sm:$0xff]  ;;  %v1016_v58 = vpack.c.bf16 %v984_v48, %v984_v48  ;;  %v848_v48 = vpack.c.bf16 %v5362_v1, %v5362_v1 }
 0x164   : > { %712 = vst [vmem:[#allocation2 + $0xd9] sm:$0xff] %v640_v52  ;;  %v777_v57 = vpack.c.bf16 %v745_v55, %v745_v55  ;;  %v842_v3 = vpack.c.bf16 %v640_v52, %v640_v52 }
 0x166   : > { %v1354_v60 = vunpack.c.l.b16 %v777_v57  ;;  %v1451_v10 = vunpack.c.l.b16 %v842_v3  ;;  %v4670_v57 = vld [vmem:[#allocation9 + $0xa8] sm:$0xff] }
 0x167   : > { %v586_v61 = vpop.f32.mrf.mxu0  ;;  %2929 = vmatpush.bf16.msrb.mxu3 %v4670_v57 }
 0x168   : > { %v587_v62 = vadd.f32 %v5345_v22, %v586_v61  ;;  %v1377_v63 = vpack.c.b16 %v1354_v60, %v1353_v59 }
 0x16a   : > { %v641_v0 = vmax.f32 %v587_v62, 0.0  ;;  %2797 = vmatmul.bf16.gmra.mxu1 %v1377_v63 }
 0x16b   : > { %v746_v15 = vld [vmem:[#allocation2 + $0xd8] sm:$0xff]  ;;  %2930 = vmatpush.bf16.msrb.mxu3 %v4669_v23 }
 0x16c   : > { %713 = vst [vmem:[#allocation2 + $0xe1] sm:$0xff] %v641_v0  ;;  %v843_v8 = vpack.c.bf16 %v641_v0, %v641_v0  ;;  %v778_v21 = vpack.c.bf16 %v746_v15, %v746_v15  ;;  %v1721_v0 = vunpack.c.l.b16 %v1016_v58  ;;  %v752_v58 = vld [vmem:[#allocation2 + $0x120] sm:$0xff] }
 0x16e   : > { %v1452_v11 = vunpack.c.l.b16 %v843_v8  ;;  %v1355_v28 = vunpack.c.l.b16 %v778_v21 }
 0x16f   : > { %v589_v12 = vpop.f32.mrf.mxu0 }
 0x170   : > { %v590_v16 = vadd.f32 %v5345_v22, %v589_v12  ;;  %v1474_v17 = vpack.c.b16 %v1452_v11, %v1451_v10 }
 0x172   : > { %v642_v18 = vmax.f32 %v590_v16, 0.0  ;;  %3059 = vmatmul.bf16.gmra.mxu0 %v1377_v63  ;;  %2891 = vmatmul.bf16.gmra.mxu2 %v1474_v17  ;;  %v846_v17 = vpack.c.bf16 %v5352_v41, %v5352_v41 }
 0x173   : > { %v747_v24 = vld [vmem:[#allocation2 + $0xe0] sm:$0xff] }
 0x174   : > { %714 = vst [vmem:[#allocation2 + $0xf1] sm:$0xff] %v642_v18  ;;  %v779_v25 = vpack.c.bf16 %v747_v24, %v747_v24  ;;  %v844_v40 = vpack.c.bf16 %v642_v18, %v642_v18  ;;  %v847_v18 = vpack.c.bf16 %v5357_v54, %v5357_v54  ;;  %v1455_v24 = vunpack.c.l.b16 %v846_v17 }
 0x175   : > { %v2852_v27 = vpop.f32.mrf.mxu2 }
 0x176   : > { %v1356_v29 = vunpack.c.l.b16 %v779_v25  ;;  %v1453_v46 = vunpack.c.l.b16 %v844_v40  ;;  %v1456_v25 = vunpack.c.l.b16 %v847_v18 }
 0x177   : > { %v591_v32 = vpop.f32.mrf.mxu0  ;;  %v2763_v33 = vpop.f32.mrf.mxu1 }
 0x178   : > { %v592_v34 = vadd.f32 %v5345_v22, %v591_v32  ;;  %v2764_v35 = vadd.f32 %v5423_v6, %v2763_v33  ;;  %v1378_v36 = vpack.c.b16 %v1356_v29, %v1355_v28  ;;  %v1017_v22 = vpack.c.bf16 %v985_v44, %v985_v44  ;;  %v750_v28 = vld [vmem:[#allocation2 + $0x108] sm:$0xff]  ;;  %v751_v29 = vld [vmem:[#allocation2 + $0x110] sm:$0xff] }
 0x179   : > { %v782_v41 = vpack.c.bf16 %v750_v28, %v750_v28 }
 0x17a   : > { %v643_v37 = vmax.f32 %v592_v34, 0.0  ;;  %2802 = vmatmul.bf16.gmra.mxu1 %v1378_v36  ;;  %v5439_v38 = vadd.f32 %v2852_v27, %v2764_v35  ;;  %v1722_v62 = vunpack.c.l.b16 %v1017_v22  ;;  %v783_v35 = vpack.c.bf16 %v751_v29, %v751_v29  ;;  %v4668_v22 = vld [vmem:[#allocation9 + $0x98] sm:$0xff] }
 0x17b   : > { %v748_v52 = vld [vmem:[#allocation2 + $0xf0] sm:$0xff]  ;;  %2931 = vmatpush.bf16.msrb.mxu3 %v4668_v22 }
 0x17c   : > { %715 = vst [vmem:[#allocation2 + $0xf9] sm:$0xff] %v643_v37  ;;  %v845_v42 = vpack.c.bf16 %v643_v37, %v643_v37  ;;  %v780_v60 = vpack.c.bf16 %v748_v52, %v748_v52  ;;  %v1753_v12 = vpack.c.b16 %v1722_v62, %v1721_v0  ;;  %v1359_v37 = vunpack.c.l.b16 %v782_v41  ;;  %v754_v41 = vld [vmem:[#allocation2 + $0x138] sm:$0xff] }
 0x17d   : > { %v2854_v45 = vpop.f32.mrf.mxu2  ;;  %v1360_v40 = vunpack.c.l.b16 %v783_v35  ;;  %v755_v35 = vld [vmem:[#allocation2 + $0x140] sm:$0xff] }
 0x17e   : > { %v1454_v47 = vunpack.c.l.b16 %v845_v42  ;;  %v1357_v4 = vunpack.c.l.b16 %v780_v60  ;;  %v753_v60 = vld [vmem:[#allocation2 + $0x128] sm:$0xff] }
 0x17f   : > { %v2765_v49 = vpop.f32.mrf.mxu1  ;;  %v5441_v50 = vpop.f32.mrf.mxu0  ;;  %v785_v0 = vpack.c.bf16 %v753_v60, %v753_v60 }
 0x180   : > { %v2766_v53 = vadd.f32 %v5423_v6, %v2765_v49  ;;  %v1475_v55 = vpack.c.b16 %v1454_v47, %v1453_v46  ;;  %v1380_v47 = vpack.c.b16 %v1360_v40, %v1359_v37  ;;  %v849_v49 = vpack.c.bf16 %v5370_v14, %v5370_v14 }
 0x182   : > { %3064 = vmatmul.bf16.gmra.mxu0 %v1378_v36  ;;  %v5444_v59 = vadd.f32 %v2854_v45, %v2766_v53  ;;  %2896 = vmatmul.bf16.gmra.mxu2 %v1475_v55  ;;  %v1476_v36 = vpack.c.b16 %v1456_v25, %v1455_v24  ;;  %v1457_v53 = vunpack.c.l.b16 %v848_v48  ;;  %v1458_v55 = vunpack.c.l.b16 %v849_v49 }
 0x183   : > { %v749_v61 = vld [vmem:[#allocation2 + $0xf8] sm:$0xff]  ;;  %v850_v24 = vpack.c.bf16 %v5375_v26, %v5375_v26  ;;  %v851_v25 = vpack.c.bf16 %v5383_v39, %v5383_v39  ;;  %v786_v39 = vpack.c.bf16 %v754_v41, %v754_v41 }
 0x184   : > { %v781_v63 = vpack.c.bf16 %v749_v61, %v749_v61  ;;  %v1477_v14 = vpack.c.b16 %v1458_v55, %v1457_v53  ;;  %v4691_v53 = vld [vmem:[#allocation9 + $0x150] sm:$0xff] }
 0x185   : > { %v2857_v3 = vpop.f32.mrf.mxu2  ;;  %v1459_v29 = vunpack.c.l.b16 %v850_v24  ;;  %v1363_v48 = vunpack.c.l.b16 %v786_v39  ;;  %v4712_v24 = vld [vmem:[#allocation9 + $0x1f8] sm:$0xff] }
 0x186   : > { %v1358_v8 = vunpack.c.l.b16 %v781_v63  ;;  %v784_v63 = vpack.c.bf16 %v752_v58, %v752_v58  ;;  %3372 = vmatpush.bf16.msra.mxu0 %v4712_v24 }
 0x187   : > { %v2768_v10 = vpop.f32.mrf.mxu1  ;;  %v5446_v11 = vpop.f32.mrf.mxu0 }
 0x188   : > { %v2769_v15 = vadd.f32 %v5423_v6, %v2768_v10  ;;  %v1379_v16 = vpack.c.b16 %v1358_v8, %v1357_v4  ;;  %v4667_v4 = vld [vmem:[#allocation9 + $0x90] sm:$0xff]  ;;  %v1361_v8 = vunpack.c.l.b16 %v784_v63  ;;  %v1362_v10 = vunpack.c.l.b16 %v785_v0  ;;  %v4690_v63 = vld [vmem:[#allocation9 + $0x148] sm:$0xff] }
 0x189   : > { %2932 = vmatpush.bf16.msrb.mxu3 %v4667_v4 }
 0x18a   : > { %2807 = vmatmul.bf16.vlgmr.msra.gmra.mxu3 %v1379_v16  ;;  %3113 = vmatmul.bf16.vlgmr.msrb.gmra.mxu1 %v1753_v12  ;;  %v5453_v21 = vadd.f32 %v2857_v3, %v2769_v15  ;;  %v4696_v3 = vld [vmem:[#allocation9 + $0x178] sm:$0xff]  ;;  %v4695_v15 = vld [vmem:[#allocation9 + $0x170] sm:$0xff]  ;;  %v1381_v23 = vpack.c.b16 %v1362_v10, %v1361_v8  ;;  %v756_v10 = vld [vmem:[#allocation2 + $0x150] sm:$0xff] }
 0x18b   : > { %3194 = vmatpush.bf16.msra.mxu2 %v4696_v3 }
 0x18d   : > { %v2859_v27 = vpop.f32.mrf.mxu2 }
 0x18f   : > { %v2770_v32 = vpop.f32.mrf.mxu1  ;;  %v5455_v33 = vpop.f32.mrf.mxu0  ;;  %3195 = vmatpush.bf16.msra.mxu2 %v4695_v15  ;;  %v4689_v15 = vld [vmem:[#allocation9 + $0x140] sm:$0xff] }
 0x190   : > { %v2771_v34 = vadd.f32 %v5423_v6, %v2770_v32  ;;  %v1460_v32 = vunpack.c.l.b16 %v851_v25 }
 0x192   : > { %3069 = vmatmul.bf16.gmra.mxu0 %v1379_v16  ;;  %v5458_v54 = vadd.f32 %v2859_v27, %v2771_v34  ;;  %2901 = vmatmul.bf16.gmra.mxu2 %v1476_v36  ;;  %v4694_v27 = vld [vmem:[#allocation9 + $0x168] sm:$0xff]  ;;  %v4693_v36 = vld [vmem:[#allocation9 + $0x160] sm:$0xff] }
 0x193   : > { %3196 = vmatpush.bf16.msra.mxu2 %v4694_v27 }
 0x195   : > { %v2862_v42 = vpop.f32.mrf.mxu2 }
 0x197   : > { %v2773_v44 = vpop.f32.mrf.mxu1  ;;  %v5460_v45 = vpop.f32.mrf.mxu0  ;;  %3197 = vmatpush.bf16.msra.mxu2 %v4693_v36 }
 0x198   : > { %v2774_v46 = vadd.f32 %v5423_v6, %v2773_v44  ;;  %v1478_v44 = vpack.c.b16 %v1460_v32, %v1459_v29 }
 0x19a   : > { %2812 = vmatmul.bf16.gmra.mxu3 %v1380_v47  ;;  %3118 = vmatmul.bf16.gmra.mxu1 %v5365_v5  ;;  %v5468_v52 = vadd.f32 %v2862_v42, %v2774_v46  ;;  %v787_v42 = vpack.c.bf16 %v755_v35, %v755_v35  ;;  %v4666_v46 = vld [vmem:[#allocation9 + $0x88] sm:$0xff] }
 0x19b   : > { %2933 = vmatpush.bf16.msrb.mxu3 %v4666_v46  ;;  %v4710_v46 = vld [vmem:[#allocation9 + $0x1e8] sm:$0xff] }
 0x19c   : > { %v1364_v49 = vunpack.c.l.b16 %v787_v42 }
 0x19d   : > { %v2864_v57 = vpop.f32.mrf.mxu2 }
 0x19e   : > { %v1382_v60 = vpack.c.b16 %v1364_v49, %v1363_v48  ;;  %v994_v49 = vld [vmem:[#allocation2 + $0x91] sm:$0xff] }
 0x19f   : > { %v2775_v61 = vpop.f32.mrf.mxu1  ;;  %v5470_v62 = vpop.f32.mrf.mxu0 }
 0x1a0   : > { %v2776_v1 = vadd.f32 %v5423_v6, %v2775_v61  ;;  %v852_v61 = vpack.c.bf16 %v5388_v51, %v5388_v51 }
 0x1a2   : > { %3074 = vmatmul.bf16.gmra.mxu0 %v1380_v47  ;;  %v5473_v5 = vadd.f32 %v2864_v57, %v2776_v1  ;;  %2906 = vmatmul.bf16.gmra.mxu2 %v1477_v14  ;;  %v853_v1 = vpack.c.bf16 %v5396_v2, %v5396_v2  ;;  %v4665_v14 = vld [vmem:[#allocation9 + $0x80] sm:$0xff]  ;;  %v1461_v3 = vunpack.c.l.b16 %v852_v61 }
 0x1a3   : > { %2934 = vmatpush.bf16.msrb.mxu3 %v4665_v14  ;;  %v4708_v14 = vld [vmem:[#allocation9 + $0x1d8] sm:$0xff] }
 0x1a4   : > { %v1462_v4 = vunpack.c.l.b16 %v853_v1 }
 0x1a5   : > { %v2867_v12 = vpop.f32.mrf.mxu2 }
 0x1a7   : > { %v2778_v16 = vpop.f32.mrf.mxu1  ;;  %v5475_v17 = vpop.f32.mrf.mxu0 }
 0x1a8   : > { %v2779_v18 = vadd.f32 %v5423_v6, %v2778_v16 }
 0x1aa   : > { %2817 = vmatmul.bf16.gmra.mxu3 %v1381_v23  ;;  %3123 = vmatmul.bf16.gmra.mxu1 %v5378_v30  ;;  %v5483_v28 = vadd.f32 %v2867_v12, %v2779_v18  ;;  %v4692_v30 = vld [vmem:[#allocation9 + $0x158] sm:$0xff]  ;;  %v757_v12 = vld [vmem:[#allocation2 + $0x158] sm:$0xff]  ;;  %v788_v18 = vpack.c.bf16 %v756_v10, %v756_v10 }
 0x1ab   : > { %3198 = vmatpush.bf16.msra.mxu2 %v4692_v30 }
 0x1ac   : > { %v1365_v27 = vunpack.c.l.b16 %v788_v18  ;;  %v4707_v18 = vld [vmem:[#allocation9 + $0x1d0] sm:$0xff] }
 0x1ad   : > { %v2869_v34 = vpop.f32.mrf.mxu2 }
 0x1af   : > { %v2780_v37 = vpop.f32.mrf.mxu1  ;;  %v5485_v40 = vpop.f32.mrf.mxu0  ;;  %3199 = vmatpush.bf16.msra.mxu2 %v4691_v53  ;;  %v758_v53 = vld [vmem:[#allocation2 + $0x168] sm:$0xff] }
 0x1b0   : > { %v2781_v26 = vadd.f32 %v5423_v6, %v2780_v37  ;;  %v854_v37 = vpack.c.bf16 %v5401_v13, %v5401_v13  ;;  %v759_v13 = vld [vmem:[#allocation2 + $0x170] sm:$0xff]  ;;  %v790_v61 = vpack.c.bf16 %v758_v53, %v758_v53 }
 0x1b1   : > { %v791_v1 = vpack.c.bf16 %v759_v13, %v759_v13  ;;  %v996_v53 = vld [vmem:[#allocation2 + $0xa9] sm:$0xff] }
 0x1b2   : > { %3079 = vmatmul.bf16.gmra.mxu0 %v1381_v23  ;;  %v5488_v47 = vadd.f32 %v2869_v34, %v2781_v26  ;;  %2911 = vmatmul.bf16.gmra.mxu2 %v1478_v44  ;;  %v789_v23 = vpack.c.bf16 %v757_v12, %v757_v12  ;;  %v4711_v34 = vld [vmem:[#allocation9 + $0x1f0] sm:$0xff]  ;;  %v855_v26 = vpack.c.bf16 %v5409_v31, %v5409_v31  ;;  %v4704_v44 = vld [vmem:[#allocation9 + $0x1b8] sm:$0xff]  ;;  %v1463_v30 = vunpack.c.l.b16 %v854_v37 }
 0x1b3   : > { %3200 = vmatpush.bf16.msra.mxu2 %v4690_v63  ;;  %3373 = vmatpush.bf16.msra.mxu0 %v4711_v34  ;;  %v1026_v31 = vpack.c.bf16 %v994_v49, %v994_v49  ;;  %v1368_v10 = vunpack.c.l.b16 %v791_v1  ;;  %v1028_v1 = vpack.c.bf16 %v996_v53, %v996_v53  ;;  %v998_v53 = vld [vmem:[#allocation2 + $0xc1] sm:$0xff] }
 0x1b4   : > { %v1366_v29 = vunpack.c.l.b16 %v789_v23  ;;  %v1464_v48 = vunpack.c.l.b16 %v855_v26  ;;  %3283 = vmatpush.bf16.msra.mxu3 %v4704_v44 }
 0x1b5   : > { %v2872_v22 = vpop.f32.mrf.mxu2  ;;  %v5520_v12 = vunpack.c.l.b16 %v1026_v31 }
 0x1b6   : > { %v1383_v36 = vpack.c.b16 %v1366_v29, %v1365_v27 }
 0x1b7   : > { %v2783_v55 = vpop.f32.mrf.mxu1  ;;  %v5490_v57 = vpop.f32.mrf.mxu0  ;;  %3201 = vmatpush.bf16.msra.mxu2 %v4689_v15  ;;  %3374 = vmatpush.bf16.msra.mxu0 %v4710_v46  ;;  %v1048_v15 = vld [vmem:[#allocation2 + $0x1a] sm:$0xff]  ;;  %v1758_v29 = vpack.c.b16 %v5414_v43, %v5520_v12  ;;  %v997_v46 = vld [vmem:[#allocation2 + $0xb1] sm:$0xff] }
 0x1b8   : > { %v2784_v58 = vadd.f32 %v5423_v6, %v2783_v55  ;;  %v4709_v55 = vld [vmem:[#allocation9 + $0x1e0] sm:$0xff] }
 0x1ba   : > { %2822 = vmatmul.bf16.gmra.mxu3 %v1382_v60  ;;  %3128 = vmatmul.bf16.gmra.mxu1 %v5391_v56  ;;  %v5498_v0 = vadd.f32 %v2872_v22, %v2784_v58  ;;  %v1479_v56 = vpack.c.b16 %v1462_v4, %v1461_v3  ;;  %v4720_v3 = vld [vmem:[#allocation9 + $0x238] sm:$0xff] }
 0x1bb   : > { %3375 = vmatpush.bf16.msra.mxu0 %v4709_v55  ;;  %3461 = vmatpush.bf16.msra.mxu1 %v4720_v3  ;;  %v1029_v55 = vpack.c.bf16 %v997_v46, %v997_v46 }
 0x1bd   : > { %v2874_v8 = vpop.f32.mrf.mxu2  ;;  %v1734_v3 = vunpack.c.l.b16 %v1029_v55 }
 0x1bf   : > { %v2785_v16 = vpop.f32.mrf.mxu1  ;;  %v5501_v2 = vpop.f32.mrf.mxu0  ;;  %3376 = vmatpush.bf16.msra.mxu0 %v4708_v14  ;;  %v951_v14 = vld [vmem:[#allocation2 + $0x188] sm:$0xff] }
 0x1c0   : > { %v2786_v51 = vadd.f32 %v5423_v6, %v2785_v16  ;;  %6273 = vst [vmem:[#allocation18_spill] sm:$0xff] %v5501_v2 }
 0x1c2   : > { %3084 = vmatmul.bf16.gmra.mxu0 %v1382_v60  ;;  %v5503_v25 = vadd.f32 %v2874_v8, %v2786_v51  ;;  %2916 = vmatmul.bf16.gmra.mxu2 %v1479_v56  ;;  %v1367_v8 = vunpack.c.l.b16 %v790_v61  ;;  %v1049_v51 = vld [vmem:[#allocation2 + $0x22] sm:$0xff]  ;;  %v1080_v56 = vpack.c.bf16 %v1048_v15, %v1048_v15  ;;  %v1051_v15 = vld [vmem:[#allocation2 + $0x3a] sm:$0xff] }
 0x1c3   : > { %3377 = vmatpush.bf16.msra.mxu0 %v4707_v18 }
 0x1c4   : > { %v1384_v27 = vpack.c.b16 %v1368_v10, %v1367_v8  ;;  %v1817_v37 = vunpack.c.l.b16 %v1080_v56  ;;  %v1050_v10 = vld [vmem:[#allocation2 + $0x32] sm:$0xff] }
 0x1c5   : > { %v2877_v32 = vpop.f32.mrf.mxu2 }
 0x1c7   : > { %v2788_v41 = vpop.f32.mrf.mxu1  ;;  %v5510_v39 = vpop.f32.mrf.mxu0 }
 0x1c8   : > { %v2789_v35 = vadd.f32 %v5423_v6, %v2788_v41  ;;  %6274 = vst [vmem:[#allocation19_spill] sm:$0xff] %v5510_v39  ;;  %v4706_v41 = vld [vmem:[#allocation9 + $0x1c8] sm:$0xff] }
 0x1c9   : > { %3378 = vmatpush.bf16.msra.mxu0 %v4706_v41  ;;  %v1083_v41 = vpack.c.bf16 %v1051_v15, %v1051_v15  ;;  %v1052_v15 = vld [vmem:[#allocation2 + $0x4a] sm:$0xff] }
 0x1ca   : > { %2827 = vmatmul.bf16.gmra.mxu3 %v1383_v36  ;;  %3133 = vmatmul.bf16.gmra.mxu1 %v5404_v19  ;;  %v5513_v42 = vadd.f32 %v2877_v32, %v2789_v35  ;;  %v1480_v19 = vpack.c.b16 %v1464_v48, %v1463_v30  ;;  %v1081_v32 = vpack.c.bf16 %v1049_v51, %v1049_v51  ;;  %v856_v35 = vld [vmem:[#allocation2 + $0x2] sm:$0xff]  ;;  %v1733_v51 = vunpack.c.l.b16 %v1028_v1 }
 0x1cb   : > { %v888_v48 = vpack.c.bf16 %v856_v35, %v856_v35  ;;  %v1820_v46 = vunpack.c.l.b16 %v1083_v41  ;;  %v1084_v41 = vpack.c.bf16 %v1052_v15, %v1052_v15 }
 0x1cc   : > { %v1818_v26 = vunpack.c.l.b16 %v1081_v32  ;;  %v1082_v32 = vpack.c.bf16 %v1050_v10, %v1050_v10 }
 0x1cd   : > { %v2879_v22 = vpop.f32.mrf.mxu2 }
 0x1cf   : > { %v2790_v58 = vpop.f32.mrf.mxu1  ;;  %v5518_v4 = vpop.f32.mrf.mxu0 }
 0x1d0   : > { %v2791_v60 = vadd.f32 %v5423_v6, %v2790_v58  ;;  %6276 = vst [vmem:[#allocation21_spill] sm:$0xff] %v5518_v4  ;;  %v1849_v58 = vpack.c.b16 %v1818_v26, %v1817_v37  ;;  %v4703_v26 = vld [vmem:[#allocation9 + $0x1b0] sm:$0xff] }
 0x1d1   : > { %3284 = vmatpush.bf16.msra.mxu3 %v4703_v26 }
 0x1d2   : > { %3089 = vmatmul.bf16.gmra.mxu0 %v1383_v36  ;;  %v5516_v63 = vadd.f32 %v2879_v22, %v2791_v60  ;;  %2921 = vmatmul.bf16.gmra.mxu2 %v1480_v19  ;;  %v857_v36 = vld [vmem:[#allocation2 + $0xa] sm:$0xff]  ;;  %v1529_v60 = vunpack.c.l.b16 %v888_v48  ;;  %v950_v19 = vld [vmem:[#allocation2 + $0x180] sm:$0xff] }
 0x1d3   : > { %v889_v49 = vpack.c.bf16 %v857_v36, %v857_v36  ;;  %v4705_v22 = vld [vmem:[#allocation9 + $0x1c0] sm:$0xff]  ;;  %v982_v18 = vpack.c.bf16 %v950_v19, %v950_v19  ;;  %v1030_v19 = vpack.c.bf16 %v998_v53, %v998_v53 }
 0x1d4   : > { %6275 = vst [vmem:[#allocation20_spill] sm:$0xff] %v5516_v63  ;;  %3379 = vmatpush.bf16.msra.mxu0 %v4705_v22 }
 0x1d5   : > { %v2882_v16 = vpop.f32.mrf.mxu2  ;;  %v1530_v61 = vunpack.c.l.b16 %v889_v49  ;;  %v1655_v36 = vunpack.c.l.b16 %v982_v18  ;;  %v999_v49 = vld [vmem:[#allocation2 + $0xc9] sm:$0xff] }
 0x1d6   : > { %v1031_v55 = vpack.c.bf16 %v999_v49, %v999_v49 }
 0x1d7   : > { %v2793_v23 = vpop.f32.mrf.mxu1  ;;  %v5527_v30 = vpop.f32.mrf.mxu0 }
 0x1d8   : > { %v2794_v24 = vadd.f32 %v5423_v6, %v2793_v23  ;;  %6278 = vst [vmem:[#allocation23_spill] sm:$0xff] %v5527_v30  ;;  %v983_v23 = vpack.c.bf16 %v951_v14, %v951_v14  ;;  %v4719_v14 = vld [vmem:[#allocation9 + $0x230] sm:$0xff] }
 0x1d9   : > { %3462 = vmatpush.bf16.msra.mxu1 %v4719_v14 }
 0x1da   : > { %2832 = vmatmul.bf16.gmra.mxu3 %v1384_v27  ;;  %3138 = vmatmul.bf16.gmra.mxu1 %v1758_v29  ;;  %v5525_v34 = vadd.f32 %v2882_v16, %v2794_v24  ;;  %v1561_v16 = vpack.c.b16 %v1530_v61, %v1529_v60  ;;  %v5535_v29 = vpack.c.b16 %v1734_v3, %v1733_v51  ;;  %v1656_v37 = vunpack.c.l.b16 %v983_v23  ;;  %v1177_v23 = vld [vmem:[#allocation2 + $0x31] sm:$0xff] }
 0x1db   : > { %v1736_v3 = vunpack.c.l.b16 %v1031_v55  ;;  %v1735_v51 = vunpack.c.l.b16 %v1030_v19  ;;  %v1209_v26 = vpack.c.bf16 %v1177_v23, %v1177_v23  ;;  %v1000_v55 = vld [vmem:[#allocation2 + $0xd9] sm:$0xff]  ;;  %v1055_v23 = vld [vmem:[#allocation2 + $0x6a] sm:$0xff] }
 0x1dc   : > { %6277 = vst [vmem:[#allocation22_spill] sm:$0xff] %v5525_v34  ;;  %v1672_v22 = vpack.c.b16 %v1656_v37, %v1655_v36  ;;  %v1063_v34 = vld [vmem:[#allocation2 + $0xca] sm:$0xff] }
 0x1dd   : > { %v2884_v44 = vpop.f32.mrf.mxu2  ;;  %v2009_v53 = vunpack.c.l.b16 %v1209_v26 }
 0x1df   : > { %v2795_v43 = vpop.f32.mrf.mxu1  ;;  %v5532_v24 = vpop.f32.mrf.mxu0 }
 0x1e0   : > { %v2796_v13 = vadd.f32 %v5423_v6, %v2795_v43  ;;  %6280 = vst [vmem:[#allocation25_spill] sm:$0xff] %v5532_v24  ;;  %v1057_v24 = vld [vmem:[#allocation2 + $0x82] sm:$0xff] }
 0x1e2   : > { %3094 = vmatmul.bf16.gmra.mxu0 %v1384_v27  ;;  %v5530_v31 = vadd.f32 %v2884_v44, %v2796_v13  ;;  %3202 = vmatmul.bf16.vlgmr.msra.gmra.mxu2 %v1849_v58  ;;  %v1819_v44 = vunpack.c.l.b16 %v1082_v32  ;;  %v5549_v32 = vpack.c.b16 %v1736_v3, %v1735_v51  ;;  %v1180_v51 = vld [vmem:[#allocation2 + $0x51] sm:$0xff] }
 0x1e4   : > { %6279 = vst [vmem:[#allocation24_spill] sm:$0xff] %v5530_v31  ;;  %v5541_v60 = vpack.c.b16 %v1820_v46, %v1819_v44  ;;  %v1009_v31 = vld [vmem:[#allocation2 + $0x141] sm:$0xff] }
 0x1e5   : > { %v2887_v8 = vpop.f32.mrf.mxu2 }
 0x1e7   : > { %v2798_v56 = vpop.f32.mrf.mxu1  ;;  %v5543_v61 = vpop.f32.mrf.mxu0 }
 0x1e8   : > { %v2799_v27 = vadd.f32 %v5423_v6, %v2798_v56  ;;  %6282 = vst [vmem:[#allocation27_spill] sm:$0xff] %v5543_v61  ;;  %v1056_v61 = vld [vmem:[#allocation2 + $0x7a] sm:$0xff] }
 0x1ea   : > { %2935 = vmatmul.bf16.vlgmr.msrb.gmra.mxu3 %v1561_v16  ;;  %3143 = vmatmul.bf16.gmra.mxu1 %v5535_v29  ;;  %v5538_v35 = vadd.f32 %v2887_v8, %v2799_v27  ;;  %v1178_v8 = vld [vmem:[#allocation2 + $0x39] sm:$0xff] }
 0x1eb   : > { %v1053_v16 = vld [vmem:[#allocation2 + $0x52] sm:$0xff]  ;;  %v1210_v56 = vpack.c.bf16 %v1178_v8, %v1178_v8 }
 0x1ec   : > { %6281 = vst [vmem:[#allocation26_spill] sm:$0xff] %v5538_v35  ;;  %v1085_v36 = vpack.c.bf16 %v1053_v16, %v1053_v16  ;;  %v1061_v35 = vld [vmem:[#allocation2 + $0xb2] sm:$0xff] }
 0x1ed   : > { %v2889_v48 = vpop.f32.mrf.mxu2  ;;  %v2010_v46 = vunpack.c.l.b16 %v1210_v56 }
 0x1ee   : > { %v1822_v49 = vunpack.c.l.b16 %v1085_v36  ;;  %v1179_v36 = vld [vmem:[#allocation2 + $0x49] sm:$0xff] }
 0x1ef   : > { %v2800_v43 = vpop.f32.mrf.mxu1  ;;  %v5554_v44 = vpop.f32.mrf.mxu0  ;;  %v2041_v14 = vpack.c.b16 %v2010_v46, %v2009_v53  ;;  %v1212_v46 = vpack.c.bf16 %v1180_v51, %v1180_v51  ;;  %v1002_v51 = vld [vmem:[#allocation2 + $0xf1] sm:$0xff] }
 0x1f0   : > { %v2801_v13 = vadd.f32 %v5423_v6, %v2800_v43  ;;  %6285 = vst [vmem:[#allocation30_spill] sm:$0xff] %v5554_v44  ;;  %v1001_v43 = vld [vmem:[#allocation2 + $0xe1] sm:$0xff] }
 0x1f1   : > { %v1033_v3 = vpack.c.bf16 %v1001_v43, %v1001_v43  ;;  %v4702_v43 = vld [vmem:[#allocation9 + $0x1a8] sm:$0xff]  ;;  %v2012_v53 = vunpack.c.l.b16 %v1212_v46  ;;  %v1034_v46 = vpack.c.bf16 %v1002_v51, %v1002_v51 }
 0x1f2   : > { %3099 = vmatmul.bf16.gmra.mxu0 %v1672_v22  ;;  %v5545_v1 = vadd.f32 %v2889_v48, %v2801_v13  ;;  %3207 = vmatmul.bf16.gmra.mxu2 %v5541_v60  ;;  %v1821_v48 = vunpack.c.l.b16 %v1084_v41 }
 0x1f3   : > { %v1738_v15 = vunpack.c.l.b16 %v1033_v3  ;;  %3285 = vmatpush.bf16.msra.mxu3 %v4702_v43  ;;  %v1003_v3 = vld [vmem:[#allocation2 + $0xf9] sm:$0xff]  ;;  %v1182_v43 = vld [vmem:[#allocation2 + $0x69] sm:$0xff] }
 0x1f4   : > { %6283 = vst [vmem:[#allocation28_spill] sm:$0xff] %v5545_v1 }
 0x1f5   : > { %v2892_v10 = vpop.f32.mrf.mxu2 }
 0x1f7   : > { %v2803_v18 = vpop.f32.mrf.mxu1  ;;  %v5562_v56 = vpop.f32.mrf.mxu0 }
 0x1f8   : > { %v2804_v27 = vadd.f32 %v5423_v6, %v2803_v18  ;;  %v1054_v18 = vld [vmem:[#allocation2 + $0x62] sm:$0xff]  ;;  %6287 = vst [vmem:[#allocation32_spill] sm:$0xff] %v5562_v56 }
 0x1fa   : > { %2940 = vmatmul.bf16.gmra.mxu3 %v1849_v58  ;;  %3148 = vmatmul.bf16.gmra.mxu1 %v5549_v32  ;;  %v5552_v37 = vadd.f32 %v2892_v10, %v2804_v27  ;;  %v5557_v58 = vpack.c.b16 %v1822_v49, %v1821_v48  ;;  %v1032_v10 = vpack.c.bf16 %v1000_v55, %v1000_v55 }
 0x1fb   : > { %v1086_v48 = vpack.c.bf16 %v1054_v18, %v1054_v18  ;;  %v1087_v49 = vpack.c.bf16 %v1055_v23, %v1055_v23 }
 0x1fc   : > { %6284 = vst [vmem:[#allocation29_spill] sm:$0xff] %v5552_v37  ;;  %v1737_v27 = vunpack.c.l.b16 %v1032_v10 }
 0x1fd   : > { %v2894_v22 = vpop.f32.mrf.mxu2  ;;  %v1824_v55 = vunpack.c.l.b16 %v1087_v49 }
 0x1fe   : > { %v5566_v26 = vpack.c.b16 %v1738_v15, %v1737_v27 }
 0x1ff   : > { %v2805_v13 = vpop.f32.mrf.mxu1  ;;  %v5573_v18 = vpop.f32.mrf.mxu0 }
 0x200   : > { %v2806_v19 = vadd.f32 %v5423_v6, %v2805_v13  ;;  %v1823_v13 = vunpack.c.l.b16 %v1086_v48  ;;  %6288 = vst [vmem:[#allocation33_spill] sm:$0xff] %v5573_v18  ;;  %v4718_v48 = vld [vmem:[#allocation9 + $0x228] sm:$0xff] }
 0x201   : > { %3463 = vmatpush.bf16.msra.mxu1 %v4718_v48 }
 0x202   : > { %3380 = vmatmul.bf16.vlgmr.msra.gmra.mxu0 %v2041_v14  ;;  %v5559_v8 = vadd.f32 %v2894_v22, %v2806_v19  ;;  %3212 = vmatmul.bf16.gmra.mxu2 %v5557_v58  ;;  %v1211_v22 = vpack.c.bf16 %v1179_v36, %v1179_v36  ;;  %v1035_v36 = vpack.c.bf16 %v1003_v3, %v1003_v3 }
 0x203   : > { %v5577_v44 = vpack.c.b16 %v1824_v55, %v1823_v13  ;;  %v1214_v13 = vpack.c.bf16 %v1182_v43, %v1182_v43  ;;  %v1088_v3 = vpack.c.bf16 %v1056_v61, %v1056_v61  ;;  %v1004_v43 = vld [vmem:[#allocation2 + $0x109] sm:$0xff] }
 0x204   : > { %6286 = vst [vmem:[#allocation31_spill] sm:$0xff] %v5559_v8  ;;  %v2011_v15 = vunpack.c.l.b16 %v1211_v22  ;;  %v1740_v49 = vunpack.c.l.b16 %v1035_v36 }
 0x205   : > { %v2897_v16 = vpop.f32.mrf.mxu2  ;;  %v2014_v48 = vunpack.c.l.b16 %v1214_v13 }
 0x206   : > { %v2042_v56 = vpack.c.b16 %v2012_v53, %v2011_v15  ;;  %v1089_v15 = vpack.c.bf16 %v1057_v24, %v1057_v24 }
 0x207   : > { %v5564_v41 = vpop.f32.mrf.mxu1  ;;  %v5587_v36 = vpop.f32.mrf.mxu0 }
 0x208   : > { %6291 = vst [vmem:[#allocation36_spill] sm:$0xff] %v5587_v36 }
 0x20a   : > { %2945 = vmatmul.bf16.gmra.mxu3 %v5541_v60  ;;  %3153 = vmatmul.bf16.gmra.mxu1 %v5566_v26 }
 0x20d   : > { %v2808_v19 = vpop.f32.mrf.mxu3  ;;  %v2899_v14 = vpop.f32.mrf.mxu2 }
 0x20e   : > { %v2809_v10 = vadd.f32 %v5423_v6, %v2808_v19 }
 0x20f   : > { %v5571_v27 = vpop.f32.mrf.mxu1  ;;  %v5599_v13 = vpop.f32.mrf.mxu0 }
 0x210   : > { %v5575_v23 = vadd.f32 %v2897_v16, %v2809_v10  ;;  %v1739_v16 = vunpack.c.l.b16 %v1034_v46  ;;  %v1181_v10 = vld [vmem:[#allocation2 + $0x61] sm:$0xff]  ;;  %v1826_v46 = vunpack.c.l.b16 %v1089_v15  ;;  %6293 = vst [vmem:[#allocation38_spill] sm:$0xff] %v5599_v13 }
 0x211   : > { %v1213_v51 = vpack.c.bf16 %v1181_v10, %v1181_v10 }
 0x212   : > { %6289 = vst [vmem:[#allocation34_spill] sm:$0xff] %v5575_v23  ;;  %3385 = vmatmul.bf16.gmra.mxu0 %v2042_v56  ;;  %3217 = vmatmul.bf16.gmra.mxu2 %v5577_v44  ;;  %v5585_v56 = vpack.c.b16 %v1740_v49, %v1739_v16  ;;  %v1036_v16 = vpack.c.bf16 %v1004_v43, %v1004_v43  ;;  %v1059_v23 = vld [vmem:[#allocation2 + $0x9a] sm:$0xff] }
 0x213   : > { %v2013_v4 = vunpack.c.l.b16 %v1213_v51  ;;  %v1184_v51 = vld [vmem:[#allocation2 + $0x81] sm:$0xff] }
 0x214   : > { %v1216_v43 = vpack.c.bf16 %v1184_v51, %v1184_v51  ;;  %v1006_v51 = vld [vmem:[#allocation2 + $0x121] sm:$0xff] }
 0x215   : > { %v2810_v22 = vpop.f32.mrf.mxu3  ;;  %v2902_v19 = vpop.f32.mrf.mxu2  ;;  %v2043_v24 = vpack.c.b16 %v2014_v48, %v2013_v4 }
 0x216   : > { %v2811_v18 = vadd.f32 %v5423_v6, %v2810_v22  ;;  %v1825_v22 = vunpack.c.l.b16 %v1088_v3  ;;  %v1741_v3 = vunpack.c.l.b16 %v1036_v16  ;;  %v4701_v16 = vld [vmem:[#allocation9 + $0x1a0] sm:$0xff] }
 0x217   : > { %v5581_v53 = vpop.f32.mrf.mxu1  ;;  %3286 = vmatpush.bf16.msra.mxu3 %v4701_v16 }
 0x218   : > { %v5583_v55 = vadd.f32 %v2899_v14, %v2811_v18  ;;  %v1005_v14 = vld [vmem:[#allocation2 + $0x111] sm:$0xff]  ;;  %v5596_v36 = vpack.c.b16 %v1826_v46, %v1825_v22 }
 0x219   : > { %v1037_v10 = vpack.c.bf16 %v1005_v14, %v1005_v14 }
 0x21a   : > { %6290 = vst [vmem:[#allocation35_spill] sm:$0xff] %v5583_v55  ;;  %2950 = vmatmul.bf16.gmra.mxu3 %v5557_v58  ;;  %3158 = vmatmul.bf16.gmra.mxu1 %v5585_v56 }
 0x21b   : > { %v1742_v15 = vunpack.c.l.b16 %v1037_v10  ;;  %v2016_v10 = vunpack.c.l.b16 %v1216_v43  ;;  %v1038_v43 = vpack.c.bf16 %v1006_v51, %v1006_v51 }
 0x21d   : > { %v2813_v30 = vpop.f32.mrf.mxu3  ;;  %v2904_v39 = vpop.f32.mrf.mxu2  ;;  %v5606_v46 = vpack.c.b16 %v1742_v15, %v1741_v3  ;;  %v1743_v16 = vunpack.c.l.b16 %v1038_v43 }
 0x21e   : > { %v2814_v18 = vadd.f32 %v5423_v6, %v2813_v30  ;;  %v1058_v30 = vld [vmem:[#allocation2 + $0x92] sm:$0xff] }
 0x21f   : > { %v5592_v49 = vpop.f32.mrf.mxu1  ;;  %v1090_v14 = vpack.c.bf16 %v1058_v30, %v1058_v30 }
 0x220   : > { %v5594_v61 = vadd.f32 %v2902_v19, %v2814_v18  ;;  %v1183_v19 = vld [vmem:[#allocation2 + $0x79] sm:$0xff]  ;;  %v1091_v18 = vpack.c.bf16 %v1059_v23, %v1059_v23 }
 0x221   : > { %v1827_v13 = vunpack.c.l.b16 %v1090_v14  ;;  %v5615_v23 = vld [vmem:[%s6255_s4] ss:$0 sm:$0xff] }
 0x222   : > { %6292 = vst [vmem:[#allocation37_spill] sm:$0xff] %v5594_v61  ;;  %3390 = vmatmul.bf16.gmra.mxu0 %v2043_v24  ;;  %3222 = vmatmul.bf16.gmra.mxu2 %v5596_v36  ;;  %v1215_v24 = vpack.c.bf16 %v1183_v19, %v1183_v19  ;;  %v1828_v61 = vunpack.c.l.b16 %v1091_v18 }
 0x224   : > { %v5622_v18 = vpack.c.b16 %v1828_v61, %v1827_v13 }
 0x225   : > { %v2815_v2 = vpop.f32.mrf.mxu3  ;;  %v2907_v55 = vpop.f32.mrf.mxu2 }
 0x226   : > { %v2816_v4 = vadd.f32 %v5423_v6, %v2815_v2  ;;  %v2015_v2 = vunpack.c.l.b16 %v1215_v24  ;;  %v4717_v24 = vld [vmem:[#allocation9 + $0x220] sm:$0xff] }
 0x227   : > { %v5602_v48 = vpop.f32.mrf.mxu1  ;;  %3464 = vmatpush.bf16.msra.mxu1 %v4717_v24 }
 0x228   : > { %v5604_v22 = vadd.f32 %v2904_v39, %v2816_v4  ;;  %v1007_v39 = vld [vmem:[#allocation2 + $0x129] sm:$0xff]  ;;  %v5610_v4 = vpop.f32.mrf.mxu0  ;;  %v2044_v30 = vpack.c.b16 %v2016_v10, %v2015_v2 }
 0x229   : > { %6295 = vst [vmem:[#allocation40_spill] sm:$0xff] %v5610_v4  ;;  %v1039_v14 = vpack.c.bf16 %v1007_v39, %v1007_v39 }
 0x22a   : > { %6294 = vst [vmem:[#allocation39_spill] sm:$0xff] %v5604_v22  ;;  %2955 = vmatmul.bf16.gmra.mxu3 %v5577_v44  ;;  %3163 = vmatmul.bf16.gmra.mxu1 %v5606_v46  ;;  %v1186_v22 = vld [vmem:[#allocation2 + $0x99] sm:$0xff] }
 0x22b   : > { %v1744_v4 = vunpack.c.l.b16 %v1039_v14  ;;  %v1218_v2 = vpack.c.bf16 %v1186_v22, %v1186_v22 }
 0x22d   : > { %v2818_v6 = vpop.f32.mrf.mxu3  ;;  %v2909_v8 = vpop.f32.mrf.mxu2  ;;  %v5632_v13 = vpack.c.b16 %v1744_v4, %v1743_v16  ;;  %v1041_v16 = vpack.c.bf16 %v1009_v31, %v1009_v31 }
 0x22e   : > { %v2819_v3 = vadd.f32 %v5615_v23, %v2818_v6  ;;  %v1060_v6 = vld [vmem:[#allocation2 + $0xaa] sm:$0xff] }
 0x22f   : > { %v5618_v15 = vpop.f32.mrf.mxu1  ;;  %v1092_v39 = vpack.c.bf16 %v1060_v6, %v1060_v6 }
 0x230   : > { %v5620_v19 = vadd.f32 %v2907_v55, %v2819_v3  ;;  %v5628_v51 = vpop.f32.mrf.mxu0  ;;  %v1093_v3 = vpack.c.bf16 %v1061_v35, %v1061_v35 }
 0x231   : > { %6297 = vst [vmem:[#allocation42_spill] sm:$0xff] %v5628_v51  ;;  %v1829_v43 = vunpack.c.l.b16 %v1092_v39  ;;  %v1746_v39 = vunpack.c.l.b16 %v1041_v16 }
 0x232   : > { %6296 = vst [vmem:[#allocation41_spill] sm:$0xff] %v5620_v19  ;;  %3395 = vmatmul.bf16.gmra.mxu0 %v2044_v30  ;;  %3227 = vmatmul.bf16.gmra.mxu2 %v5622_v18  ;;  %v2018_v30 = vunpack.c.l.b16 %v1218_v2  ;;  %v1830_v14 = vunpack.c.l.b16 %v1093_v3  ;;  %v1008_v19 = vld [vmem:[#allocation2 + $0x139] sm:$0xff] }
 0x233   : > { %v1040_v35 = vpack.c.bf16 %v1008_v19, %v1008_v19 }
 0x234   : > { %v5642_v6 = vpack.c.b16 %v1830_v14, %v1829_v43  ;;  %v4700_v43 = vld [vmem:[#allocation9 + $0x198] sm:$0xff] }
 0x235   : > { %v2820_v37 = vpop.f32.mrf.mxu3  ;;  %v2912_v1 = vpop.f32.mrf.mxu2  ;;  %v1745_v2 = vunpack.c.l.b16 %v1040_v35  ;;  %3287 = vmatpush.bf16.msra.mxu3 %v4700_v43  ;;  %v4716_v43 = vld [vmem:[#allocation9 + $0x218] sm:$0xff] }
 0x236   : > { %v2821_v10 = vadd.f32 %v5615_v23, %v2820_v37  ;;  %3465 = vmatpush.bf16.msra.mxu1 %v4716_v43 }
 0x237   : > { %v5626_v55 = vpop.f32.mrf.mxu1  ;;  %v5652_v31 = vpack.c.b16 %v1746_v39, %v1745_v2 }
 0x238   : > { %v5630_v61 = vadd.f32 %v2909_v8, %v2821_v10  ;;  %v2045_v8 = vpack.c.b16 %v2018_v30, %v5520_v12  ;;  %v5644_v10 = vpop.f32.mrf.mxu0  ;;  %v1095_v30 = vpack.c.bf16 %v1063_v34, %v1063_v34 }
 0x239   : > { %6300 = vst [vmem:[#allocation45_spill] sm:$0xff] %v5644_v10  ;;  %v1011_v10 = vld [vmem:[#allocation2 + $0x159] sm:$0xff] }
 0x23a   : > { %6298 = vst [vmem:[#allocation43_spill] sm:$0xff] %v5630_v61  ;;  %2960 = vmatmul.bf16.gmra.mxu3 %v5596_v36  ;;  %3168 = vmatmul.bf16.gmra.mxu1 %v5632_v13  ;;  %v1043_v39 = vpack.c.bf16 %v1011_v10, %v1011_v10 }
 0x23d   : > { %v2823_v24 = vpop.f32.mrf.mxu3  ;;  %v2914_v37 = vpop.f32.mrf.mxu2 }
 0x23e   : > { %v2824_v22 = vadd.f32 %v5615_v23, %v2823_v24  ;;  %v1062_v24 = vld [vmem:[#allocation2 + $0xc2] sm:$0xff] }
 0x23f   : > { %v5637_v51 = vpop.f32.mrf.mxu1  ;;  %v1094_v19 = vpack.c.bf16 %v1062_v24, %v1062_v24 }
 0x240   : > { %v5640_v4 = vadd.f32 %v2912_v1, %v2824_v22  ;;  %v5656_v14 = vpop.f32.mrf.mxu0 }
 0x241   : > { %6303 = vst [vmem:[#allocation48_spill] sm:$0xff] %v5656_v14  ;;  %v1831_v22 = vunpack.c.l.b16 %v1094_v19 }
 0x242   : > { %6299 = vst [vmem:[#allocation44_spill] sm:$0xff] %v5640_v4  ;;  %3400 = vmatmul.bf16.gmra.mxu0 %v2045_v8  ;;  %3232 = vmatmul.bf16.gmra.mxu2 %v5642_v6  ;;  %v1832_v8 = vunpack.c.l.b16 %v1095_v30  ;;  %v1748_v30 = vunpack.c.l.b16 %v1043_v39  ;;  %v1065_v4 = vld [vmem:[#allocation2 + $0xe2] sm:$0xff] }
 0x244   : > { %v5663_v24 = vpack.c.b16 %v1832_v8, %v1831_v22 }
 0x245   : > { %v2825_v3 = vpop.f32.mrf.mxu3  ;;  %v2917_v61 = vpop.f32.mrf.mxu2 }
 0x246   : > { %v2826_v63 = vadd.f32 %v5615_v23, %v2825_v3  ;;  %v1010_v3 = vld [vmem:[#allocation2 + $0x151] sm:$0xff] }
 0x247   : > { %v5648_v12 = vpop.f32.mrf.mxu1  ;;  %v1042_v34 = vpack.c.bf16 %v1010_v3, %v1010_v3 }
 0x248   : > { %6301 = vst [vmem:[#allocation46_spill] sm:$0xff] %v5648_v12  ;;  %v5650_v1 = vadd.f32 %v2914_v37, %v2826_v63 }
 0x249   : > { %v1747_v19 = vunpack.c.l.b16 %v1042_v34 }
 0x24a   : > { %6302 = vst [vmem:[#allocation47_spill] sm:$0xff] %v5650_v1  ;;  %2965 = vmatmul.bf16.gmra.mxu3 %v5622_v18  ;;  %3173 = vmatmul.bf16.gmra.mxu1 %v5652_v31  ;;  %v1064_v1 = vld [vmem:[#allocation2 + $0xda] sm:$0xff] }
 0x24b   : > { %v5672_v10 = vpack.c.b16 %v1748_v30, %v1747_v19  ;;  %v1096_v22 = vpack.c.bf16 %v1064_v1, %v1064_v1 }
 0x24d   : > { %v2828_v35 = vpop.f32.mrf.mxu3  ;;  %v2919_v16 = vpop.f32.mrf.mxu2 }
 0x24e   : > { %v2829_v63 = vadd.f32 %v5615_v23, %v2828_v35  ;;  %v5667_v35 = vpop.f32.mrf.mxu0 }
 0x24f   : > { %v5659_v37 = vpop.f32.mrf.mxu1  ;;  %6306 = vst [vmem:[#allocation51_spill] sm:$0xff] %v5667_v35  ;;  %v1012_v35 = vld [vmem:[#allocation2 + $0x169] sm:$0xff] }
 0x250   : > { %6304 = vst [vmem:[#allocation49_spill] sm:$0xff] %v5659_v37  ;;  %v5661_v2 = vadd.f32 %v2917_v61, %v2829_v63  ;;  %v1833_v63 = vunpack.c.l.b16 %v1096_v22 }
 0x252   : > { %6305 = vst [vmem:[#allocation50_spill] sm:$0xff] %v5661_v2  ;;  %3405 = vmatmul.bf16.gmra.mxu0 %v5535_v29  ;;  %3237 = vmatmul.bf16.gmra.mxu2 %v5663_v24  ;;  %v1097_v29 = vpack.c.bf16 %v1065_v4, %v1065_v4  ;;  %v1013_v2 = vld [vmem:[#allocation2 + $0x171] sm:$0xff]  ;;  %v1044_v4 = vpack.c.bf16 %v1012_v35, %v1012_v35 }
 0x253   : > { %v1045_v1 = vpack.c.bf16 %v1013_v2, %v1013_v2  ;;  %v4713_v2 = vld [vmem:[#allocation9 + $0x200] sm:$0xff] }
 0x254   : > { %v1834_v34 = vunpack.c.l.b16 %v1097_v29  ;;  %v1749_v29 = vunpack.c.l.b16 %v1044_v4 }
 0x255   : > { %v2830_v14 = vpop.f32.mrf.mxu3  ;;  %v2922_v12 = vpop.f32.mrf.mxu2 }
 0x256   : > { %v2831_v61 = vadd.f32 %v5615_v23, %v2830_v14  ;;  %v5679_v43 = vpop.f32.mrf.mxu0  ;;  %v5683_v30 = vpack.c.b16 %v1834_v34, %v1833_v63 }
 0x257   : > { %v5674_v8 = vpop.f32.mrf.mxu1  ;;  %6309 = vst [vmem:[#allocation54_spill] sm:$0xff] %v5679_v43  ;;  %v1066_v43 = vld [vmem:[#allocation2 + $0xf2] sm:$0xff] }
 0x258   : > { %v5670_v3 = vadd.f32 %v2919_v16, %v2831_v61  ;;  %6308 = vst [vmem:[#allocation53_spill] sm:$0xff] %v5674_v8  ;;  %v4715_v16 = vld [vmem:[#allocation9 + $0x210] sm:$0xff]  ;;  %v4714_v61 = vld [vmem:[#allocation9 + $0x208] sm:$0xff]  ;;  %v1750_v8 = vunpack.c.l.b16 %v1045_v1 }
 0x259   : > { %3466 = vmatpush.bf16.msra.mxu1 %v4715_v16 }
 0x25a   : > { %6307 = vst [vmem:[#allocation52_spill] sm:$0xff] %v5670_v3  ;;  %2970 = vmatmul.bf16.gmra.mxu3 %v5642_v6  ;;  %3178 = vmatmul.bf16.gmra.mxu1 %v5672_v10  ;;  %v5692_v34 = vpack.c.b16 %v1750_v8, %v1749_v29 }
 0x25d   : > { %v2833_v39 = vpop.f32.mrf.mxu3  ;;  %v2924_v37 = vpop.f32.mrf.mxu2  ;;  %3467 = vmatpush.bf16.msra.mxu1 %v4714_v61  ;;  %v4699_v61 = vld [vmem:[#allocation9 + $0x190] sm:$0xff] }
 0x25e   : > { %v2834_v14 = vadd.f32 %v5615_v23, %v2833_v39  ;;  %v5694_v16 = vpop.f32.mrf.mxu0  ;;  %3288 = vmatpush.bf16.msra.mxu3 %v4699_v61 }
 0x25f   : > { %v5687_v22 = vpop.f32.mrf.mxu1  ;;  %6312 = vst [vmem:[#allocation57_spill] sm:$0xff] %v5694_v16 }
 0x260   : > { %v5681_v19 = vadd.f32 %v2922_v12, %v2834_v14  ;;  %6311 = vst [vmem:[#allocation56_spill] sm:$0xff] %v5687_v22  ;;  %v1067_v12 = vld [vmem:[#allocation2 + $0xfa] sm:$0xff] }
 0x261   : > { %v1099_v14 = vpack.c.bf16 %v1067_v12, %v1067_v12  ;;  %3468 = vmatpush.bf16.msra.mxu1 %v4713_v2 }
 0x262   : > { %6310 = vst [vmem:[#allocation55_spill] sm:$0xff] %v5681_v19  ;;  %3410 = vmatmul.bf16.gmra.mxu0 %v5549_v32  ;;  %3242 = vmatmul.bf16.gmra.mxu2 %v5683_v30  ;;  %v1098_v32 = vpack.c.bf16 %v1066_v43, %v1066_v43  ;;  %v1014_v19 = vld [vmem:[#allocation2 + $0x181] sm:$0xff]  ;;  %v2761_v43 = vadd.f32 %v5615_v23, %v5434_v9 }
 0x263   : > { %v1836_v1 = vunpack.c.l.b16 %v1099_v14 }
 0x264   : > { %v1835_v4 = vunpack.c.l.b16 %v1098_v32  ;;  %v2850_v14 = vadd.f32 %v5432_v7, %v2761_v43 }
 0x265   : > { %v2835_v39 = vpop.f32.mrf.mxu3  ;;  %v3203_v3 = vpop.f32.mrf.mxu2 }
 0x266   : > { %v2836_v35 = vadd.f32 %v5615_v23, %v2835_v39  ;;  %v5704_v16 = vpack.c.b16 %v1836_v1, %v1835_v4 }
 0x267   : > { %v5698_v22 = vpop.f32.mrf.mxu1 }
 0x268   : > { %v5690_v63 = vadd.f32 %v2924_v37, %v2836_v35  ;;  %v1015_v37 = vld [vmem:[#allocation2 + $0x189] sm:$0xff]  ;;  %v1046_v35 = vpack.c.bf16 %v1014_v19, %v1014_v19  ;;  %v1069_v19 = vld [vmem:[#allocation2 + $0x112] sm:$0xff] }
 0x269   : > { %v1047_v2 = vpack.c.bf16 %v1015_v37, %v1015_v37 }
 0x26a   : > { %2975 = vmatmul.bf16.gmra.mxu3 %v5663_v24  ;;  %3183 = vmatmul.bf16.gmra.mxu1 %v5692_v34  ;;  %v1751_v9 = vunpack.c.l.b16 %v1046_v35 }
 0x26b   : > { %v1752_v23 = vunpack.c.l.b16 %v1047_v2 }
 0x26d   : > { %v2936_v39 = vpop.f32.mrf.mxu3  ;;  %v3205_v29 = vpop.f32.mrf.mxu2  ;;  %v5717_v1 = vpack.c.b16 %v1752_v23, %v1751_v9 }
 0x26e   : > { %v2937_v8 = vadd.f32 %v2936_v39, %v5427_v20  ;;  %v5710_v20 = vpop.f32.mrf.mxu0 }
 0x26f   : > { %6313 = vst [vmem:[#allocation58_spill] sm:$0xff] %v5710_v20  ;;  %v5714_v4 = vpop.f32.mrf.mxu1 }
 0x270   : > { %v3026_v12 = vadd.f32 %v5441_v50, %v2937_v8  ;;  %v1068_v50 = vld [vmem:[#allocation2 + $0x10a] sm:$0xff]  ;;  %v1101_v8 = vpack.c.bf16 %v1069_v19, %v1069_v19  ;;  %v1070_v19 = vld [vmem:[#allocation2 + $0x122] sm:$0xff] }
 0x272   : > { %v3115_v32 = vadd.f32 %v5564_v41, %v3026_v12  ;;  %3415 = vmatmul.bf16.gmra.mxu0 %v5566_v26  ;;  %3247 = vmatmul.bf16.gmra.mxu2 %v5704_v16  ;;  %v1100_v26 = vpack.c.bf16 %v1068_v50, %v1068_v50  ;;  %v1838_v35 = vunpack.c.l.b16 %v1101_v8 }
 0x274   : > { %v5712_v61 = vadd.f32 %v3203_v3, %v3115_v32  ;;  %v1837_v43 = vunpack.c.l.b16 %v1100_v26  ;;  %v1102_v26 = vpack.c.bf16 %v1070_v19, %v1070_v19  ;;  %v1072_v19 = vld [vmem:[#allocation2 + $0x13a] sm:$0xff] }
 0x275   : > { %v2938_v39 = vpop.f32.mrf.mxu3  ;;  %v3208_v12 = vpop.f32.mrf.mxu2 }
 0x276   : > { %v2939_v37 = vadd.f32 %v2938_v39, %v2850_v14  ;;  %v5724_v32 = vpop.f32.mrf.mxu0  ;;  %v5728_v9 = vpack.c.b16 %v1838_v35, %v1837_v43  ;;  %v4698_v35 = vld [vmem:[#allocation9 + $0x188] sm:$0xff] }
 0x277   : > { %6314 = vst [vmem:[#allocation59_spill] sm:$0xff] %v5724_v32  ;;  %v5730_v23 = vpop.f32.mrf.mxu1  ;;  %3289 = vmatpush.bf16.msra.mxu3 %v4698_v35 }
 0x278   : > { %v3028_v41 = vadd.f32 %v5446_v11, %v2939_v37  ;;  %v1071_v37 = vld [vmem:[#allocation2 + $0x12a] sm:$0xff] }
 0x279   : > { %v1103_v8 = vpack.c.bf16 %v1071_v37, %v1071_v37 }
 0x27a   : > { %v3117_v7 = vadd.f32 %v5571_v27, %v3028_v41  ;;  %2980 = vmatmul.bf16.gmra.mxu3 %v5683_v30  ;;  %3188 = vmatmul.bf16.gmra.mxu1 %v5717_v1 }
 0x27b   : > { %v1840_v43 = vunpack.c.l.b16 %v1103_v8 }
 0x27c   : > { %v5722_v3 = vadd.f32 %v3205_v29, %v3117_v7  ;;  %v1839_v7 = vunpack.c.l.b16 %v1102_v26 }
 0x27d   : > { %v2941_v2 = vpop.f32.mrf.mxu3  ;;  %v3210_v29 = vpop.f32.mrf.mxu2 }
 0x27e   : > { %v2942_v11 = vadd.f32 %v2941_v2, %v5439_v38  ;;  %v5738_v41 = vpop.f32.mrf.mxu0 }
 0x27f   : > { %6315 = vst [vmem:[#allocation60_spill] sm:$0xff] %v5738_v41  ;;  %v6326_v41 = vld [vmem:[#allocation28_spill] sm:$0xff] }
 0x280   : > { %v3031_v14 = vadd.f32 %v5455_v33, %v2942_v11 }
 0x282   : > { %v3120_v27 = vadd.f32 %v5581_v53, %v3031_v14  ;;  %3420 = vmatmul.bf16.gmra.mxu0 %v5585_v56  ;;  %3252 = vmatmul.bf16.gmra.mxu2 %v5728_v9  ;;  %v5744_v56 = vpop.f32.mrf.mxu1  ;;  %v5750_v14 = vpack.c.b16 %v1840_v43, %v1839_v7 }
 0x284   : > { %v5735_v39 = vadd.f32 %v3208_v12, %v3120_v27 }
 0x285   : > { %v2943_v50 = vpop.f32.mrf.mxu3  ;;  %v3213_v2 = vpop.f32.mrf.mxu2 }
 0x286   : > { %v2944_v38 = vadd.f32 %v2943_v50, %v5444_v59 }
 0x288   : > { %v3033_v33 = vadd.f32 %v5460_v45, %v2944_v38 }
 0x28a   : > { %v3122_v53 = vadd.f32 %v5592_v49, %v3033_v33  ;;  %2985 = vmatmul.bf16.gmra.mxu3 %v5704_v16  ;;  %3469 = vmatmul.bf16.vlgmr.msra.gmra.mxu1 %v5541_v60  ;;  %v5752_v49 = vpop.f32.mrf.mxu0  ;;  %v1104_v33 = vpack.c.bf16 %v1072_v19, %v1072_v19 }
 0x28b   : > { %6316 = vst [vmem:[#allocation61_spill] sm:$0xff] %v5752_v49 }
 0x28c   : > { %v5746_v12 = vadd.f32 %v3210_v29, %v3122_v53  ;;  %v5759_v29 = vpop.f32.mrf.mxu1  ;;  %v1841_v53 = vunpack.c.l.b16 %v1104_v33 }
 0x28d   : > { %v2946_v59 = vpop.f32.mrf.mxu3 }
 0x28e   : > { %v2947_v11 = vadd.f32 %v2946_v59, %v5453_v21  ;;  %v1073_v21 = vld [vmem:[#allocation2 + $0x142] sm:$0xff] }
 0x28f   : > { %v1105_v26 = vpack.c.bf16 %v1073_v21, %v1073_v21 }
 0x290   : > { %v3036_v45 = vadd.f32 %v5470_v62, %v2947_v11  ;;  %v3215_v62 = vpop.f32.mrf.mxu2 }
 0x291   : > { %v1842_v7 = vunpack.c.l.b16 %v1105_v26  ;;  %v4697_v26 = vld [vmem:[#allocation9 + $0x180] sm:$0xff] }
 0x292   : > { %v3125_v60 = vadd.f32 %v5602_v48, %v3036_v45  ;;  %3425 = vmatmul.bf16.gmra.mxu0 %v5606_v46  ;;  %3257 = vmatmul.bf16.gmra.mxu2 %v5750_v14  ;;  %v5766_v46 = vpop.f32.mrf.mxu0  ;;  %v1074_v45 = vld [vmem:[#allocation2 + $0x152] sm:$0xff] }
 0x293   : > { %6317 = vst [vmem:[#allocation62_spill] sm:$0xff] %v5766_v46  ;;  %v5774_v59 = vpack.c.b16 %v1842_v7, %v1841_v53  ;;  %v1106_v19 = vpack.c.bf16 %v1074_v45, %v1074_v45  ;;  %3290 = vmatpush.bf16.msra.mxu3 %v4697_v26  ;;  %v1076_v7 = vld [vmem:[#allocation2 + $0x16a] sm:$0xff] }
 0x294   : > { %v5757_v27 = vadd.f32 %v3213_v2, %v3125_v60  ;;  %v5771_v35 = vpop.f32.mrf.mxu1  ;;  %v1075_v60 = vld [vmem:[#allocation2 + $0x15a] sm:$0xff] }
 0x295   : > { %v2948_v50 = vpop.f32.mrf.mxu3  ;;  %v1107_v21 = vpack.c.bf16 %v1075_v60, %v1075_v60 }
 0x296   : > { %v2949_v37 = vadd.f32 %v2948_v50, %v5458_v54 }
 0x297   : > { %v1844_v33 = vunpack.c.l.b16 %v1107_v21  ;;  %v1079_v21 = vld [vmem:[#allocation2 + $0x18a] sm:$0xff] }
 0x298   : > { %v3038_v38 = vadd.f32 %v5475_v17, %v2949_v37 }
 0x29a   : > { %v3127_v48 = vadd.f32 %v5618_v15, %v3038_v38  ;;  %2990 = vmatmul.bf16.gmra.mxu3 %v5728_v9  ;;  %3474 = vmatmul.bf16.gmra.mxu1 %v5557_v58  ;;  %v3218_v15 = vpop.f32.mrf.mxu2  ;;  %v5781_v50 = vpop.f32.mrf.mxu0  ;;  %v1843_v38 = vunpack.c.l.b16 %v1106_v19  ;;  %v1078_v19 = vld [vmem:[#allocation2 + $0x182] sm:$0xff] }
 0x29b   : > { %6318 = vst [vmem:[#allocation63_spill] sm:$0xff] %v5781_v50 }
 0x29c   : > { %v5768_v8 = vadd.f32 %v3215_v62, %v3127_v48  ;;  %v5785_v37 = vpop.f32.mrf.mxu1  ;;  %v5797_v53 = vpack.c.b16 %v1844_v33, %v1843_v38  ;;  %v1111_v38 = vpack.c.bf16 %v1079_v21, %v1079_v21 }
 0x29d   : > { %v2951_v43 = vpop.f32.mrf.mxu3 }
 0x29e   : > { %v2952_v54 = vadd.f32 %v2951_v43, %v5468_v52  ;;  %v1077_v43 = vld [vmem:[#allocation2 + $0x172] sm:$0xff] }
 0x2a0   : > { %v3041_v17 = vadd.f32 %v5485_v40, %v2952_v54 }
 0x2a2   : > { %v3130_v2 = vadd.f32 %v5626_v55, %v3041_v17  ;;  %3430 = vmatmul.bf16.gmra.mxu0 %v5632_v13  ;;  %3262 = vmatmul.bf16.gmra.mxu2 %v5774_v59  ;;  %v3220_v13 = vpop.f32.mrf.mxu2  ;;  %v1108_v17 = vpack.c.bf16 %v1076_v7, %v1076_v7 }
 0x2a4   : > { %v5779_v58 = vadd.f32 %v3218_v15, %v3130_v2  ;;  %v1845_v2 = vunpack.c.l.b16 %v1108_v17 }
 0x2a5   : > { %v2953_v11 = vpop.f32.mrf.mxu3 }
 0x2a6   : > { %v2954_v52 = vadd.f32 %v2953_v11, %v5473_v5 }
 0x2a8   : > { %v3043_v40 = vadd.f32 %v5490_v57, %v2954_v52  ;;  %v5795_v57 = vpop.f32.mrf.mxu0 }
 0x2aa   : > { %v3132_v55 = vadd.f32 %v5637_v51, %v3043_v40  ;;  %2995 = vmatmul.bf16.gmra.mxu3 %v5750_v14  ;;  %3479 = vmatmul.bf16.gmra.mxu1 %v5577_v44  ;;  %v5801_v44 = vpop.f32.mrf.mxu1 }
 0x2ac   : > { %v5790_v62 = vadd.f32 %v3220_v13, %v3132_v55  ;;  %v1110_v13 = vpack.c.bf16 %v1078_v19, %v1078_v19 }
 0x2ad   : > { %v2956_v48 = vpop.f32.mrf.mxu3 }
 0x2ae   : > { %v5793_v5 = vadd.f32 %v2956_v48, %v5483_v28  ;;  %v1109_v28 = vpack.c.bf16 %v1077_v43, %v1077_v43  ;;  %v6319_v43 = vld [vmem:[#allocation20_spill] sm:$0xff] }
 0x2b0   : > { %v5806_v15 = vpop.f32.mrf.mxu0 }
 0x2b2   : > { %3435 = vmatmul.bf16.gmra.mxu0 %v5652_v31  ;;  %3267 = vmatmul.bf16.gmra.mxu2 %v5797_v53  ;;  %v1846_v31 = vunpack.c.l.b16 %v1109_v28  ;;  %v5810_v11 = vpop.f32.mrf.mxu1 }
 0x2b4   : > { %v5815_v52 = vpack.c.b16 %v1846_v31, %v1845_v2  ;;  %v1114_v2 = vld [vmem:[#allocation2 + $0x38] sm:$0xff]  ;;  %v6321_v31 = vld [vmem:[#allocation22_spill] sm:$0xff] }
 0x2b5   : > { %v2958_v51 = vpop.f32.mrf.mxu3 }
 0x2b6   : > { %v5804_v54 = vadd.f32 %v2958_v51, %v5488_v47 }
 0x2b8   : > { %v5819_v47 = vpop.f32.mrf.mxu0 }
 0x2ba   : > { %3000 = vmatmul.bf16.gmra.mxu3 %v5774_v59  ;;  %3484 = vmatmul.bf16.gmra.mxu1 %v5596_v36  ;;  %v5824_v55 = vpop.f32.mrf.mxu1 }
 0x2bd   : > { %v2961_v45 = vpop.f32.mrf.mxu3 }
 0x2be   : > { %v5813_v60 = vadd.f32 %v2961_v45, %v5498_v0  ;;  %v1847_v0 = vunpack.c.l.b16 %v1110_v13 }
 0x2c0   : > { %v5828_v26 = vpop.f32.mrf.mxu0 }
 0x2c2   : > { %3440 = vmatmul.bf16.gmra.mxu0 %v5672_v10  ;;  %3272 = vmatmul.bf16.gmra.mxu2 %v5815_v52  ;;  %v1848_v10 = vunpack.c.l.b16 %v1111_v38 }
 0x2c4   : > { %v5833_v51 = vpack.c.b16 %v1848_v10, %v1847_v0  ;;  %v6323_v10 = vld [vmem:[#allocation24_spill] sm:$0xff] }
 0x2c5   : > { %v2963_v40 = vpop.f32.mrf.mxu3 }
 0x2c6   : > { %v5822_v36 = vadd.f32 %v2963_v40, %v5503_v25  ;;  %v5835_v25 = vpop.f32.mrf.mxu1  ;;  %v1146_v40 = vpack.c.bf16 %v1114_v2, %v1114_v2  ;;  %v6324_v2 = vld [vmem:[#allocation26_spill] sm:$0xff] }
 0x2c8   : > { %v1914_v13 = vunpack.c.l.b16 %v1146_v40 }
 0x2ca   : > { %3005 = vmatmul.bf16.gmra.mxu3 %v5797_v53  ;;  %3489 = vmatmul.bf16.gmra.mxu1 %v5622_v18  ;;  %v5842_v18 = vpop.f32.mrf.mxu0 }
 0x2cd   : > { %v2966_v33 = vpop.f32.mrf.mxu3 }
 0x2ce   : > { %v5831_v48 = vadd.f32 %v2966_v33, %v5513_v42  ;;  %v5846_v42 = vpop.f32.mrf.mxu1 }
 0x2cf   : > { %6320 = vst [vmem:[#allocation20_spill] sm:$0xff] %v5846_v42  ;;  %v4736_v42 = vld [vmem:[#allocation12 + $0x38] sm:$0xff] }
 0x2d0   : > { %3993 = vmatpush.bf16.msrb.mxu3 %v4736_v42 }
 0x2d2   : > { %3445 = vmatmul.bf16.gmra.mxu0 %v5692_v34  ;;  %3277 = vmatmul.bf16.gmra.mxu2 %v5833_v51  ;;  %v1113_v34 = vld [vmem:[#allocation2 + $0x30] sm:$0xff]  ;;  %v5851_v19 = vpop.f32.mrf.mxu0 }
 0x2d3   : > { %v1145_v21 = vpack.c.bf16 %v1113_v34, %v1113_v34 }
 0x2d5   : > { %v2968_v7 = vpop.f32.mrf.mxu3  ;;  %v1913_v33 = vunpack.c.l.b16 %v1145_v21 }
 0x2d6   : > { %v5840_v17 = vadd.f32 %v2968_v7, %v6319_v43  ;;  %v5854_v38 = vpop.f32.mrf.mxu1 }
 0x2d7   : > { %6322 = vst [vmem:[#allocation22_spill] sm:$0xff] %v5854_v38  ;;  %v1945_v7 = vpack.c.b16 %v1914_v13, %v1913_v33  ;;  %v1118_v33 = vld [vmem:[#allocation2 + $0x68] sm:$0xff] }
 0x2d8   : > { %v4728_v38 = vld [vmem:[#allocation10 + $0x38] sm:$0xff] }
 0x2d9   : > { %3789 = vmatpush.bf16.msrb.mxu2 %v4728_v38 }
 0x2da   : > { %3010 = vmatmul.bf16.gmra.mxu3 %v5815_v52  ;;  %3494 = vmatmul.bf16.gmra.mxu1 %v5642_v6 }
 0x2dd   : > { %v2971_v28 = vpop.f32.mrf.mxu3 }
 0x2de   : > { %v5849_v45 = vadd.f32 %v2971_v28, %v6321_v31  ;;  %v1116_v28 = vld [vmem:[#allocation2 + $0x50] sm:$0xff]  ;;  %v5863_v50 = vpop.f32.mrf.mxu1 }
 0x2df   : > { %6325 = vst [vmem:[#allocation24_spill] sm:$0xff] %v5863_v50  ;;  %v1148_v34 = vpack.c.bf16 %v1116_v28, %v1116_v28  ;;  %v1150_v28 = vpack.c.bf16 %v1118_v33, %v1118_v33  ;;  %v1119_v33 = vld [vmem:[#allocation2 + $0x78] sm:$0xff] }
 0x2e0   : > { %v6333_v50 = vld [vmem:[#allocation35_spill] sm:$0xff] }
 0x2e1   : > { %v1916_v46 = vunpack.c.l.b16 %v1148_v34  ;;  %v1918_v32 = vunpack.c.l.b16 %v1150_v28 }
 0x2e2   : > { %3450 = vmatmul.bf16.gmra.mxu0 %v5717_v1  ;;  %v1115_v1 = vld [vmem:[#allocation2 + $0x48] sm:$0xff] }
 0x2e3   : > { %v1147_v40 = vpack.c.bf16 %v1115_v1, %v1115_v1 }
 0x2e5   : > { %v2973_v0 = vpop.f32.mrf.mxu3  ;;  %v1915_v21 = vunpack.c.l.b16 %v1147_v40 }
 0x2e6   : > { %v5857_v6 = vadd.f32 %v2973_v0, %v6323_v10  ;;  %v5868_v10 = vpop.f32.mrf.mxu1 }
 0x2e7   : > { %v1946_v13 = vpack.c.b16 %v1916_v46, %v1915_v21  ;;  %6327 = vst [vmem:[#allocation26_spill] sm:$0xff] %v5868_v10 }
 0x2ea   : > { %3291 = vmatmul.bf16.vlgmr.msra.gmra.mxu3 %v1945_v7  ;;  %3499 = vmatmul.bf16.gmra.mxu1 %v5663_v24  ;;  %v6328_v7 = vld [vmem:[#allocation29_spill] sm:$0xff] }
 0x2ed   : > { %v2976_v43 = vpop.f32.mrf.mxu3 }
 0x2ee   : > { %v5861_v31 = vadd.f32 %v2976_v43, %v6324_v2  ;;  %v1117_v2 = vld [vmem:[#allocation2 + $0x60] sm:$0xff]  ;;  %v5874_v34 = vpop.f32.mrf.mxu1 }
 0x2ef   : > { %v1149_v1 = vpack.c.bf16 %v1117_v2, %v1117_v2  ;;  %6329 = vst [vmem:[#allocation28_spill] sm:$0xff] %v5874_v34  ;;  %v1151_v34 = vpack.c.bf16 %v1119_v33, %v1119_v33 }
 0x2f1   : > { %v1917_v46 = vunpack.c.l.b16 %v1149_v1  ;;  %v1919_v1 = vunpack.c.l.b16 %v1151_v34 }
 0x2f3   : > { %v1947_v21 = vpack.c.b16 %v1918_v32, %v1917_v46  ;;  %v1122_v46 = vld [vmem:[#allocation2 + $0x98] sm:$0xff] }
 0x2f5   : > { %v2978_v49 = vpop.f32.mrf.mxu3 }
 0x2f6   : > { %v5866_v0 = vadd.f32 %v2978_v49, %v6326_v41  ;;  %v6330_v49 = vld [vmem:[#allocation31_spill] sm:$0xff] }
 0x2fa   : > { %3296 = vmatmul.bf16.gmra.mxu3 %v1946_v13  ;;  %3504 = vmatmul.bf16.gmra.mxu1 %v5683_v30  ;;  %v5880_v30 = vpop.f32.mrf.mxu1 }
 0x2fb   : > { %6331 = vst [vmem:[#allocation29_spill] sm:$0xff] %v5880_v30 }
 0x2fd   : > { %v2981_v24 = vpop.f32.mrf.mxu3 }
 0x2fe   : > { %v5872_v43 = vadd.f32 %v2981_v24, %v6328_v7  ;;  %v1120_v24 = vld [vmem:[#allocation2 + $0x80] sm:$0xff]  ;;  %v6332_v7 = vld [vmem:[#allocation34_spill] sm:$0xff] }
 0x2ff   : > { %v1152_v2 = vpack.c.bf16 %v1120_v24, %v1120_v24  ;;  %v1154_v24 = vpack.c.bf16 %v1122_v46, %v1122_v46  ;;  %v1123_v46 = vld [vmem:[#allocation2 + $0xa8] sm:$0xff] }
 0x301   : > { %v1920_v28 = vunpack.c.l.b16 %v1152_v2  ;;  %v1922_v30 = vunpack.c.l.b16 %v1154_v24 }
 0x302   : > { %v5888_v32 = vpop.f32.mrf.mxu1 }
 0x303   : > { %6334 = vst [vmem:[#allocation31_spill] sm:$0xff] %v5888_v32 }
 0x305   : > { %v2983_v41 = vpop.f32.mrf.mxu3 }
 0x306   : > { %v5877_v40 = vadd.f32 %v2983_v41, %v6330_v49  ;;  %v1948_v49 = vpack.c.b16 %v1920_v28, %v1919_v1 }
 0x30a   : > { %3301 = vmatmul.bf16.gmra.mxu3 %v1947_v21  ;;  %3509 = vmatmul.bf16.gmra.mxu1 %v5704_v16  ;;  %v6335_v21 = vld [vmem:[#allocation37_spill] sm:$0xff]  ;;  %v5894_v33 = vpop.f32.mrf.mxu1 }
 0x30b   : > { %6336 = vst [vmem:[#allocation34_spill] sm:$0xff] %v5894_v33 }
 0x30d   : > { %v2986_v13 = vpop.f32.mrf.mxu3 }
 0x30e   : > { %v5883_v10 = vadd.f32 %v2986_v13, %v6332_v7  ;;  %v1121_v7 = vld [vmem:[#allocation2 + $0x90] sm:$0xff] }
 0x30f   : > { %v1153_v2 = vpack.c.bf16 %v1121_v7, %v1121_v7  ;;  %v1155_v7 = vpack.c.bf16 %v1123_v46, %v1123_v46  ;;  %v1125_v46 = vld [vmem:[#allocation2 + $0xc0] sm:$0xff] }
 0x311   : > { %v1921_v32 = vunpack.c.l.b16 %v1153_v2 }
 0x313   : > { %v1949_v28 = vpack.c.b16 %v1922_v30, %v1921_v32  ;;  %v6342_v30 = vld [vmem:[#allocation43_spill] sm:$0xff] }
 0x315   : > { %v2988_v20 = vpop.f32.mrf.mxu3 }
 0x316   : > { %v5886_v41 = vadd.f32 %v2988_v20, %v6333_v50  ;;  %v6337_v50 = vld [vmem:[#allocation39_spill] sm:$0xff] }
 0x31a   : > { %3306 = vmatmul.bf16.gmra.mxu3 %v1948_v49  ;;  %3514 = vmatmul.bf16.gmra.mxu1 %v5728_v9  ;;  %v5900_v9 = vpop.f32.mrf.mxu1  ;;  %v1124_v49 = vld [vmem:[#allocation2 + $0xb0] sm:$0xff] }
 0x31b   : > { %6339 = vst [vmem:[#allocation37_spill] sm:$0xff] %v5900_v9  ;;  %v1156_v33 = vpack.c.bf16 %v1124_v49, %v1124_v49  ;;  %v6343_v49 = vld [vmem:[#allocation44_spill] sm:$0xff] }
 0x31d   : > { %v2991_v16 = vpop.f32.mrf.mxu3  ;;  %v1924_v24 = vunpack.c.l.b16 %v1156_v33 }
 0x31e   : > { %v5892_v13 = vadd.f32 %v2991_v16, %v6335_v21  ;;  %v6340_v16 = vld [vmem:[#allocation41_spill] sm:$0xff] }
 0x325   : > { %v2993_v20 = vpop.f32.mrf.mxu3 }
 0x326   : > { %v5897_v34 = vadd.f32 %v2993_v20, %v6337_v50  ;;  %v5905_v20 = vpop.f32.mrf.mxu1 }
 0x328   : > { %6338 = vst [vmem:[#allocation35_spill] sm:$0xff] %v5897_v34 }
 0x32a   : > { %3311 = vmatmul.bf16.gmra.mxu3 %v1949_v28  ;;  %3519 = vmatmul.bf16.gmra.mxu1 %v5750_v14  ;;  %v1923_v14 = vunpack.c.l.b16 %v1155_v7 }
 0x32c   : > { %v1950_v50 = vpack.c.b16 %v1924_v24, %v1923_v14  ;;  %v1128_v14 = vld [vmem:[#allocation2 + $0xe0] sm:$0xff] }
 0x32d   : > { %v2996_v1 = vpop.f32.mrf.mxu3 }
 0x32e   : > { %v5903_v21 = vadd.f32 %v2996_v1, %v6340_v16  ;;  %v1126_v1 = vld [vmem:[#allocation2 + $0xc8] sm:$0xff]  ;;  %v5914_v33 = vpop.f32.mrf.mxu1 }
 0x32f   : > { %v1158_v9 = vpack.c.bf16 %v1126_v1, %v1126_v1  ;;  %v1160_v1 = vpack.c.bf16 %v1128_v14, %v1128_v14  ;;  %v1130_v14 = vld [vmem:[#allocation2 + $0xf8] sm:$0xff] }
 0x330   : > { %6341 = vst [vmem:[#allocation39_spill] sm:$0xff] %v5903_v21  ;;  %v1157_v21 = vpack.c.bf16 %v1125_v46, %v1125_v46 }
 0x331   : > { %v1926_v34 = vunpack.c.l.b16 %v1158_v9 }
 0x332   : > { %v1925_v42 = vunpack.c.l.b16 %v1157_v21 }
 0x334   : > { %v1951_v38 = vpack.c.b16 %v1926_v34, %v1925_v42  ;;  %v4727_v42 = vld [vmem:[#allocation10 + $0x30] sm:$0xff] }
 0x335   : > { %v2998_v2 = vpop.f32.mrf.mxu3  ;;  %3790 = vmatpush.bf16.msrb.mxu2 %v4727_v42  ;;  %v1131_v42 = vld [vmem:[#allocation2 + $0x108] sm:$0xff] }
 0x336   : > { %v5908_v32 = vadd.f32 %v2998_v2, %v6342_v30  ;;  %v6345_v30 = vld [vmem:[#allocation47_spill] sm:$0xff]  ;;  %v5919_v24 = vpop.f32.mrf.mxu1 }
 0x33a   : > { %3316 = vmatmul.bf16.gmra.mxu3 %v1950_v50  ;;  %3524 = vmatmul.bf16.gmra.mxu1 %v5774_v59  ;;  %v6347_v50 = vld [vmem:[#allocation50_spill] sm:$0xff] }
 0x33d   : > { %v3001_v28 = vpop.f32.mrf.mxu3 }
 0x33e   : > { %v5912_v16 = vadd.f32 %v3001_v28, %v6343_v49  ;;  %v1127_v49 = vld [vmem:[#allocation2 + $0xd8] sm:$0xff]  ;;  %v5925_v9 = vpop.f32.mrf.mxu1 }
 0x33f   : > { %v1159_v46 = vpack.c.bf16 %v1127_v49, %v1127_v49 }
 0x340   : > { %6344 = vst [vmem:[#allocation41_spill] sm:$0xff] %v5912_v16  ;;  %v1928_v16 = vunpack.c.l.b16 %v1160_v1  ;;  %v1129_v1 = vld [vmem:[#allocation2 + $0xf0] sm:$0xff] }
 0x341   : > { %v1927_v34 = vunpack.c.l.b16 %v1159_v46 }
 0x345   : > { %v3003_v2 = vpop.f32.mrf.mxu3 }
 0x346   : > { %v5917_v7 = vadd.f32 %v3003_v2, %v6345_v30  ;;  %v6349_v30 = vld [vmem:[#allocation52_spill] sm:$0xff] }
 0x348   : > { %6346 = vst [vmem:[#allocation43_spill] sm:$0xff] %v5917_v7  ;;  %v1952_v7 = vpack.c.b16 %v1928_v16, %v1927_v34 }
 0x34a   : > { %3321 = vmatmul.bf16.gmra.mxu3 %v1951_v38  ;;  %3529 = vmatmul.bf16.gmra.mxu1 %v5797_v53  ;;  %v4735_v38 = vld [vmem:[#allocation12 + $0x30] sm:$0xff]  ;;  %v5931_v53 = vpop.f32.mrf.mxu1 }
 0x34b   : > { %3994 = vmatpush.bf16.msrb.mxu3 %v4735_v38  ;;  %v1132_v38 = vld [vmem:[#allocation2 + $0x110] sm:$0xff] }
 0x34d   : > { %v3006_v59 = vpop.f32.mrf.mxu3 }
 0x34e   : > { %v5923_v28 = vadd.f32 %v3006_v59, %v6347_v50  ;;  %v6351_v50 = vld [vmem:[#allocation55_spill] sm:$0xff] }
 0x350   : > { %6348 = vst [vmem:[#allocation44_spill] sm:$0xff] %v5923_v28  ;;  %v1162_v28 = vpack.c.bf16 %v1130_v14, %v1130_v14  ;;  %v1163_v14 = vpack.c.bf16 %v1131_v42, %v1131_v42  ;;  %v5953_v42 = vpop.f32.mrf.mxu2 }
 0x352   : > { %v5939_v34 = vpop.f32.mrf.mxu1 }
 0x355   : > { %v3008_v2 = vpop.f32.mrf.mxu3 }
 0x356   : > { %v5928_v21 = vadd.f32 %v3008_v2, %v6349_v30  ;;  %v1161_v2 = vpack.c.bf16 %v1129_v1, %v1129_v1  ;;  %v1930_v30 = vunpack.c.l.b16 %v1162_v28  ;;  %v1164_v1 = vpack.c.bf16 %v1132_v38, %v1132_v38 }
 0x358   : > { %6350 = vst [vmem:[#allocation47_spill] sm:$0xff] %v5928_v21  ;;  %v1929_v16 = vunpack.c.l.b16 %v1161_v2 }
 0x35a   : > { %3326 = vmatmul.bf16.gmra.mxu3 %v1952_v7  ;;  %3534 = vmatmul.bf16.gmra.mxu1 %v5815_v52  ;;  %v1953_v7 = vpack.c.b16 %v1930_v30, %v1929_v16  ;;  %v1931_v30 = vunpack.c.l.b16 %v1163_v14  ;;  %v1932_v16 = vunpack.c.l.b16 %v1164_v1  ;;  %v1133_v14 = vld [vmem:[#allocation2 + $0x120] sm:$0xff] }
 0x35d   : > { %v3011_v59 = vpop.f32.mrf.mxu3 }
 0x35e   : > { %v5934_v49 = vadd.f32 %v3011_v59, %v6351_v50  ;;  %v5943_v50 = vpop.f32.mrf.mxu0 }
 0x360   : > { %6352 = vst [vmem:[#allocation50_spill] sm:$0xff] %v5934_v49  ;;  %v4734_v49 = vld [vmem:[#allocation12 + $0x28] sm:$0xff] }
 0x361   : > { %3995 = vmatpush.bf16.msrb.mxu3 %v4734_v49 }
 0x365   : > { %v3013_v46 = vpop.f32.mrf.mxu3 }
 0x366   : > { %v5937_v21 = vadd.f32 %v3013_v46, %v5690_v63  ;;  %v5946_v63 = vpop.f32.mrf.mxu1 }
 0x368   : > { %6353 = vst [vmem:[#allocation52_spill] sm:$0xff] %v5937_v21  ;;  %v4726_v21 = vld [vmem:[#allocation10 + $0x28] sm:$0xff] }
 0x369   : > { %3791 = vmatpush.bf16.msrb.mxu2 %v4726_v21  ;;  %v1165_v21 = vpack.c.bf16 %v1133_v14, %v1133_v14  ;;  %v1135_v14 = vld [vmem:[#allocation2 + $0x138] sm:$0xff] }
 0x36a   : > { %3331 = vmatmul.bf16.gmra.mxu3 %v1953_v7  ;;  %3539 = vmatmul.bf16.gmra.mxu1 %v5833_v51 }
 0x36d   : > { %v3292_v52 = vpop.f32.mrf.mxu3 }
 0x36e   : > { %v3293_v59 = vadd.f32 %v3292_v52, %v5712_v61  ;;  %v1954_v52 = vpack.c.b16 %v1932_v16, %v1931_v30  ;;  %v5956_v38 = vpop.f32.mrf.mxu1  ;;  %v5963_v30 = vpop.f32.mrf.mxu2  ;;  %v1933_v16 = vunpack.c.l.b16 %v1165_v21  ;;  %v4725_v21 = vld [vmem:[#allocation10 + $0x20] sm:$0xff] }
 0x36f   : > { %3792 = vmatpush.bf16.msrb.mxu2 %v4725_v21  ;;  %v1137_v21 = vld [vmem:[#allocation2 + $0x150] sm:$0xff] }
 0x370   : > { %v3382_v28 = vadd.f32 %v5795_v57, %v3293_v59  ;;  %v5951_v57 = vpop.f32.mrf.mxu0 }
 0x372   : > { %v3471_v2 = vadd.f32 %v5905_v20, %v3382_v28 }
 0x374   : > { %v3550_v46 = vmax.f32 %v3471_v2, 0.0 }
 0x375   : > { %v3294_v7 = vpop.f32.mrf.mxu3 }
 0x376   : > { %3582 = vst [vmem:[#allocation3] sm:$0xff] %v3550_v46  ;;  %v3295_v51 = vadd.f32 %v3294_v7, %v5722_v3  ;;  %v1134_v3 = vld [vmem:[#allocation2 + $0x128] sm:$0xff] }
 0x377   : > { %v1166_v49 = vpack.c.bf16 %v1134_v3, %v1134_v3  ;;  %v1136_v3 = vld [vmem:[#allocation2 + $0x140] sm:$0xff] }
 0x378   : > { %v3384_v61 = vadd.f32 %v5806_v15, %v3295_v51  ;;  %v5961_v46 = vpop.f32.mrf.mxu0  ;;  %v5965_v51 = vpop.f32.mrf.mxu1 }
 0x379   : > { %v1934_v7 = vunpack.c.l.b16 %v1166_v49 }
 0x37a   : > { %v3473_v20 = vadd.f32 %v5914_v33, %v3384_v61  ;;  %3336 = vmatmul.bf16.gmra.mxu3 %v1954_v52 }
 0x37c   : > { %v3551_v59 = vmax.f32 %v3473_v20, 0.0 }
 0x37d   : > { %v3297_v28 = vpop.f32.mrf.mxu3 }
 0x37e   : > { %3583 = vst [vmem:[#allocation3 + $0x8] sm:$0xff] %v3551_v59  ;;  %v3298_v1 = vadd.f32 %v3297_v28, %v5735_v39 }
 0x380   : > { %v3387_v15 = vadd.f32 %v5819_v47, %v3298_v1  ;;  %v1955_v47 = vpack.c.b16 %v1934_v7, %v1933_v16  ;;  %v5970_v59 = vpop.f32.mrf.mxu0  ;;  %v5972_v1 = vpop.f32.mrf.mxu2 }
 0x381   : > { %v5975_v49 = vpop.f32.mrf.mxu1 }
 0x382   : > { %v3476_v2 = vadd.f32 %v5919_v24, %v3387_v15 }
 0x384   : > { %v3552_v33 = vmax.f32 %v3476_v2, 0.0  ;;  %v1168_v2 = vpack.c.bf16 %v1136_v3, %v1136_v3  ;;  %v4722_v3 = vld [vmem:[#allocation10 + $0x8] sm:$0xff] }
 0x385   : > { %v3299_v61 = vpop.f32.mrf.mxu3 }
 0x386   : > { %3584 = vst [vmem:[#allocation3 + $0x10] sm:$0xff] %v3552_v33  ;;  %v3300_v52 = vadd.f32 %v3299_v61, %v5746_v12  ;;  %v4724_v33 = vld [vmem:[#allocation10 + $0x18] sm:$0xff]  ;;  %v1936_v61 = vunpack.c.l.b16 %v1168_v2  ;;  %v4721_v2 = vld [vmem:[#allocation10] sm:$0xff] }
 0x387   : > { %3793 = vmatpush.bf16.msrb.mxu2 %v4724_v33 }
 0x388   : > { %v3389_v39 = vadd.f32 %v5828_v26, %v3300_v52  ;;  %v1167_v26 = vpack.c.bf16 %v1135_v14, %v1135_v14 }
 0x38a   : > { %v3478_v20 = vadd.f32 %v5925_v9, %v3389_v39  ;;  %3341 = vmatmul.bf16.gmra.mxu3 %v1955_v47  ;;  %v1935_v7 = vunpack.c.l.b16 %v1167_v26  ;;  %v4723_v47 = vld [vmem:[#allocation10 + $0x10] sm:$0xff] }
 0x38b   : > { %3794 = vmatpush.bf16.msrb.mxu2 %v4723_v47 }
 0x38c   : > { %v3553_v24 = vmax.f32 %v3478_v20, 0.0  ;;  %v5980_v20 = vpop.f32.mrf.mxu0 }
 0x38d   : > { %v3302_v28 = vpop.f32.mrf.mxu3 }
 0x38e   : > { %3585 = vst [vmem:[#allocation3 + $0x18] sm:$0xff] %v3553_v24  ;;  %v3303_v15 = vadd.f32 %v3302_v28, %v5757_v27  ;;  %v4733_v27 = vld [vmem:[#allocation12 + $0x20] sm:$0xff]  ;;  %v5982_v24 = vpop.f32.mrf.mxu2  ;;  %v1956_v28 = vpack.c.b16 %v1936_v61, %v1935_v7 }
 0x38f   : > { %3996 = vmatpush.bf16.msrb.mxu3 %v4733_v27  ;;  %3795 = vmatpush.bf16.msrb.mxu2 %v4722_v3 }
 0x390   : > { %v3392_v12 = vadd.f32 %v5842_v18, %v3303_v15 }
 0x392   : > { %v3481_v9 = vadd.f32 %v5931_v53, %v3392_v12  ;;  %v5985_v53 = vpop.f32.mrf.mxu1  ;;  %v1138_v12 = vld [vmem:[#allocation2 + $0x158] sm:$0xff] }
 0x393   : > { %v1170_v33 = vpack.c.bf16 %v1138_v12, %v1138_v12  ;;  %3796 = vmatpush.bf16.msrb.mxu2 %v4721_v2 }
 0x394   : > { %v3554_v16 = vmax.f32 %v3481_v9, 0.0  ;;  %v1169_v9 = vpack.c.bf16 %v1137_v21, %v1137_v21 }
 0x395   : > { %v3304_v52 = vpop.f32.mrf.mxu3 }
 0x396   : > { %3586 = vst [vmem:[#allocation3 + $0x20] sm:$0xff] %v3554_v16  ;;  %v3305_v39 = vadd.f32 %v3304_v52, %v5768_v8  ;;  %v5990_v16 = vpop.f32.mrf.mxu0  ;;  %v5992_v7 = vpop.f32.mrf.mxu2  ;;  %v6354_v52 = vld [vmem:[#allocation18_spill] sm:$0xff]  ;;  %v1937_v47 = vunpack.c.l.b16 %v1169_v9 }
 0x398   : > { %v3394_v18 = vadd.f32 %v5851_v19, %v3305_v39  ;;  %v3046_v39 = vadd.f32 %v6354_v52, %v5793_v5  ;;  %v6356_v5 = vld [vmem:[#allocation19_spill] sm:$0xff] }
 0x399   : > { %v3048_v12 = vadd.f32 %v6356_v5, %v5804_v54 }
 0x39a   : > { %v3483_v14 = vadd.f32 %v5939_v34, %v3394_v18  ;;  %3346 = vmatmul.bf16.gmra.mxu3 %v1956_v28  ;;  %v5995_v61 = vpop.f32.mrf.mxu1  ;;  %v6355_v28 = vld [vmem:[#allocation46_spill] sm:$0xff] }
 0x39c   : > { %v3555_v15 = vmax.f32 %v3483_v14, 0.0  ;;  %v3135_v14 = vadd.f32 %v6355_v28, %v3046_v39  ;;  %v3662_v39 = vld [vmem:[#allocation3 + $0x10] ss:$2 sm:$0xff] }
 0x39d   : > { %v3307_v8 = vpop.f32.mrf.mxu3 }
 0x39e   : > { %3587 = vst [vmem:[#allocation3 + $0x28] sm:$0xff] %v3555_v15  ;;  %v3308_v26 = vadd.f32 %v3307_v8, %v5779_v58  ;;  %v1938_v58 = vunpack.c.l.b16 %v1170_v33  ;;  %v3224_v21 = vadd.f32 %v5953_v42, %v3135_v14  ;;  %v1140_v33 = vld [vmem:[#allocation2 + $0x170] sm:$0xff] }
 0x3a0   : > { %v3397_v19 = vadd.f32 %v5943_v50, %v3308_v26  ;;  %v1957_v15 = vpack.c.b16 %v1938_v58, %v1937_v47  ;;  %v6008_v26 = vpop.f32.mrf.mxu2  ;;  %v1172_v58 = vpack.c.bf16 %v1140_v33, %v1140_v33  ;;  %v3686_v33 = vld [vmem:[#allocation3 + $0x11] ss:$2 sm:$0xff] }
 0x3a2   : > { %v3486_v34 = vadd.f32 %v5946_v63, %v3397_v19  ;;  %v6003_v63 = vpop.f32.mrf.mxu0  ;;  %v1139_v19 = vld [vmem:[#allocation2 + $0x168] sm:$0xff] }
 0x3a3   : > { %v1171_v52 = vpack.c.bf16 %v1139_v19, %v1139_v19 }
 0x3a4   : > { %v3556_v27 = vmax.f32 %v3486_v34, 0.0  ;;  %v3638_v34 = vld [vmem:[#allocation3 + $0x1] ss:$2 sm:$0xff] }
 0x3a5   : > { %v3309_v18 = vpop.f32.mrf.mxu3 }
 0x3a6   : > { %3588 = vst [vmem:[#allocation3 + $0x30] sm:$0xff] %v3556_v27  ;;  %v3310_v50 = vadd.f32 %v3309_v18, %v5790_v62  ;;  %v6010_v62 = vpop.f32.mrf.mxu1  ;;  %v6357_v27 = vld [vmem:[#allocation49_spill] sm:$0xff]  ;;  %v3616_v18 = vld [vmem:[#allocation3 + $0x20] ss:$2 sm:$0xff] }
 0x3a7   : > { %v3137_v47 = vadd.f32 %v6357_v27, %v3048_v12  ;;  %v6359_v27 = vld [vmem:[#allocation53_spill] sm:$0xff] }
 0x3a8   : > { %v3399_v3 = vadd.f32 %v5951_v57, %v3310_v50  ;;  %v3614_v57 = vld [vmem:[#allocation3] ss:$2 sm:$0xff]  ;;  %v3640_v50 = vld [vmem:[#allocation3 + $0x21] ss:$2 sm:$0xff] }
 0x3a9   : > { %v3653_v54 = vadd.f32 %v3638_v34, %v3614_v57  ;;  %v3226_v5 = vadd.f32 %v5963_v30, %v3137_v47  ;;  %v3654_v19 = vadd.f32 %v3640_v50, %v3616_v18  ;;  %v6020_v57 = vpop.f32.mrf.mxu2  ;;  %v1208_v18 = vld [vmem:[#allocation2 + $0x1a1] sm:$0xff] }
 0x3aa   : > { %v3488_v8 = vadd.f32 %v5956_v38, %v3399_v3  ;;  %3351 = vmatmul.bf16.gmra.mxu3 %v1957_v15  ;;  %v6358_v3 = vld [vmem:[#allocation21_spill] sm:$0xff] }
 0x3ab   : > { %v3677_v14 = vadd.f32 %v3662_v39, %v3653_v54  ;;  %v3051_v15 = vadd.f32 %v6358_v3, %v5813_v60  ;;  %v4732_v39 = vld [vmem:[#allocation12 + $0x18] sm:$0xff]  ;;  %v1207_v54 = vld [vmem:[#allocation2 + $0x199] sm:$0xff] }
 0x3ac   : > { %v3557_v2 = vmax.f32 %v3488_v8, 0.0  ;;  %v1939_v8 = vunpack.c.l.b16 %v1171_v52  ;;  %3997 = vmatpush.bf16.msrb.mxu3 %v4732_v39  ;;  %v1239_v50 = vpack.c.bf16 %v1207_v54, %v1207_v54 }
 0x3ad   : > { %v3312_v9 = vpop.f32.mrf.mxu3  ;;  %v3140_v60 = vadd.f32 %v6359_v27, %v3051_v15 }
 0x3ae   : > { %3589 = vst [vmem:[#allocation3 + $0x38] sm:$0xff] %v3557_v2  ;;  %v3313_v38 = vadd.f32 %v3312_v9, %v3224_v21  ;;  %v1940_v2 = vunpack.c.l.b16 %v1172_v58  ;;  %v6018_v9 = vpop.f32.mrf.mxu0  ;;  %v6023_v52 = vpop.f32.mrf.mxu1 }
 0x3af   : > { %v3229_v15 = vadd.f32 %v5972_v1, %v3140_v60  ;;  %v6361_v60 = vld [vmem:[#allocation56_spill] sm:$0xff] }
 0x3b0   : > { %v3402_v42 = vadd.f32 %v5961_v46, %v3313_v38  ;;  %v3701_v38 = vadd.f32 %v3686_v33, %v3677_v14 }
 0x3b2   : > { %v3491_v28 = vadd.f32 %v5965_v51, %v3402_v42  ;;  %v1958_v42 = vpack.c.b16 %v1940_v2, %v1939_v8 }
 0x3b4   : > { %v3558_v21 = vmax.f32 %v3491_v28, 0.0  ;;  %v1240_v28 = vpack.c.bf16 %v1208_v18, %v1208_v18  ;;  %v6033_v18 = vpop.f32.mrf.mxu2 }
 0x3b5   : > { %v3314_v12 = vpop.f32.mrf.mxu3  ;;  %v3664_v46 = vld [vmem:[#allocation3 + $0x30] ss:$2 sm:$0xff]  ;;  %v3688_v30 = vld [vmem:[#allocation3 + $0x31] ss:$2 sm:$0xff] }
 0x3b6   : > { %3590 = vst [vmem:[#allocation3 + $0x40] sm:$0xff] %v3558_v21  ;;  %v3315_v34 = vadd.f32 %v3314_v12, %v3226_v5  ;;  %v3678_v51 = vadd.f32 %v3664_v46, %v3654_v19  ;;  %v3709_v5 = vmul.f32 0.25, %v3701_v38  ;;  %v1271_v21 = vld [vmem:[#allocation2 + $0x19a] sm:$0xff]  ;;  %v1272_v19 = vld [vmem:[#allocation2 + $0x1a2] sm:$0xff]  ;;  %v2039_v12 = vunpack.c.l.b16 %v1239_v50 }
 0x3b7   : > { %v2040_v46 = vunpack.c.l.b16 %v1240_v28  ;;  %v1303_v33 = vpack.c.bf16 %v1271_v21, %v1271_v21  ;;  %v1304_v39 = vpack.c.bf16 %v1272_v19, %v1272_v19 }
 0x3b8   : > { %v3404_v47 = vadd.f32 %v5970_v59, %v3315_v34  ;;  %v3702_v58 = vadd.f32 %v3688_v30, %v3678_v51  ;;  %v6360_v59 = vld [vmem:[#allocation23_spill] sm:$0xff]  ;;  %v1141_v51 = vld [vmem:[#allocation2 + $0x180] sm:$0xff]  ;;  %v1142_v30 = vld [vmem:[#allocation2 + $0x188] sm:$0xff] }
 0x3b9   : > { %v3053_v8 = vadd.f32 %v6360_v59, %v5822_v36  ;;  %v1173_v1 = vpack.c.bf16 %v1141_v51, %v1141_v51  ;;  %v1174_v50 = vpack.c.bf16 %v1142_v30, %v1142_v30 }
 0x3ba   : > { %v3493_v3 = vadd.f32 %v5975_v49, %v3404_v47  ;;  %3356 = vmatmul.bf16.gmra.mxu3 %v1958_v42  ;;  %v3710_v14 = vmul.f32 0.25, %v3702_v58  ;;  %v2056_v49 = vpack.c.b16 %v2040_v46, %v2039_v12  ;;  %v2135_v47 = vunpack.c.l.b16 %v1303_v33  ;;  %v6030_v58 = vpop.f32.mrf.mxu0 }
 0x3bb   : > { %v2136_v42 = vunpack.c.l.b16 %v1304_v39  ;;  %v3142_v54 = vadd.f32 %v6361_v60, %v3053_v8  ;;  %v1941_v21 = vunpack.c.l.b16 %v1173_v1  ;;  %v1942_v33 = vunpack.c.l.b16 %v1174_v50  ;;  %v4730_v8 = vld [vmem:[#allocation12 + $0x8] sm:$0xff] }
 0x3bc   : > { %v3559_v2 = vmax.f32 %v3493_v3, 0.0  ;;  %v3717_v34 = vpack.c.bf16 %v3710_v14, %v3709_v5  ;;  %3455 = vmatmul.bf16.gmra.mxu0 %v2056_v49  ;;  %v6036_v3 = vpop.f32.mrf.mxu1  ;;  %v4731_v14 = vld [vmem:[#allocation12 + $0x10] sm:$0xff]  ;;  %v6046_v39 = vpop.f32.mrf.mxu2 }
 0x3bd   : > { %v3317_v27 = vpop.f32.mrf.mxu3  ;;  %v2152_v28 = vpack.c.b16 %v2136_v42, %v2135_v47  ;;  %v3231_v19 = vadd.f32 %v5982_v24, %v3142_v54  ;;  %3998 = vmatpush.bf16.msrb.mxu3 %v4731_v14  ;;  %v4853_v42 = vld [vmem:[#allocation2] sm:$0xff] }
 0x3be   : > { %3591 = vst [vmem:[#allocation3 + $0x48] sm:$0xff] %v3559_v2  ;;  %v3318_v38 = vadd.f32 %v3317_v27, %v3229_v15  ;;  %3797 = vmatmul.bf16.vlgmr.msrb.gmra.mxu2 %v3717_v34  ;;  %v6362_v15 = vld [vmem:[#allocation25_spill] sm:$0xff] }
 0x3bf   : > { %3544 = vmatmul.bf16.gmra.mxu1 %v2152_v28  ;;  %v3056_v12 = vadd.f32 %v6362_v15, %v5831_v48  ;;  %v4729_v48 = vld [vmem:[#allocation12] sm:$0xff] }
 0x3c0   : > { %v3407_v36 = vadd.f32 %v5980_v20, %v3318_v38  ;;  %v4579_v28 = vld [vmem:[%s5260_s5 + $0x1] ss:$2 sm:$0xff] }
 0x3c1   : > { %v3145_v2 = vadd.f32 %v5698_v22, %v3056_v12  ;;  %3999 = vmatpush.bf16.msrb.mxu3 %v4730_v8  ;;  %v6363_v22 = vld [vmem:[#allocation27_spill] sm:$0xff]  ;;  %v4588_v8 = vld [vmem:[%s5260_s5 + $0x30] ss:$2 sm:$0xff] }
 0x3c2   : > { %v3496_v5 = vadd.f32 %v5985_v53, %v3407_v36  ;;  %v1959_v53 = vpack.c.b16 %v1942_v33, %v1941_v21  ;;  %v6044_v51 = vpop.f32.mrf.mxu0  ;;  %v6364_v21 = vld [vmem:[#allocation30_spill] sm:$0xff] }
 0x3c3   : > { %v3234_v30 = vadd.f32 %v5992_v7, %v3145_v2  ;;  %v3818_v7 = vld [vmem:[%s5260_s5] ss:$2 sm:$0xff] }
 0x3c4   : > { %v3560_v46 = vmax.f32 %v3496_v5, 0.0  ;;  %v6049_v27 = vpop.f32.mrf.mxu1  ;;  %v4580_v5 = vld [vmem:[%s5260_s5 + $0x21] ss:$2 sm:$0xff]  ;;  %v6066_v15 = vpop.f32.mrf.mxu2  ;;  %v3857_v33 = vadd.f32 %v4579_v28, %v3818_v7  ;;  %v4574_v7 = vld [vmem:[%s5260_s5 + $0x60] ss:$2 sm:$0xff] }
 0x3c5   : > { %v3319_v59 = vpop.f32.mrf.mxu3  ;;  %4000 = vmatpush.bf16.msrb.mxu3 %v4729_v48  ;;  %v4596_v48 = vld [vmem:[%s5260_s5 + $0x31] ss:$2 sm:$0xff]  ;;  %v4582_v28 = vld [vmem:[%s5260_s5 + $0x61] ss:$2 sm:$0xff] }
 0x3c6   : > { %3592 = vst [vmem:[#allocation3 + $0x50] sm:$0xff] %v3560_v46  ;;  %v3320_v20 = vadd.f32 %v3319_v59, %v3231_v19  ;;  %v3061_v19 = vadd.f32 %v6364_v21, %v5849_v45 }
 0x3c8   : > { %v3409_v34 = vadd.f32 %v5990_v16, %v3320_v20  ;;  %v3058_v16 = vadd.f32 %v6363_v22, %v5840_v17  ;;  %v4572_v17 = vld [vmem:[%s5260_s5 + $0x20] ss:$2 sm:$0xff]  ;;  %v4587_v20 = vld [vmem:[%s5260_s5 + $0x10] ss:$2 sm:$0xff] }
 0x3c9   : > { %v3858_v59 = vadd.f32 %v4580_v5, %v4572_v17  ;;  %v6365_v22 = vld [vmem:[#allocation32_spill] sm:$0xff]  ;;  %v4581_v17 = vld [vmem:[%s5260_s5 + $0x41] ss:$2 sm:$0xff] }
 0x3ca   : > { %v3498_v24 = vadd.f32 %v5995_v61, %v3409_v34  ;;  %3361 = vmatmul.bf16.gmra.mxu3 %v1959_v53  ;;  %v1175_v61 = vpack.c.bf16 %v4853_v42, %v4853_v42  ;;  %v3147_v1 = vadd.f32 %v5714_v4, %v3058_v16  ;;  %v6058_v50 = vpop.f32.mrf.mxu0  ;;  %v3881_v34 = vadd.f32 %v4587_v20, %v3857_v33  ;;  %v4590_v33 = vld [vmem:[%s5260_s5 + $0x70] ss:$2 sm:$0xff] }
 0x3cb   : > { %v3882_v53 = vadd.f32 %v4588_v8, %v3858_v59  ;;  %v3063_v16 = vadd.f32 %v6365_v22, %v5857_v6  ;;  %v3618_v22 = vld [vmem:[#allocation3 + $0x40] ss:$2 sm:$0xff] }
 0x3cc   : > { %v3561_v49 = vmax.f32 %v3498_v24, 0.0  ;;  %v1943_v36 = vunpack.c.l.b16 %v1175_v61  ;;  %v3236_v14 = vadd.f32 %v6008_v26, %v3147_v1  ;;  %v3150_v26 = vadd.f32 %v5730_v23, %v3061_v19  ;;  %v4595_v24 = vld [vmem:[%s5260_s5 + $0x11] ss:$2 sm:$0xff] }
 0x3cd   : > { %v3322_v47 = vpop.f32.mrf.mxu3  ;;  %v3906_v42 = vadd.f32 %v4596_v48, %v3882_v53 }
 0x3ce   : > { %3593 = vst [vmem:[#allocation3 + $0x58] sm:$0xff] %v3561_v49  ;;  %v3323_v38 = vadd.f32 %v3322_v47, %v3234_v30  ;;  %v1960_v46 = vpack.c.b16 %v1943_v36, %v1943_v36  ;;  %v3239_v30 = vadd.f32 %v6020_v57, %v3150_v26  ;;  %v3152_v57 = vadd.f32 %v5744_v56, %v3063_v16  ;;  %v4573_v36 = vld [vmem:[%s5260_s5 + $0x40] ss:$2 sm:$0xff]  ;;  %v3642_v16 = vld [vmem:[#allocation3 + $0x41] ss:$2 sm:$0xff] }
 0x3d0   : > { %v3412_v60 = vadd.f32 %v6003_v63, %v3323_v38  ;;  %v6068_v63 = vpop.f32.mrf.mxu1  ;;  %v3905_v38 = vadd.f32 %v4595_v24, %v3881_v34  ;;  %v3241_v5 = vadd.f32 %v6033_v18, %v3152_v57  ;;  %v4598_v34 = vld [vmem:[%s5260_s5 + $0x71] ss:$2 sm:$0xff] }
 0x3d1   : > { %v6367_v24 = vld [vmem:[#allocation36_spill] sm:$0xff] }
 0x3d2   : > { %v3501_v54 = vadd.f32 %v6010_v62, %v3412_v60  ;;  %v6080_v47 = vpop.f32.mrf.mxu0  ;;  %v3913_v60 = vmul.f32 0.25, %v3905_v38  ;;  %v3068_v48 = vadd.f32 %v6367_v24, %v5866_v0 }
 0x3d4   : > { %v3562_v4 = vmax.f32 %v3501_v54, 0.0  ;;  %v3914_v54 = vmul.f32 0.25, %v3906_v42  ;;  %v3655_v42 = vadd.f32 %v3642_v16, %v3618_v22 }
 0x3d5   : > { %v3324_v62 = vpop.f32.mrf.mxu3 }
 0x3d6   : > { %3594 = vst [vmem:[#allocation3 + $0x60] sm:$0xff] %v3562_v4  ;;  %v3325_v12 = vadd.f32 %v3324_v62, %v3236_v14  ;;  %v6366_v14 = vld [vmem:[#allocation33_spill] sm:$0xff]  ;;  %v3860_v62 = vadd.f32 %v4582_v28, %v4574_v7  ;;  %v6368_v28 = vld [vmem:[#allocation38_spill] sm:$0xff] }
 0x3d7   : > { %v3066_v21 = vadd.f32 %v6366_v14, %v5861_v31 }
 0x3d8   : > { %v3414_v2 = vadd.f32 %v6018_v9, %v3325_v12  ;;  %v6082_v9 = vpop.f32.mrf.mxu2  ;;  %v6084_v61 = vpop.f32.mrf.mxu1 }
 0x3d9   : > { %v3155_v59 = vadd.f32 %v5759_v29, %v3066_v21 }
 0x3da   : > { %v3503_v45 = vadd.f32 %v6023_v52, %v3414_v2  ;;  %3366 = vmatmul.bf16.gmra.mxu3 %v1960_v46  ;;  %v6096_v12 = vpop.f32.mrf.mxu0  ;;  %v4589_v46 = vld [vmem:[%s5260_s5 + $0x50] ss:$2 sm:$0xff]  ;;  %v3884_v2 = vadd.f32 %v4590_v33, %v3860_v62 }
 0x3db   : > { %v3244_v53 = vadd.f32 %v6046_v39, %v3155_v59 }
 0x3dc   : > { %v3563_v49 = vmax.f32 %v3503_v45, 0.0  ;;  %v4597_v45 = vld [vmem:[%s5260_s5 + $0x51] ss:$2 sm:$0xff] }
 0x3dd   : > { %v3327_v23 = vpop.f32.mrf.mxu3 }
 0x3de   : > { %3595 = vst [vmem:[#allocation3 + $0x68] sm:$0xff] %v3563_v49  ;;  %v3328_v52 = vadd.f32 %v3327_v23, %v3239_v30  ;;  %v3908_v23 = vadd.f32 %v4598_v34, %v3884_v2 }
 0x3e0   : > { %v3417_v1 = vadd.f32 %v6030_v58, %v3328_v52  ;;  %v3921_v58 = vpack.c.bf16 %v3914_v54, %v3913_v60  ;;  %v6101_v20 = vpop.f32.mrf.mxu2  ;;  %v6104_v31 = vpop.f32.mrf.mxu1  ;;  %v3666_v52 = vld [vmem:[#allocation3 + $0x50] ss:$2 sm:$0xff] }
 0x3e1   : > { %v3679_v60 = vadd.f32 %v3666_v52, %v3655_v42 }
 0x3e2   : > { %v3506_v6 = vadd.f32 %v6036_v3, %v3417_v1  ;;  %v3859_v3 = vadd.f32 %v4581_v17, %v4573_v36  ;;  %v3428_v57 = vpop.f32.mrf.mxu0  ;;  %v3916_v36 = vmul.f32 0.25, %v3908_v23 }
 0x3e4   : > { %v3564_v19 = vmax.f32 %v3506_v6, 0.0  ;;  %v3883_v26 = vadd.f32 %v4589_v46, %v3859_v3 }
 0x3e5   : > { %v3329_v4 = vpop.f32.mrf.mxu3  ;;  %v3620_v1 = vld [vmem:[#allocation3 + $0x60] ss:$2 sm:$0xff]  ;;  %v3644_v39 = vld [vmem:[#allocation3 + $0x61] ss:$2 sm:$0xff] }
 0x3e6   : > { %3596 = vst [vmem:[#allocation3 + $0x70] sm:$0xff] %v3564_v19  ;;  %v3330_v56 = vadd.f32 %v3329_v4, %v3241_v5  ;;  %v3907_v49 = vadd.f32 %v4597_v45, %v3883_v26  ;;  %v3071_v5 = vadd.f32 %v6368_v28, %v5872_v43  ;;  %v3690_v19 = vld [vmem:[#allocation3 + $0x51] ss:$2 sm:$0xff] }
 0x3e7   : > { %v6369_v26 = vld [vmem:[#allocation40_spill] sm:$0xff] }
 0x3e8   : > { %v3419_v18 = vadd.f32 %v6044_v51, %v3330_v56  ;;  %v3253_v6 = vpop.f32.mrf.mxu2  ;;  %v3915_v54 = vmul.f32 0.25, %v3907_v49  ;;  %v3517_v7 = vpop.f32.mrf.mxu1  ;;  %v3160_v62 = vadd.f32 %v5785_v37, %v3071_v5  ;;  %v3073_v2 = vadd.f32 %v6369_v26, %v5877_v40  ;;  %v4600_v26 = vld [vmem:[%s5260_s5 + $0xb1] ss:$2 sm:$0xff] }
 0x3ea   : > { %v3508_v8 = vadd.f32 %v6049_v27, %v3419_v18  ;;  %4001 = vmatmul.bf16.vlgmr.msrb.gmra.mxu3 %v3921_v58  ;;  %v3157_v27 = vadd.f32 %v5771_v35, %v3068_v48  ;;  %v3656_v35 = vadd.f32 %v3644_v39, %v3620_v1  ;;  %v3703_v58 = vadd.f32 %v3690_v19, %v3679_v60  ;;  %v3431_v18 = vpop.f32.mrf.mxu0  ;;  %v4584_v19 = vld [vmem:[%s5260_s5 + $0xa1] ss:$2 sm:$0xff] }
 0x3eb   : > { %v3922_v3 = vpack.c.bf16 %v3916_v36, %v3915_v54 }
 0x3ec   : > { %v3565_v30 = vmax.f32 %v3508_v8, 0.0  ;;  %v3246_v17 = vadd.f32 %v6066_v15, %v3157_v27  ;;  %v3711_v59 = vmul.f32 0.25, %v3703_v58  ;;  %v3249_v8 = vadd.f32 %v6082_v9, %v3160_v62  ;;  %v6370_v9 = vld [vmem:[#allocation42_spill] sm:$0xff] }
 0x3ed   : > { %v3332_v29 = vpop.f32.mrf.mxu3  ;;  %v3076_v22 = vadd.f32 %v6370_v9, %v5883_v10 }
 0x3ee   : > { %3597 = vst [vmem:[#allocation3 + $0x78] sm:$0xff] %v3565_v30  ;;  %v3333_v51 = vadd.f32 %v3332_v29, %v3244_v53 }
 0x3ef   : > { %v3165_v27 = vadd.f32 %v5810_v11, %v3076_v22 }
 0x3f0   : > { %v3422_v38 = vadd.f32 %v6058_v50, %v3333_v51  ;;  %v3255_v45 = vpop.f32.mrf.mxu2  ;;  %v3520_v24 = vpop.f32.mrf.mxu1 }
 0x3f1   : > { %v3254_v42 = vadd.f32 %v3253_v6, %v3165_v27  ;;  %v6372_v6 = vld [vmem:[#allocation48_spill] sm:$0xff] }
 0x3f2   : > { %v3511_v0 = vadd.f32 %v6068_v63, %v3422_v38  ;;  %v3433_v16 = vpop.f32.mrf.mxu0 }
 0x3f4   : > { %v3566_v14 = vmax.f32 %v3511_v0, 0.0 }
 0x3f5   : > { %v3334_v21 = vpop.f32.mrf.mxu3  ;;  %v3668_v50 = vld [vmem:[#allocation3 + $0x70] ss:$2 sm:$0xff]  ;;  %v3692_v63 = vld [vmem:[#allocation3 + $0x71] ss:$2 sm:$0xff] }
 0x3f6   : > { %3598 = vst [vmem:[#allocation3 + $0x80] sm:$0xff] %v3566_v14  ;;  %v3335_v4 = vadd.f32 %v3334_v21, %v3246_v17  ;;  %v3680_v56 = vadd.f32 %v3668_v50, %v3656_v35  ;;  %v4575_v35 = vld [vmem:[%s5260_s5 + $0x80] ss:$2 sm:$0xff]  ;;  %v4583_v21 = vld [vmem:[%s5260_s5 + $0x81] ss:$2 sm:$0xff] }
 0x3f8   : > { %v3424_v46 = vadd.f32 %v6080_v47, %v3335_v4  ;;  %v3704_v33 = vadd.f32 %v3692_v63, %v3680_v56  ;;  %v3162_v47 = vadd.f32 %v5801_v44, %v3073_v2  ;;  %v3258_v49 = vpop.f32.mrf.mxu2  ;;  %v3522_v52 = vpop.f32.mrf.mxu1  ;;  %v3861_v4 = vadd.f32 %v4583_v21, %v4575_v35  ;;  %v4592_v63 = vld [vmem:[%s5260_s5 + $0xb0] ss:$2 sm:$0xff] }
 0x3fa   : > { %v3513_v15 = vadd.f32 %v6084_v61, %v3424_v46  ;;  %v3712_v43 = vmul.f32 0.25, %v3704_v33  ;;  %4006 = vmatmul.bf16.gmra.mxu3 %v3922_v3  ;;  %v3251_v29 = vadd.f32 %v6101_v20, %v3162_v47  ;;  %v3436_v39 = vpop.f32.mrf.mxu0  ;;  %v4591_v3 = vld [vmem:[%s5260_s5 + $0x90] ss:$2 sm:$0xff] }
 0x3fb   : > { %v3885_v46 = vadd.f32 %v4591_v3, %v3861_v4 }
 0x3fc   : > { %v3567_v34 = vmax.f32 %v3513_v15, 0.0  ;;  %v3718_v53 = vpack.c.bf16 %v3712_v43, %v3711_v59  ;;  %v6373_v15 = vld [vmem:[#allocation35_spill] sm:$0xff] }
 0x3fd   : > { %v3337_v48 = vpop.f32.mrf.mxu3  ;;  %v6374_v59 = vld [vmem:[#allocation51_spill] sm:$0xff] }
 0x3fe   : > { %3599 = vst [vmem:[#allocation3 + $0x88] sm:$0xff] %v3567_v34  ;;  %v3338_v37 = vadd.f32 %v3337_v48, %v3249_v8  ;;  %3802 = vmatmul.bf16.gmra.mxu2 %v3718_v53  ;;  %v4599_v8 = vld [vmem:[%s5260_s5 + $0x91] ss:$2 sm:$0xff] }
 0x3ff   : > { %v6375_v48 = vld [vmem:[#allocation20_spill] sm:$0xff] }
 0x400   : > { %v3427_v61 = vadd.f32 %v6096_v12, %v3338_v37  ;;  %v6371_v12 = vld [vmem:[#allocation45_spill] sm:$0xff]  ;;  %v3260_v60 = vpop.f32.mrf.mxu2  ;;  %v3525_v11 = vpop.f32.mrf.mxu1 }
 0x402   : > { %v3516_v30 = vadd.f32 %v6104_v31, %v3427_v61  ;;  %v3078_v31 = vadd.f32 %v6371_v12, %v5886_v41  ;;  %v3438_v50 = vpop.f32.mrf.mxu0 }
 0x404   : > { %v3568_v40 = vmax.f32 %v3516_v30, 0.0  ;;  %v3167_v0 = vadd.f32 %v5824_v55, %v3078_v31  ;;  %v4576_v55 = vld [vmem:[%s5260_s5 + $0xa0] ss:$2 sm:$0xff] }
 0x405   : > { %v3339_v51 = vpop.f32.mrf.mxu3 }
 0x406   : > { %3600 = vst [vmem:[#allocation3 + $0x90] sm:$0xff] %v3568_v40  ;;  %v3340_v23 = vadd.f32 %v3339_v51, %v3251_v29  ;;  %v3256_v36 = vadd.f32 %v3255_v45, %v3167_v0  ;;  %v3909_v45 = vadd.f32 %v4599_v8, %v3885_v46  ;;  %v6376_v40 = vld [vmem:[#allocation39_spill] sm:$0xff] }
 0x408   : > { %v3429_v38 = vadd.f32 %v3428_v57, %v3340_v23  ;;  %v3263_v56 = vpop.f32.mrf.mxu2  ;;  %v3527_v62 = vpop.f32.mrf.mxu1 }
 0x40a   : > { %v3518_v44 = vadd.f32 %v3517_v7, %v3429_v38  ;;  %v3081_v7 = vadd.f32 %v6372_v6, %v5892_v13  ;;  %v3862_v13 = vadd.f32 %v4584_v19, %v4576_v55  ;;  %v3441_v9 = vpop.f32.mrf.mxu0  ;;  %v6382_v19 = vld [vmem:[#allocation58_spill] sm:$0xff] }
 0x40c   : > { %v3569_v1 = vmax.f32 %v3518_v44, 0.0  ;;  %v3170_v5 = vadd.f32 %v5835_v25, %v3081_v7  ;;  %v3083_v25 = vadd.f32 %v6374_v59, %v6373_v15  ;;  %v6378_v44 = vld [vmem:[#allocation22_spill] sm:$0xff] }
 0x40d   : > { %v3342_v20 = vpop.f32.mrf.mxu3 }
 0x40e   : > { %3601 = vst [vmem:[#allocation3 + $0x98] sm:$0xff] %v3569_v1  ;;  %v3343_v10 = vadd.f32 %v3342_v20, %v3254_v42  ;;  %v3259_v33 = vadd.f32 %v3258_v49, %v3170_v5  ;;  %v3172_v37 = vadd.f32 %v6375_v48, %v3083_v25  ;;  %v6379_v20 = vld [vmem:[#allocation57_spill] sm:$0xff]  ;;  %v6383_v25 = vld [vmem:[#allocation26_spill] sm:$0xff]  ;;  %v6384_v48 = vld [vmem:[#allocation43_spill] sm:$0xff] }
 0x410   : > { %v3432_v54 = vadd.f32 %v3431_v18, %v3343_v10  ;;  %v3886_v18 = vadd.f32 %v4592_v63, %v3862_v13  ;;  %v3261_v22 = vadd.f32 %v3260_v60, %v3172_v37  ;;  %v3265_v49 = vpop.f32.mrf.mxu2  ;;  %v3088_v10 = vadd.f32 %v6379_v20, %v5908_v32  ;;  %v6381_v32 = vld [vmem:[#allocation41_spill] sm:$0xff]  ;;  %v6385_v37 = vld [vmem:[#allocation59_spill] sm:$0xff] }
 0x411   : > { %v3091_v4 = vadd.f32 %v6382_v19, %v6381_v32  ;;  %v6389_v20 = vld [vmem:[#allocation29_spill] sm:$0xff]  ;;  %v4586_v32 = vld [vmem:[%s5260_s5 + $0xe1] ss:$2 sm:$0xff] }
 0x412   : > { %v3521_v57 = vadd.f32 %v3520_v24, %v3432_v54  ;;  %v3910_v53 = vadd.f32 %v4600_v26, %v3886_v18  ;;  %v3917_v24 = vmul.f32 0.25, %v3909_v45  ;;  %v3443_v0 = vpop.f32.mrf.mxu0  ;;  %v3622_v54 = vld [vmem:[#allocation3 + $0x80] ss:$2 sm:$0xff] }
 0x414   : > { %v3570_v41 = vmax.f32 %v3521_v57, 0.0  ;;  %v3918_v61 = vmul.f32 0.25, %v3910_v53 }
 0x415   : > { %v3344_v17 = vpop.f32.mrf.mxu3  ;;  %v3670_v7 = vld [vmem:[#allocation3 + $0x90] ss:$2 sm:$0xff]  ;;  %v3694_v63 = vld [vmem:[#allocation3 + $0x91] ss:$2 sm:$0xff] }
 0x416   : > { %3602 = vst [vmem:[#allocation3 + $0xa0] sm:$0xff] %v3570_v41  ;;  %v3345_v28 = vadd.f32 %v3344_v17, %v3256_v36  ;;  %v3923_v29 = vpack.c.bf16 %v3918_v61, %v3917_v24  ;;  %v6380_v41 = vld [vmem:[#allocation24_spill] sm:$0xff] }
 0x417   : > { %v3177_v17 = vadd.f32 %v6380_v41, %v3088_v10 }
 0x418   : > { %v3434_v14 = vadd.f32 %v3433_v16, %v3345_v28  ;;  %v6377_v16 = vld [vmem:[#allocation54_spill] sm:$0xff]  ;;  %4011 = vmatmul.bf16.gmra.mxu3 %v3923_v29  ;;  %v3268_v57 = vpop.f32.mrf.mxu2 }
 0x419   : > { %v3086_v51 = vadd.f32 %v6377_v16, %v6376_v40 }
 0x41a   : > { %v3523_v58 = vadd.f32 %v3522_v52, %v3434_v14  ;;  %v3530_v52 = vpop.f32.mrf.mxu1  ;;  %v3446_v15 = vpop.f32.mrf.mxu0 }
 0x41b   : > { %v3175_v42 = vadd.f32 %v6378_v44, %v3086_v51  ;;  %v6388_v44 = vld [vmem:[#allocation60_spill] sm:$0xff] }
 0x41c   : > { %v3571_v43 = vmax.f32 %v3523_v58, 0.0 }
 0x41d   : > { %v3347_v2 = vpop.f32.mrf.mxu3  ;;  %v3264_v1 = vadd.f32 %v3263_v56, %v3175_v42 }
 0x41e   : > { %3603 = vst [vmem:[#allocation3 + $0xa8] sm:$0xff] %v3571_v43  ;;  %v3348_v34 = vadd.f32 %v3347_v2, %v3259_v33  ;;  %v3180_v43 = vadd.f32 %v6383_v25, %v3091_v4  ;;  %v4601_v25 = vld [vmem:[%s5260_s5 + $0xd1] ss:$2 sm:$0xff] }
 0x420   : > { %v3437_v47 = vadd.f32 %v3436_v39, %v3348_v34  ;;  %v3270_v18 = vpop.f32.mrf.mxu2  ;;  %v3269_v24 = vadd.f32 %v3268_v57, %v3180_v43  ;;  %v6391_v57 = vld [vmem:[#allocation61_spill] sm:$0xff] }
 0x421   : > { %v4602_v43 = vld [vmem:[%s5260_s5 + $0xf1] ss:$2 sm:$0xff] }
 0x422   : > { %v3526_v30 = vadd.f32 %v3525_v11, %v3437_v47  ;;  %v3646_v11 = vld [vmem:[#allocation3 + $0x81] ss:$2 sm:$0xff]  ;;  %v3532_v6 = vpop.f32.mrf.mxu1  ;;  %v3093_v47 = vadd.f32 %v6385_v37, %v6384_v48  ;;  %v3448_v51 = vpop.f32.mrf.mxu0 }
 0x423   : > { %v3657_v5 = vadd.f32 %v3646_v11, %v3622_v54  ;;  %v6390_v11 = vld [vmem:[#allocation47_spill] sm:$0xff]  ;;  %v6395_v48 = vld [vmem:[#allocation34_spill] sm:$0xff] }
 0x424   : > { %v3572_v23 = vmax.f32 %v3526_v30, 0.0 }
 0x425   : > { %v3349_v27 = vpop.f32.mrf.mxu3  ;;  %v3624_v14 = vld [vmem:[#allocation3 + $0xa0] ss:$2 sm:$0xff]  ;;  %v3648_v35 = vld [vmem:[#allocation3 + $0xa1] ss:$2 sm:$0xff]  ;;  %v3681_v21 = vadd.f32 %v3670_v7, %v3657_v5 }
 0x426   : > { %3604 = vst [vmem:[#allocation3 + $0xb0] sm:$0xff] %v3572_v23  ;;  %v3350_v38 = vadd.f32 %v3349_v27, %v3261_v22  ;;  %v3658_v58 = vadd.f32 %v3648_v35, %v3624_v14  ;;  %v6386_v22 = vld [vmem:[#allocation28_spill] sm:$0xff]  ;;  %v6392_v5 = vld [vmem:[#allocation31_spill] sm:$0xff] }
 0x427   : > { %v3705_v33 = vadd.f32 %v3694_v63, %v3681_v21  ;;  %v3182_v40 = vadd.f32 %v6386_v22, %v3093_v47  ;;  %v4578_v21 = vld [vmem:[%s5260_s5 + $0xe0] ss:$2 sm:$0xff]  ;;  %v6396_v22 = vld [vmem:[#allocation52_spill] sm:$0xff] }
 0x428   : > { %v3439_v12 = vadd.f32 %v3438_v50, %v3350_v38  ;;  %v3266_v50 = vadd.f32 %v3265_v49, %v3177_v17  ;;  %v3273_v49 = vpop.f32.mrf.mxu2  ;;  %v6387_v38 = vld [vmem:[#allocation44_spill] sm:$0xff] }
 0x429   : > { %v3713_v34 = vmul.f32 0.25, %v3705_v33  ;;  %v3271_v27 = vadd.f32 %v3270_v18, %v3182_v40  ;;  %v3096_v42 = vadd.f32 %v6388_v44, %v6387_v38  ;;  %v6397_v40 = vld [vmem:[#allocation63_spill] sm:$0xff]  ;;  %v6398_v38 = vld [vmem:[#allocation37_spill] sm:$0xff] }
 0x42a   : > { %v3528_v31 = vadd.f32 %v3527_v62, %v3439_v12  ;;  %v3535_v2 = vpop.f32.mrf.mxu1 }
 0x42b   : > { %v3185_v10 = vadd.f32 %v6389_v20, %v3096_v42 }
 0x42c   : > { %v3573_v39 = vmax.f32 %v3528_v31, 0.0 }
 0x42d   : > { %v3352_v60 = vpop.f32.mrf.mxu3  ;;  %v3274_v54 = vadd.f32 %v3273_v49, %v3185_v10 }
 0x42e   : > { %3605 = vst [vmem:[#allocation3 + $0xb8] sm:$0xff] %v3573_v39  ;;  %v3353_v36 = vadd.f32 %v3352_v60, %v3264_v1  ;;  %v3451_v60 = vpop.f32.mrf.mxu0 }
 0x430   : > { %v3442_v28 = vadd.f32 %v3441_v9, %v3353_v36  ;;  %v3098_v36 = vadd.f32 %v6391_v57, %v6390_v11  ;;  %v6183_v57 = vld [vmem:[%s6257_s6] ss:$0 sm:$0xff] }
 0x432   : > { %v3531_v55 = vadd.f32 %v3530_v52, %v3442_v28  ;;  %v3537_v52 = vpop.f32.mrf.mxu1  ;;  %v3187_v14 = vadd.f32 %v6392_v5, %v3098_v36 }
 0x434   : > { %v3574_v56 = vmax.f32 %v3531_v55, 0.0  ;;  %v4577_v55 = vld [vmem:[%s5260_s5 + $0xc0] ss:$2 sm:$0xff] }
 0x435   : > { %v3354_v13 = vpop.f32.mrf.mxu3  ;;  %v3672_v3 = vld [vmem:[#allocation3 + $0xb0] ss:$2 sm:$0xff]  ;;  %v3696_v59 = vld [vmem:[#allocation3 + $0xb1] ss:$2 sm:$0xff] }
 0x436   : > { %3606 = vst [vmem:[#allocation3 + $0xc0] sm:$0xff] %v3574_v56  ;;  %v3355_v62 = vadd.f32 %v3354_v13, %v3266_v50  ;;  %v3682_v46 = vadd.f32 %v3672_v3, %v3658_v58  ;;  %v4585_v50 = vld [vmem:[%s5260_s5 + $0xc1] ss:$2 sm:$0xff]  ;;  %v3864_v56 = vadd.f32 %v4586_v32, %v4578_v21  ;;  %v4593_v58 = vld [vmem:[%s5260_s5 + $0xd0] ss:$2 sm:$0xff]  ;;  %v3453_v18 = vpop.f32.mrf.mxu0 }
 0x437   : > { %v3863_v19 = vadd.f32 %v4585_v50, %v4577_v55  ;;  %v4594_v13 = vld [vmem:[%s5260_s5 + $0xf0] ss:$2 sm:$0xff] }
 0x438   : > { %v3444_v8 = vadd.f32 %v3443_v0, %v3355_v62  ;;  %v3706_v26 = vadd.f32 %v3696_v59, %v3682_v46  ;;  %v6393_v62 = vld [vmem:[#allocation50_spill] sm:$0xff]  ;;  %v3888_v59 = vadd.f32 %v4594_v13, %v3864_v56 }
 0x439   : > { %v3887_v3 = vadd.f32 %v4593_v58, %v3863_v19  ;;  %v6394_v46 = vld [vmem:[#allocation62_spill] sm:$0xff] }
 0x43a   : > { %v3533_v45 = vadd.f32 %v3532_v6, %v3444_v8  ;;  %v3714_v53 = vmul.f32 0.25, %v3706_v26  ;;  %v3275_v6 = vpop.f32.mrf.mxu2  ;;  %v3540_v41 = vpop.f32.mrf.mxu1  ;;  %v3101_v33 = vadd.f32 %v6394_v46, %v6393_v62 }
 0x43b   : > { %v3276_v63 = vadd.f32 %v3275_v6, %v3187_v14  ;;  %v3911_v26 = vadd.f32 %v4601_v25, %v3887_v3  ;;  %v6188_v6 = vld [vmem:[%s6259_s8] ss:$0 sm:$0xff] }
 0x43c   : > { %v3575_v61 = vmax.f32 %v3533_v45, 0.0  ;;  %v3719_v30 = vpack.c.bf16 %v3714_v53, %v3713_v34  ;;  %v3912_v45 = vadd.f32 %v4602_v43, %v3888_v59  ;;  %v3190_v37 = vadd.f32 %v6395_v48, %v3101_v33 }
 0x43d   : > { %v3357_v29 = vpop.f32.mrf.mxu3 }
 0x43e   : > { %3607 = vst [vmem:[#allocation3 + $0xc8] sm:$0xff] %v3575_v61  ;;  %v3358_v9 = vadd.f32 %v3357_v29, %v3269_v24  ;;  %3807 = vmatmul.bf16.gmra.mxu2 %v3719_v30  ;;  %v3919_v24 = vmul.f32 0.25, %v3911_v26  ;;  %v3920_v61 = vmul.f32 0.25, %v3912_v45  ;;  %v3456_v49 = vpop.f32.mrf.mxu0 }
 0x440   : > { %v3447_v16 = vadd.f32 %v3446_v15, %v3358_v9  ;;  %v3924_v29 = vpack.c.bf16 %v3920_v61, %v3919_v24 }
 0x442   : > { %v3536_v23 = vadd.f32 %v3535_v2, %v3447_v16  ;;  %v3278_v34 = vpop.f32.mrf.mxu2  ;;  %v3542_v53 = vpop.f32.mrf.mxu1  ;;  %v3103_v16 = vadd.f32 %v6397_v40, %v6396_v22  ;;  %4016 = vmatmul.bf16.gmra.mxu3 %v3924_v29 }
 0x443   : > { %v3279_v9 = vadd.f32 %v3278_v34, %v3190_v37 }
 0x444   : > { %v3576_v12 = vmax.f32 %v3536_v23, 0.0  ;;  %v3192_v44 = vadd.f32 %v6398_v38, %v3103_v16 }
 0x445   : > { %v3359_v31 = vpop.f32.mrf.mxu3 }
 0x446   : > { %3608 = vst [vmem:[#allocation3 + $0xd0] sm:$0xff] %v3576_v12  ;;  %v3360_v1 = vadd.f32 %v3359_v31, %v3271_v27 }
 0x448   : > { %v3449_v39 = vadd.f32 %v3448_v51, %v3360_v1 }
 0x44a   : > { %v3538_v0 = vadd.f32 %v3537_v52, %v3449_v39  ;;  %v3545_v27 = vpop.f32.mrf.mxu1  ;;  %v3280_v12 = vpop.f32.mrf.mxu2 }
 0x44b   : > { %v3281_v1 = vadd.f32 %v3280_v12, %v3192_v44 }
 0x44c   : > { %v3577_v7 = vmax.f32 %v3538_v0, 0.0  ;;  %v3458_v0 = vpop.f32.mrf.mxu0 }
 0x44d   : > { %v3362_v17 = vpop.f32.mrf.mxu3 }
 0x44e   : > { %3609 = vst [vmem:[#allocation3 + $0xd8] sm:$0xff] %v3577_v7  ;;  %v3363_v28 = vadd.f32 %v3362_v17, %v3274_v54  ;;  %v3626_v17 = vld [vmem:[#allocation3 + $0xc0] ss:$2 sm:$0xff] }
 0x450   : > { %v3452_v35 = vadd.f32 %v3451_v60, %v3363_v28  ;;  %v3650_v28 = vld [vmem:[#allocation3 + $0xc1] ss:$2 sm:$0xff] }
 0x451   : > { %v3659_v21 = vadd.f32 %v3650_v28, %v3626_v17 }
 0x452   : > { %v3541_v4 = vadd.f32 %v3540_v41, %v3452_v35  ;;  %v3798_v54 = vpop.f32.mrf.mxu2  ;;  %v3547_v11 = vpop.f32.mrf.mxu1 }
 0x453   : > { %v3799_v5 = vadd.f32 %v6183_v57, %v3798_v54 }
 0x454   : > { %v3578_v15 = vmax.f32 %v3541_v4, 0.0 }
 0x455   : > { %v3364_v8 = vpop.f32.mrf.mxu3  ;;  %v3674_v35 = vld [vmem:[#allocation3 + $0xd0] ss:$2 sm:$0xff] }
 0x456   : > { %3610 = vst [vmem:[#allocation3 + $0xe0] sm:$0xff] %v3578_v15  ;;  %v3365_v2 = vadd.f32 %v3364_v8, %v3276_v63  ;;  %v3683_v4 = vadd.f32 %v3674_v35, %v3659_v21  ;;  %v3698_v63 = vld [vmem:[#allocation3 + $0xd1] ss:$2 sm:$0xff] }
 0x458   : > { %v3454_v47 = vadd.f32 %v3453_v18, %v3365_v2  ;;  %v3707_v15 = vadd.f32 %v3698_v63, %v3683_v4 }
 0x45a   : > { %v3543_v30 = vadd.f32 %v3542_v53, %v3454_v47  ;;  %v3800_v56 = vpop.f32.mrf.mxu2  ;;  %v3715_v8 = vmul.f32 0.25, %v3707_v15 }
 0x45b   : > { %v3801_v62 = vadd.f32 %v6183_v57, %v3800_v56 }
 0x45c   : > { %v3579_v51 = vmax.f32 %v3543_v30, 0.0 }
 0x45d   : > { %v3367_v23 = vpop.f32.mrf.mxu3 }
 0x45e   : > { %3611 = vst [vmem:[#allocation3 + $0xe8] sm:$0xff] %v3579_v51  ;;  %v3368_v52 = vadd.f32 %v3367_v23, %v3279_v9 }
 0x460   : > { %v3457_v42 = vadd.f32 %v3456_v49, %v3368_v52 }
 0x462   : > { %v3546_v31 = vadd.f32 %v3545_v27, %v3457_v42 }
 0x464   : > { %v3580_v20 = vmax.f32 %v3546_v31, 0.0 }
 0x465   : > { %v3369_v10 = vpop.f32.mrf.mxu3  ;;  %v3628_v50 = vld [vmem:[#allocation3 + $0xe0] ss:$2 sm:$0xff]  ;;  %v3652_v32 = vld [vmem:[#allocation3 + $0xe1] ss:$2 sm:$0xff] }
 0x466   : > { %3612 = vst [vmem:[#allocation3 + $0xf0] sm:$0xff] %v3580_v20  ;;  %v3370_v39 = vadd.f32 %v3369_v10, %v3281_v1  ;;  %v3660_v58 = vadd.f32 %v3652_v32, %v3628_v50 }
 0x468   : > { %v3459_v60 = vadd.f32 %v3458_v0, %v3370_v39 }
 0x46a   : > { %v3548_v36 = vadd.f32 %v3547_v11, %v3459_v60 }
 0x46c   : > { %v3581_v7 = vmax.f32 %v3548_v36, 0.0 }
 0x46d   : > { %v4002_v41 = vpop.f32.mrf.mxu3 }
 0x46e   : > { %3613 = vst [vmem:[#allocation3 + $0xf8] sm:$0xff] %v3581_v7  ;;  %v4003_v14 = vadd.f32 %v6188_v6, %v4002_v41 }
 0x470   : > { %v4022_v55 = vadd.f32 %v4003_v14, %v3799_v5 }
 0x472   : > { %v4030_v19 = vmax.f32 %v4022_v55, 0.0 }
 0x474   : > { %4038 = vst [vmem:[%s6193_s23] sm:$0xff] %v4030_v19 }
 0x475   : > { %v4004_v13 = vpop.f32.mrf.mxu3  ;;  %v3676_v3 = vld [vmem:[#allocation3 + $0xf0] ss:$2 sm:$0xff]  ;;  %v3700_v59 = vld [vmem:[#allocation3 + $0xf1] ss:$2 sm:$0xff] }
 0x476   : > { %v4005_v46 = vadd.f32 %v6188_v6, %v4004_v13  ;;  %v3684_v33 = vadd.f32 %v3676_v3, %v3660_v58 }
 0x478   : > { %v4023_v25 = vadd.f32 %v4005_v46, %v3801_v62  ;;  %v3708_v43 = vadd.f32 %v3700_v59, %v3684_v33 }
 0x47a   : > { %v4031_v18 = vmax.f32 %v4023_v25, 0.0  ;;  %v3716_v26 = vmul.f32 0.25, %v3708_v43 }
 0x47c   : > { %4039 = vst [vmem:[%s6193_s23 + $0x8] sm:$0xff] %v4031_v18  ;;  %v3720_v2 = vpack.c.bf16 %v3716_v26, %v3715_v8 }
 0x47d   : > { %v4007_v45 = vpop.f32.mrf.mxu3 }
 0x47e   : > { %3812 = vmatmul.bf16.gmra.mxu2 %v3720_v2  ;;  %v4008_v34 = vadd.f32 %v6188_v6, %v4007_v45 }
 0x481   : > { %v3803_v53 = vpop.f32.mrf.mxu2 }
 0x482   : > { %v3804_v24 = vadd.f32 %v6183_v57, %v3803_v53 }
 0x484   : > { %v4024_v48 = vadd.f32 %v4008_v34, %v3804_v24 }
 0x485   : > { %v4009_v37 = vpop.f32.mrf.mxu3 }
 0x486   : > { %v4032_v47 = vmax.f32 %v4024_v48, 0.0  ;;  %v4010_v61 = vadd.f32 %v6188_v6, %v4009_v37 }
 0x488   : > { %4040 = vst [vmem:[%s6193_s23 + $0x10] sm:$0xff] %v4032_v47 }
 0x489   : > { %v3805_v30 = vpop.f32.mrf.mxu2 }
 0x48a   : > { %v3806_v29 = vadd.f32 %v6183_v57, %v3805_v30 }
 0x48c   : > { %v4025_v9 = vadd.f32 %v4010_v61, %v3806_v29 }
 0x48e   : > { %v4033_v22 = vmax.f32 %v4025_v9, 0.0 }
 0x490   : > { %4041 = vst [vmem:[%s6193_s23 + $0x18] sm:$0xff] %v4033_v22 }
 0x49b   : > { %v4012_v40 = vpop.f32.mrf.mxu3 }
 0x49c   : > { %v4013_v16 = vadd.f32 %v6188_v6, %v4012_v40 }
 0x4a3   : > { %v4014_v52 = vpop.f32.mrf.mxu3 }
 0x4a4   : > { %v4015_v38 = vadd.f32 %v6188_v6, %v4014_v52 }
 0x4c1   : > { %v3808_v51 = vpop.f32.mrf.mxu2 }
 0x4c2   : > { %v3809_v49 = vadd.f32 %v6183_v57, %v3808_v51 }
 0x4c4   : > { %v4026_v23 = vadd.f32 %v4013_v16, %v3809_v49 }
 0x4c5   : > { %v4017_v1 = vpop.f32.mrf.mxu3 }
 0x4c6   : > { %v4034_v27 = vmax.f32 %v4026_v23, 0.0  ;;  %v4018_v20 = vadd.f32 %v6188_v6, %v4017_v1 }
 0x4c8   : > { %4042 = vst [vmem:[%s6193_s23 + $0x20] sm:$0xff] %v4034_v27 }
 0x4c9   : > { %v3810_v44 = vpop.f32.mrf.mxu2 }
 0x4ca   : > { %v3811_v42 = vadd.f32 %v6183_v57, %v3810_v44 }
 0x4cc   : > { %v4027_v12 = vadd.f32 %v4015_v38, %v3811_v42 }
 0x4cd   : > { %v4019_v54 = vpop.f32.mrf.mxu3 }
 0x4ce   : > { %v4035_v31 = vmax.f32 %v4027_v12, 0.0  ;;  %v4020_v36 = vadd.f32 %v6188_v6, %v4019_v54 }
 0x4d0   : > { %4043 = vst [vmem:[%s6193_s23 + $0x28] sm:$0xff] %v4035_v31 }
 0x501   : > { %v3813_v10 = vpop.f32.mrf.mxu2 }
 0x502   : > { %v3814_v39 = vadd.f32 %v6183_v57, %v3813_v10 }
 0x504   : > { %v4028_v0 = vadd.f32 %v4018_v20, %v3814_v39 }
 0x506   : > { %v4036_v60 = vmax.f32 %v4028_v0, 0.0 }
 0x508   : > { %4044 = vst [vmem:[%s6193_s23 + $0x30] sm:$0xff] %v4036_v60 }
 0x509   : > { %v3815_v11 = vpop.f32.mrf.mxu2 }
 0x50a   : > { %v3816_v7 = vadd.f32 %v6183_v57, %v3815_v11 }
 0x50c   : > { %v4029_v41 = vadd.f32 %v4020_v36, %v3816_v7 }
 0x50e   : > { %v4037_v17 = vmax.f32 %v4029_v41, 0.0 }
 0x510   : > { %4045 = vst [vmem:[%s6193_s23 + $0x38] sm:$0xff] %v4037_v17 }
 0x511   : > { %5031 = shalt.err (!%p5028_p10)
}
 0x512   : > { %s5090_s27 = smov 128   ;;  %s5091_s23 = smov 8  }
 0x513   : > { %4772 = dma.vmem_to_hbm [thread:$0]  (%p5226_p3), %s4060_s20, 1024, %s4062_s18, %s4047_s13, %s5090_s27, %s5090_s27, %s5091_s23  }
 0x514 PF: > { %s4076_s3 = sand.u32 1, %s5066_s30   ;;  %p6399_p12 = scmp.ge.s32.totalorder %s5078_s12, 2 }
 0x515   : > { %s4077_s5 = scalar_lea.sflag [#allocation6], %s4076_s3 }
 0x516   : > { %p4792_p13 = pnand %p6399_p12, %p5177_p6 }
 0x518   : > { %p4793_p0 = pneg %p4792_p13 }
 0x51a   : > { %5061 = dma.done.wait (%p4793_p0), %s4077_s5, 1024  }
 0x51b   : > { %5063 = vsyncadd (%p4793_p0), %s4077_s5, 4294966272  ;;  %p24_p5 = scmp.ge.s32.totalorder %s5216_s26, 4   ;;  %s6400_s30 = smov %s5070_s10 }
 0x51c   : > { %s6401_s10 = smov %s5074_s11  ;;  %s6402_s11 = smov %s5232_s21 }
 0x51d   : > { %s6403_s12 = smov %s5216_s26  ;;  %26 = sbr.rel (!%p24_p5) target bundleno = 11 (0xb), region = 182 }
 0x522   :  { %4083 = vsyncpa [#allocation5], 1 }
 0x523   :  { %4085 = vsyncpa [#allocation5 + $0x1], 1 }
 0x524   :  { %4086 = vsyncpa [#allocation8], 1 }
 0x525   :  { %4087 = vsyncpa [#allocation11], 1 }
 0x526   :  { %4088 = vsyncpa [#allocation6], 1 }
 0x527   :  { %4090 = vsyncpa [#allocation6 + $0x1], 1 }

</bundles_post_ra>
